<compile_context>
chip_gen: v7x
topology: tpu7x:2x2x1
jax: 0.10.0
libtpu: 0.0.40
codegen_flags: <defaults>
</compile_context>

<pallas_src>
import math

import jax
import jax.numpy as jnp
import numpy as np
from jax.experimental import pallas as pl
from jax.experimental.pallas import tpu as pltpu

# Hyper-parameters fixed by the PyTorch module definition.
NUM_FEATURES_XT = 25
VOCAB = NUM_FEATURES_XT + 1          # 26
EMBED_DIM = 128
SEQ_LEN = 1000                       # Conv1d(in_channels=1000) => seq length
N_FILTERS = 32
KERNEL_SIZE = 8
CONV_OUT_LEN = EMBED_DIM - KERNEL_SIZE + 1   # 121 (matches Linear(121, 200))
FC_OUT = 200


def pcnn_kernel(emb_ref, wconv_ref, bconv_ref, wfc_ref, bfc_ref, out_ref):
    # emb_ref   : (BB, SEQ_LEN, EMBED_DIM)          bf16
    # wconv_ref : (K*F, SEQ_LEN) = (256, 1000)      bf16
    # bconv_ref : (F, 1)                            f32
    # wfc_ref   : (CONV_OUT_LEN, FC_OUT) = (121,200) bf16
    # bfc_ref   : (1, FC_OUT)                       f32
    # out_ref   : (BB, F, FC_OUT)                   f32
    bb = out_ref.shape[0]                           # static batch block

    wconv = wconv_ref[...]                          # (256, 1000) bf16
    bconv = bconv_ref[...]                          # (32, 1)     f32
    wfc = wfc_ref[...]                              # (121, 200)  bf16
    bfc = bfc_ref[...]                              # (1, 200)    f32

    h_blocks = []
    for b in range(bb):                             # static unroll over block
        # Single stacked MXU matmul: (256, 1000) @ (1000, 128) -> (256, 128).
        y = jnp.dot(wconv, emb_ref[b], preferred_element_type=jnp.float32)
        # Shift the small OUTPUT instead of the large input:
        #   acc[f, o] = sum_k y[k*F + f, o + k]
        acc = y[0:N_FILTERS, 0:CONV_OUT_LEN]
        for k in range(1, KERNEL_SIZE):
            acc = acc + y[k * N_FILTERS:(k + 1) * N_FILTERS,
                          k:k + CONV_OUT_LEN]        # (32, 121) f32
        # Bias + ReLU kept in f32 (works on every generation incl. v5e VPU).
        h = jnp.maximum(acc + bconv, 0.0)            # (32, 121) f32
        h_blocks.append(h.astype(jnp.bfloat16))

    # Stack the FC to M = BB*32 rows so one matmul fills the MXU.
    h_all = h_blocks[0] if bb == 1 else jnp.concatenate(h_blocks, axis=0)
    out = jnp.dot(h_all, wfc,
                  preferred_element_type=jnp.float32) + bfc   # (BB*32, 200) f32

    for b in range(bb):                              # sublane-aligned stores
        out_ref[b] = out[b * N_FILTERS:(b + 1) * N_FILTERS]


def pcnn_forward(pro_seq, params, block_b=None):
    B = pro_seq.shape[0]
    if block_b is None:
        # Amortize the ~0.35us/step pipeline overhead for big batches, but keep
        # the grid length >= 2 so both v7x TensorCores get work.
        block_b = 8 if B >= 16 else max(1, B // 2)
    n_blocks = (B + block_b - 1) // block_b
    Bp = n_blocks * block_b

    # Embedding lookup hoisted to an XLA gather; feed lane-dense bf16 emb.
    emb = params["emb_table"].astype(jnp.bfloat16)[pro_seq]       # (B, L, E)
    if Bp != B:
        emb = jnp.pad(emb, ((0, Bp - B), (0, 0), (0, 0)))

    # Conv weight (F, L, K) -> stacked 2-D (K*F, L) bf16; FC weight -> (121,200).
    wconv = jnp.transpose(params["conv_w"], (2, 0, 1)).reshape(
        KERNEL_SIZE * N_FILTERS, SEQ_LEN).astype(jnp.bfloat16)    # (256, 1000)
    bconv = params["conv_b"].reshape(N_FILTERS, 1).astype(jnp.float32)
    wfc = params["fc_w"].T.astype(jnp.bfloat16)                   # (121, 200)
    bfc = params["fc_b"].reshape(1, FC_OUT).astype(jnp.float32)

    out = pl.pallas_call(
        pcnn_kernel,
        out_shape=jax.ShapeDtypeStruct((Bp, N_FILTERS, FC_OUT), jnp.float32),
        grid=(n_blocks,),
        in_specs=[
            pl.BlockSpec((block_b, SEQ_LEN, EMBED_DIM), lambda b: (b, 0, 0)),
            pl.BlockSpec((KERNEL_SIZE * N_FILTERS, SEQ_LEN), lambda b: (0, 0)),
            pl.BlockSpec((N_FILTERS, 1), lambda b: (0, 0)),
            pl.BlockSpec((CONV_OUT_LEN, FC_OUT), lambda b: (0, 0)),
            pl.BlockSpec((1, FC_OUT), lambda b: (0, 0)),
        ],
        out_specs=pl.BlockSpec((block_b, N_FILTERS, FC_OUT),
                               lambda b: (b, 0, 0)),
        compiler_params=pltpu.CompilerParams(
            dimension_semantics=("parallel",)),
    )(emb, wconv, bconv, wfc, bfc)
    return out[:B]


def pcnn_reference(pro_seq, params):
    """Independent pure-JAX (f32) reference mirroring the PyTorch forward."""
    emb = params["emb_table"][pro_seq]                             # (B, L, E)
    conv = jax.lax.conv_general_dilated(
        emb, params["conv_w"], window_strides=(1,), padding="VALID",
        dimension_numbers=("NCW", "OIW", "NCW"))                   # (B, F, 121)
    conv = conv + params["conv_b"][None, :, None]
    h = jnp.maximum(conv, 0.0)
    return jnp.einsum("bfl,ol->bfo", h, params["fc_w"]) + params["fc_b"]


def init_params(key):
    """Deterministic synthetic parameters, shaped like the torch module."""
    k_emb, k_cw, k_cb, k_fw, k_fb = jax.random.split(key, 5)
    emb_table = jax.random.normal(k_emb, (VOCAB, EMBED_DIM), jnp.float32)
    b1 = 1.0 / np.sqrt(SEQ_LEN * KERNEL_SIZE)
    conv_w = jax.random.uniform(k_cw, (N_FILTERS, SEQ_LEN, KERNEL_SIZE),
                                jnp.float32, -b1, b1)
    conv_b = jax.random.uniform(k_cb, (N_FILTERS,), jnp.float32, -b1, b1)
    b2 = 1.0 / np.sqrt(CONV_OUT_LEN)
    fc_w = jax.random.uniform(k_fw, (FC_OUT, CONV_OUT_LEN), jnp.float32, -b2, b2)
    fc_b = jax.random.uniform(k_fb, (FC_OUT,), jnp.float32, -b2, b2)
    return dict(emb_table=emb_table, conv_w=conv_w, conv_b=conv_b,
                fc_w=fc_w, fc_b=fc_b)


if __name__ == "__main__":
    key = jax.random.PRNGKey(0)
    k_params, k_seq = jax.random.split(key)
    params = init_params(k_params)
    # pro_seq: protein token ids in [0, 25]; torch casts to int64, we use int32.
    B = 4                                   # small batch; grid = (2,) with BB=2
    pro_seq = jax.random.randint(k_seq, (B, SEQ_LEN), 0, VOCAB, dtype=jnp.int32)

    out = jax.jit(pcnn_forward)(pro_seq, params)
    out = jax.block_until_ready(out)
    assert out.shape == (B, N_FILTERS, FC_OUT) and out.dtype == jnp.float32

    ref = pcnn_reference(pro_seq, params)
    np.testing.assert_allclose(np.asarray(out), np.asarray(ref),
                               rtol=2e-2, atol=2e-2)
    print("KERNEL_OK")
</pallas_src>

<mosaic_0001>
module attributes {stable_mosaic.version = 11 : i64} {
  func.func @pcnn_kernel(%arg0: i32, %arg1: memref<2x1000x128xbf16, #tpu.memory_space<vmem>>, %arg2: memref<256x1000xbf16, #tpu.memory_space<vmem>>, %arg3: memref<32x1xf32, #tpu.memory_space<vmem>>, %arg4: memref<121x200xbf16, #tpu.memory_space<vmem>>, %arg5: memref<1x200xf32, #tpu.memory_space<vmem>>, %arg6: memref<2x32x200xf32, #tpu.memory_space<vmem>>) attributes {dimension_semantics = [#tpu.dimension_semantics<parallel>], iteration_bounds = array<i64: 2>, scalar_prefetch = 0 : i64, scratch_operands = 0 : i64, tpu.core_type = #tpu.core_type<tc>, window_params = [{transform_indices = @transform_0, window_bounds = array<i64: 2, 1000, 128>}, {pipeline_mode = #tpu.pipeline_mode<synchronous>, transform_indices = @transform_1, window_bounds = array<i64: 256, 1000>}, {pipeline_mode = #tpu.pipeline_mode<synchronous>, transform_indices = @transform_2, window_bounds = array<i64: 32, 1>}, {pipeline_mode = #tpu.pipeline_mode<synchronous>, transform_indices = @transform_3, window_bounds = array<i64: 121, 200>}, {pipeline_mode = #tpu.pipeline_mode<synchronous>, transform_indices = @transform_4, window_bounds = array<i64: 1, 200>}, {transform_indices = @transform_5, window_bounds = array<i64: 2, 32, 200>}]} {
    %c0 = arith.constant 0 : index
    %c0_0 = arith.constant 0 : index
    %0 = vector.load %arg2[%c0, %c0_0] : memref<256x1000xbf16, #tpu.memory_space<vmem>>, vector<256x1000xbf16>
    %c0_1 = arith.constant 0 : index
    %c0_2 = arith.constant 0 : index
    %1 = vector.load %arg3[%c0_1, %c0_2] : memref<32x1xf32, #tpu.memory_space<vmem>>, vector<32x1xf32>
    %c0_3 = arith.constant 0 : index
    %c0_4 = arith.constant 0 : index
    %2 = vector.load %arg4[%c0_3, %c0_4] : memref<121x200xbf16, #tpu.memory_space<vmem>>, vector<121x200xbf16>
    %c0_5 = arith.constant 0 : index
    %c0_6 = arith.constant 0 : index
    %3 = vector.load %arg5[%c0_5, %c0_6] : memref<1x200xf32, #tpu.memory_space<vmem>>, vector<1x200xf32>
    %c0_7 = arith.constant 0 : index
    %c0_8 = arith.constant 0 : index
    %c0_9 = arith.constant 0 : index
    %4 = vector.load %arg1[%c0_7, %c0_8, %c0_9] : memref<2x1000x128xbf16, #tpu.memory_space<vmem>>, vector<1x1000x128xbf16>
    %5 = vector.shape_cast %4 : vector<1x1000x128xbf16> to vector<1000x128xbf16>
    %cst = arith.constant dense<0.000000e+00> : vector<256x128xf32>
    %6 = tpu.matmul %0, %5, %cst {dimension_numbers = #tpu.dot_dimension_numbers<[1], [0], [0], [1], [0, 0, 1, 1], [], []>} : vector<256x1000xbf16>, vector<1000x128xbf16>, vector<256x128xf32> -> vector<256x128xf32>
    %7 = vector.extract_strided_slice %6 {offsets = [0, 0], sizes = [32, 121], strides = [1, 1]} : vector<256x128xf32> to vector<32x121xf32>
    %8 = vector.extract_strided_slice %6 {offsets = [32, 1], sizes = [32, 121], strides = [1, 1]} : vector<256x128xf32> to vector<32x121xf32>
    %9 = arith.addf %7, %8 : vector<32x121xf32>
    %10 = vector.extract_strided_slice %6 {offsets = [64, 2], sizes = [32, 121], strides = [1, 1]} : vector<256x128xf32> to vector<32x121xf32>
    %11 = arith.addf %9, %10 : vector<32x121xf32>
    %12 = vector.extract_strided_slice %6 {offsets = [96, 3], sizes = [32, 121], strides = [1, 1]} : vector<256x128xf32> to vector<32x121xf32>
    %13 = arith.addf %11, %12 : vector<32x121xf32>
    %14 = vector.extract_strided_slice %6 {offsets = [128, 4], sizes = [32, 121], strides = [1, 1]} : vector<256x128xf32> to vector<32x121xf32>
    %15 = arith.addf %13, %14 : vector<32x121xf32>
    %16 = vector.extract_strided_slice %6 {offsets = [160, 5], sizes = [32, 121], strides = [1, 1]} : vector<256x128xf32> to vector<32x121xf32>
    %17 = arith.addf %15, %16 : vector<32x121xf32>
    %18 = vector.extract_strided_slice %6 {offsets = [192, 6], sizes = [32, 121], strides = [1, 1]} : vector<256x128xf32> to vector<32x121xf32>
    %19 = arith.addf %17, %18 : vector<32x121xf32>
    %20 = vector.extract_strided_slice %6 {offsets = [224, 7], sizes = [32, 121], strides = [1, 1]} : vector<256x128xf32> to vector<32x121xf32>
    %21 = arith.addf %19, %20 : vector<32x121xf32>
    %22 = vector.broadcast %1 : vector<32x1xf32> to vector<32x121xf32>
    %23 = arith.addf %21, %22 : vector<32x121xf32>
    %cst_10 = arith.constant 0.000000e+00 : f32
    %24 = vector.broadcast %cst_10 : f32 to vector<32x121xf32>
    %25 = arith.maximumf %23, %24 : vector<32x121xf32>
    %26 = arith.truncf %25 : vector<32x121xf32> to vector<32x121xbf16>
    %c1 = arith.constant 1 : index
    %c0_11 = arith.constant 0 : index
    %c0_12 = arith.constant 0 : index
    %27 = vector.load %arg1[%c1, %c0_11, %c0_12] : memref<2x1000x128xbf16, #tpu.memory_space<vmem>>, vector<1x1000x128xbf16>
    %28 = vector.shape_cast %27 : vector<1x1000x128xbf16> to vector<1000x128xbf16>
    %cst_13 = arith.constant dense<0.000000e+00> : vector<256x128xf32>
    %29 = tpu.matmul %0, %28, %cst_13 {dimension_numbers = #tpu.dot_dimension_numbers<[1], [0], [0], [1], [0, 0, 1, 1], [], []>} : vector<256x1000xbf16>, vector<1000x128xbf16>, vector<256x128xf32> -> vector<256x128xf32>
    %30 = vector.extract_strided_slice %29 {offsets = [0, 0], sizes = [32, 121], strides = [1, 1]} : vector<256x128xf32> to vector<32x121xf32>
    %31 = vector.extract_strided_slice %29 {offsets = [32, 1], sizes = [32, 121], strides = [1, 1]} : vector<256x128xf32> to vector<32x121xf32>
    %32 = arith.addf %30, %31 : vector<32x121xf32>
    %33 = vector.extract_strided_slice %29 {offsets = [64, 2], sizes = [32, 121], strides = [1, 1]} : vector<256x128xf32> to vector<32x121xf32>
    %34 = arith.addf %32, %33 : vector<32x121xf32>
    %35 = vector.extract_strided_slice %29 {offsets = [96, 3], sizes = [32, 121], strides = [1, 1]} : vector<256x128xf32> to vector<32x121xf32>
    %36 = arith.addf %34, %35 : vector<32x121xf32>
    %37 = vector.extract_strided_slice %29 {offsets = [128, 4], sizes = [32, 121], strides = [1, 1]} : vector<256x128xf32> to vector<32x121xf32>
    %38 = arith.addf %36, %37 : vector<32x121xf32>
    %39 = vector.extract_strided_slice %29 {offsets = [160, 5], sizes = [32, 121], strides = [1, 1]} : vector<256x128xf32> to vector<32x121xf32>
    %40 = arith.addf %38, %39 : vector<32x121xf32>
    %41 = vector.extract_strided_slice %29 {offsets = [192, 6], sizes = [32, 121], strides = [1, 1]} : vector<256x128xf32> to vector<32x121xf32>
    %42 = arith.addf %40, %41 : vector<32x121xf32>
    %43 = vector.extract_strided_slice %29 {offsets = [224, 7], sizes = [32, 121], strides = [1, 1]} : vector<256x128xf32> to vector<32x121xf32>
    %44 = arith.addf %42, %43 : vector<32x121xf32>
    %45 = vector.broadcast %1 : vector<32x1xf32> to vector<32x121xf32>
    %46 = arith.addf %44, %45 : vector<32x121xf32>
    %cst_14 = arith.constant 0.000000e+00 : f32
    %47 = vector.broadcast %cst_14 : f32 to vector<32x121xf32>
    %48 = arith.maximumf %46, %47 : vector<32x121xf32>
    %49 = arith.truncf %48 : vector<32x121xf32> to vector<32x121xbf16>
    %50 = tpu.concatenate %26, %49 in 0 : vector<32x121xbf16>, vector<32x121xbf16> -> vector<64x121xbf16>
    %cst_15 = arith.constant dense<0.000000e+00> : vector<64x200xf32>
    %51 = tpu.matmul %50, %2, %cst_15 {dimension_numbers = #tpu.dot_dimension_numbers<[1], [0], [0], [1], [0, 0, 1, 1], [], []>} : vector<64x121xbf16>, vector<121x200xbf16>, vector<64x200xf32> -> vector<64x200xf32>
    %52 = vector.broadcast %3 : vector<1x200xf32> to vector<64x200xf32>
    %53 = arith.addf %51, %52 : vector<64x200xf32>
    %54 = vector.extract_strided_slice %53 {offsets = [0, 0], sizes = [32, 200], strides = [1, 1]} : vector<64x200xf32> to vector<32x200xf32>
    %c0_16 = arith.constant 0 : index
    %c0_17 = arith.constant 0 : index
    %c0_18 = arith.constant 0 : index
    %55 = vector.load %arg6[%c0_16, %c0_17, %c0_18] : memref<2x32x200xf32, #tpu.memory_space<vmem>>, vector<1x32x200xf32>
    %56 = vector.shape_cast %55 : vector<1x32x200xf32> to vector<32x200xf32>
    %57 = vector.shape_cast %54 : vector<32x200xf32> to vector<1x32x200xf32>
    tpu.vector_store %arg6[%c0_16, %c0_17, %c0_18], %57 {strides = array<i32>} : memref<2x32x200xf32, #tpu.memory_space<vmem>>, vector<1x32x200xf32>,
    %58 = vector.extract_strided_slice %53 {offsets = [32, 0], sizes = [32, 200], strides = [1, 1]} : vector<64x200xf32> to vector<32x200xf32>
    %c1_19 = arith.constant 1 : index
    %c0_20 = arith.constant 0 : index
    %c0_21 = arith.constant 0 : index
    %59 = vector.load %arg6[%c1_19, %c0_20, %c0_21] : memref<2x32x200xf32, #tpu.memory_space<vmem>>, vector<1x32x200xf32>
    %60 = vector.shape_cast %59 : vector<1x32x200xf32> to vector<32x200xf32>
    %61 = vector.shape_cast %58 : vector<32x200xf32> to vector<1x32x200xf32>
    tpu.vector_store %arg6[%c1_19, %c0_20, %c0_21], %61 {strides = array<i32>} : memref<2x32x200xf32, #tpu.memory_space<vmem>>, vector<1x32x200xf32>,
    return
  }
  func.func @transform_0(%arg0: i32) -> (i32, i32, i32) {
    %c0_i32 = arith.constant 0 : i32
    %c0_i32_0 = arith.constant 0 : i32
    %c0_i32_1 = arith.constant 0 : i32
    return %arg0, %c0_i32, %c0_i32_0 : i32, i32, i32
  }
  func.func @transform_1(%arg0: i32) -> (i32, i32) {
    %c0_i32 = arith.constant 0 : i32
    %c0_i32_0 = arith.constant 0 : i32
    %c0_i32_1 = arith.constant 0 : i32
    return %c0_i32, %c0_i32_0 : i32, i32
  }
  func.func @transform_2(%arg0: i32) -> (i32, i32) {
    %c0_i32 = arith.constant 0 : i32
    %c0_i32_0 = arith.constant 0 : i32
    %c0_i32_1 = arith.constant 0 : i32
    return %c0_i32, %c0_i32_0 : i32, i32
  }
  func.func @transform_3(%arg0: i32) -> (i32, i32) {
    %c0_i32 = arith.constant 0 : i32
    %c0_i32_0 = arith.constant 0 : i32
    %c0_i32_1 = arith.constant 0 : i32
    return %c0_i32, %c0_i32_0 : i32, i32
  }
  func.func @transform_4(%arg0: i32) -> (i32, i32) {
    %c0_i32 = arith.constant 0 : i32
    %c0_i32_0 = arith.constant 0 : i32
    %c0_i32_1 = arith.constant 0 : i32
    return %c0_i32, %c0_i32_0 : i32, i32
  }
  func.func @transform_5(%arg0: i32) -> (i32, i32, i32) {
    %c0_i32 = arith.constant 0 : i32
    %c0_i32_0 = arith.constant 0 : i32
    %c0_i32_1 = arith.constant 0 : i32
    return %arg0, %c0_i32, %c0_i32_0 : i32, i32, i32
  }
}

</mosaic_0001>

<bundles_post_ra>
// kernel: pcnn_forward.1
= control target key start
LH: loop header
LB: loop body
LE: loop exit
PB: predicated region body
PF: predicated region fallthrough
CT: control target
= control target key end

     0   :  { %10 = vsyncpa [#allocation3], 0  ;;  %s7059_s0 = inlined_call_operand.vmem [shape: bf16[4,1000,128], index: 0, kind: input, shape index: {}]   ;;  %s7060_s1 = inlined_call_operand.vmem [shape: bf16[256,1000], index: 1, kind: input, shape index: {}]   ;;  %s7061_s2 = inlined_call_operand.vmem [shape: f32[32,1], index: 2, kind: input, shape index: {}]   ;;  %s7062_s3 = inlined_call_operand.vmem [shape: bf16[121,200], index: 3, kind: input, shape index: {}]   ;;  %s7063_s4 = inlined_call_operand.vmem [shape: f32[1,200], index: 4, kind: input, shape index: {}]   ;;  %s7064_s5 = inlined_call_operand.hbm [shape: f32[4,32,200], index: 5, kind: output, shape index: {}]  }
   0x1   :  { %12 = vsyncpa [#allocation3 + $0x1], 0  ;;  %s5398_s18 = smov 0   ;;  %s5400_s19 = smov 0  }
   0x2   :  { %s5402_s20 = smov 0   ;;  %s5404_s21 = smov 0  }
   0x3 LB: > { %s5419_s22 = sadd.s32 4294967295, %s5354_s21   ;;  %s3947_s23 = sadd.s32 4294967294, %s5354_s21   ;;  %s5354_s21 = sphi %s5404_s21, %s7337_s21   ;;  %s5350_s20 = sphi %s5402_s20, %s7336_s20   ;;  %s5346_s19 = sphi %s5400_s19, %s7335_s19   ;;  %s5342_s18 = sphi %s5398_s18, %s7334_s18  }
   0x4   : > { %s5423_s24 = sadd.s32 1, %s5354_s21   ;;  %s135_s25 = sadd.s32 1, %s5350_s20 }
   0x5   : > { %s132_s26 = ssub.s32 %s5354_s21, %s5423_s24  ;;  %p145_p0 = scmp.ne.s32.totalorder %s5350_s20, %s5346_s19 }
   0x6   : > { %p133_p1 = scmp.eq.s32.totalorder %s132_s26, 0  ;;  %p146_p2 = scmp.eq.s32.totalorder %s5419_s22, 1 }
   0x7   : > { %p151_p3 = scmp.ne.s32.totalorder %s5346_s19, %s5342_s18  ;;  %p152_p4 = scmp.eq.s32.totalorder %s3947_s23, 1 }
   0x8   : > { %s5434_s27 = scalar_select %p133_p1, %s5350_s20, %s135_s25  }
   0x9   : > { %p5436_p5 = por %p146_p2, %p145_p0  ;;  %p5440_p6 = por %p152_p4, %p151_p3 }
   0xa   : > { %p3950_p7 = scmp.ge.s32.totalorder %s5354_s21, 1  ;;  %p192_p8 = scmp.lt.s32.totalorder %s5354_s21, 3 }
   0xc   : > { %p193_p9 = pnand %p3950_p7, %p192_p8 }
   0xe   : > { %196 = sbr.rel (%p193_p9) target bundleno = 1142 (0x476), region = 40 }
  0x15   : > { %s3952_s30 = sshll.u32 %s5419_s22, 1  ;;  %v5450_v0 = vld [vmem:[%s7060_s1] sm:$0xff]  ;;  %v5460_v2 = vld [vmem:[%s7060_s1 + $0x8] sm:$0xff]  ;;  %v7065_v5 = vmov 0   ;;  %vm1552_vm0 = vcmask 1043456   ;;  %vm1503_vm1 = vcmask 850944  }
  0x16   : > { %v5455_v1 = vld [vmem:[%s7060_s1 + $0x20] sm:$0xff]  ;;  %p222_p10 = scmp.lt.s32.totalorder %s3952_s30, 3  ;;  %v5469_v4 = vld [vmem:[%s7060_s1 + $0x28] sm:$0xff]  ;;  %5140 = vset.pattern.permute.xlu0 %v7065_v5  ;;  %5141 = vset.pattern.permute.xlu1 %v7065_v5  ;;  %s5358_s25 = smov 126   ;;  %vm3770_vm2 = vcmask 1044480   ;;  %vm3757_vm3 = vcmask 990208  }
  0x17   : > { %v5464_v3 = vcombine.high %v5450_v0, %v5455_v1  ;;  %v5475_v6 = vcombine.high %v5460_v2, %v5469_v4  ;;  %v238_v36 = vld [vmem:[%s7060_s1 + $0x40] sm:$0xff]  ;;  %v239_v39 = vld [vmem:[%s7060_s1 + $0x48] sm:$0xff]  ;;  %v5530_v43 = vcombine.low %v5450_v0, %v5455_v1  ;;  %v5534_v44 = vcombine.low %v5460_v2, %v5469_v4  ;;  %s5359_s26 = smov 125   ;;  %s5361_s10 = smov 123  }
  0x18   : > { %s7339_s30 = smov (!%p222_p10, %s3952_s30), 3  ;;  %v242_v37 = vld [vmem:[%s7060_s1 + $0x60] sm:$0xff]  ;;  %v243_v40 = vld [vmem:[%s7060_s1 + $0x68] sm:$0xff]  ;;  %s5362_s16 = smov 122   ;;  %vm3853_vm4 = vcmask 588800  }
  0x19   : > { %1588 = vmatprep.mubr.bf16.mxu0 %v5464_v3  ;;  %1749 = vmatprep.mubr.bf16.mxu1 %v5475_v6  ;;  %s5089_s14 = smul.u32 500, %s7339_s30  ;;  %v5538_v47 = vcombine.high %v238_v36, %v242_v37  ;;  %v5542_v49 = vcombine.high %v239_v39, %v243_v40  ;;  %v246_v50 = vld [vmem:[%s7060_s1 + $0x80] sm:$0xff]  ;;  %v247_v53 = vld [vmem:[%s7060_s1 + $0x88] sm:$0xff]  ;;  %v5564_v57 = vcombine.low %v238_v36, %v242_v37  ;;  %s5360_s30 = smov 124  }
  0x1a   : > { %v250_v51 = vld [vmem:[%s7060_s1 + $0xa0] sm:$0xff]  ;;  %v251_v56 = vld [vmem:[%s7060_s1 + $0xa8] sm:$0xff]  ;;  %v5567_v59 = vcombine.low %v239_v39, %v243_v40  ;;  %s5364_s7 = smov 121  }
  0x1b   : > { %s5482_s17 = scalar_lea.vmem %s7059_s0, %s5089_s14  ;;  %v5569_v60 = vcombine.high %v246_v50, %v250_v51  ;;  %v5571_v61 = vcombine.high %v247_v53, %v251_v56  ;;  %v254_v0 = vld [vmem:[%s7060_s1 + $0xc0] sm:$0xff]  ;;  %v255_v2 = vld [vmem:[%s7060_s1 + $0xc8] sm:$0xff]  ;;  %s5365_s14 = smov [#allocation2]  }
  0x1c   : > { %v5142_v7 = vld [vmem:[%s5482_s17 + $0x40] sm:$0xff]   ;;  %v5146_v11 = vld [vmem:[%s5482_s17 + $0x48] sm:$0xff]   ;;  %v5150_v15 = vld [vmem:[%s5482_s17 + $0x50] sm:$0xff]   ;;  %s5296_s15 = sshll.u32 %s5365_s14, 4  ;;  %s5297_s15 = int_to_ptr.vmem [resolvable:$false] %s5296_s15 }
  0x1d   : > { %v5143_v8 = vld [vmem:[%s5482_s17 + $0xc0] sm:$0xff]   ;;  %4401 = vmatprep.subr.bf16.mxu0 %v5142_v7  ;;  %v5147_v12 = vld [vmem:[%s5482_s17 + $0xc8] sm:$0xff]   ;;  %v5151_v16 = vld [vmem:[%s5482_s17 + $0xd0] sm:$0xff]   ;;  %s5298_s23 = scalar_lea.vmem %s5297_s15, 4096 }
  0x1e   : > { %v5144_v9 = vld [vmem:[%s5482_s17] sm:$0xff]   ;;  %4513 = vmatprep.subr.bf16.mxu1 %v5143_v8  ;;  %v5148_v13 = vld [vmem:[%s5482_s17 + $0x8] sm:$0xff]   ;;  %v5152_v17 = vld [vmem:[%s5482_s17 + $0x10] sm:$0xff]  }
  0x1f   : > { %v5145_v10 = vld [vmem:[%s5482_s17 + $0x80] sm:$0xff]   ;;  %4402 = vmatpush3.bf16.msra.mxu0 %v5144_v9  ;;  %v5149_v14 = vld [vmem:[%s5482_s17 + $0x88] sm:$0xff]   ;;  %v5153_v18 = vld [vmem:[%s5482_s17 + $0x90] sm:$0xff]  }
  0x20   : > { %4514 = vmatpush3.bf16.msra.mxu1 %v5145_v10  ;;  %4403 = vmatprep.subr.bf16.mxu0 %v5146_v11  ;;  %v5154_v19 = vld [vmem:[%s5482_s17 + $0x58] sm:$0xff]   ;;  %v5158_v23 = vld [vmem:[%s5482_s17 + $0x60] sm:$0xff]   ;;  %v5162_v27 = vld [vmem:[%s5482_s17 + $0x68] sm:$0xff]   ;;  %v5596_v10 = vcombine.low %v246_v50, %v250_v51  ;;  %v5598_v11 = vcombine.low %v247_v53, %v251_v56 }
  0x21   : > { %4515 = vmatprep.subr.bf16.mxu1 %v5147_v12  ;;  %v5155_v20 = vld [vmem:[%s5482_s17 + $0xd8] sm:$0xff]   ;;  %v5159_v24 = vld [vmem:[%s5482_s17 + $0xe0] sm:$0xff]   ;;  %v5163_v28 = vld [vmem:[%s5482_s17 + $0xe8] sm:$0xff]  }
  0x22   : > { %v5156_v21 = vld [vmem:[%s5482_s17 + $0x18] sm:$0xff]   ;;  %v5160_v25 = vld [vmem:[%s5482_s17 + $0x20] sm:$0xff]   ;;  %v5164_v29 = vld [vmem:[%s5482_s17 + $0x28] sm:$0xff]  }
  0x23   : > { %4404 = vmatpush3.bf16.msra.mxu0 %v5148_v13  ;;  %v5157_v22 = vld [vmem:[%s5482_s17 + $0x98] sm:$0xff]   ;;  %v5161_v26 = vld [vmem:[%s5482_s17 + $0xa0] sm:$0xff]   ;;  %v5165_v30 = vld [vmem:[%s5482_s17 + $0xa8] sm:$0xff]  }
  0x24   : > { %4516 = vmatpush3.bf16.msra.mxu1 %v5149_v14  ;;  %4405 = vmatprep.subr.bf16.mxu0 %v5150_v15  ;;  %v5166_v31 = vld [vmem:[%s5482_s17 + $0x70] sm:$0xff]   ;;  %v5170_v35 = vld [vmem:[%s5482_s17 + $0x78] sm:$0xff]   ;;  %v5174_v45 = vld [vmem:[%s5482_s17 + $0x140] sm:$0xff]  }
  0x25   : > { %4517 = vmatprep.subr.bf16.mxu1 %v5151_v16  ;;  %v5167_v32 = vld [vmem:[%s5482_s17 + $0xf0] sm:$0xff]   ;;  %v5171_v38 = vld [vmem:[%s5482_s17 + $0xf8] sm:$0xff]   ;;  %v5175_v46 = vld [vmem:[%s5482_s17 + $0x100] sm:$0xff]  }
  0x26   : > { %v5168_v33 = vld [vmem:[%s5482_s17 + $0x30] sm:$0xff]   ;;  %v5172_v41 = vld [vmem:[%s5482_s17 + $0x38] sm:$0xff]   ;;  %v5176_v48 = vld [vmem:[%s5482_s17 + $0x180] sm:$0xff]  }
  0x27   : > { %4406 = vmatpush3.bf16.msra.mxu0 %v5152_v17  ;;  %v5169_v34 = vld [vmem:[%s5482_s17 + $0xb0] sm:$0xff]   ;;  %v5173_v42 = vld [vmem:[%s5482_s17 + $0xb8] sm:$0xff]   ;;  %v5177_v52 = vld [vmem:[%s5482_s17 + $0x188] sm:$0xff]  }
  0x28   : > { %4518 = vmatpush3.bf16.msra.mxu1 %v5153_v18  ;;  %4407 = vmatprep.subr.bf16.mxu0 %v5154_v19  ;;  %v5178_v54 = vld [vmem:[%s5482_s17 + $0x148] sm:$0xff]   ;;  %v5181_v58 = vld [vmem:[%s5482_s17 + $0x150] sm:$0xff]   ;;  %v258_v1 = vld [vmem:[%s7060_s1 + $0xe0] sm:$0xff] }
  0x29   : > { %4519 = vmatprep.subr.bf16.mxu1 %v5155_v20  ;;  %v5179_v55 = vld [vmem:[%s5482_s17 + $0x108] sm:$0xff]   ;;  %v5180_v62 = vld [vmem:[%s5482_s17 + $0x190] sm:$0xff]   ;;  %v5182_v7 = vld [vmem:[%s5482_s17 + $0x198] sm:$0xff]   ;;  %v5600_v12 = vcombine.high %v254_v0, %v258_v1 }
  0x2a   : > { %v5183_v63 = vld [vmem:[%s5482_s17 + $0x110] sm:$0xff]   ;;  %v259_v4 = vld [vmem:[%s7060_s1 + $0xe8] sm:$0xff]  ;;  %v5185_v8 = vld [vmem:[%s5482_s17 + $0x158] sm:$0xff]  }
  0x2b   : > { %4408 = vmatpush3.bf16.msra.mxu0 %v5156_v21  ;;  %v5186_v9 = vld [vmem:[%s5482_s17 + $0x118] sm:$0xff]   ;;  %v5602_v13 = vcombine.high %v255_v2, %v259_v4  ;;  %v5184_v14 = vld [vmem:[%s5482_s17 + $0x1a0] sm:$0xff]   ;;  %v5187_v19 = vld [vmem:[%s5482_s17 + $0x1a8] sm:$0xff]  }
  0x2c   : > { %4520 = vmatpush3.bf16.msra.mxu1 %v5157_v22  ;;  %4409 = vmatprep.subr.bf16.mxu0 %v5158_v23  ;;  %v262_v15 = vld [vmem:[%s7060_s1 + $0x100] sm:$0xff]  ;;  %v263_v20 = vld [vmem:[%s7060_s1 + $0x108] sm:$0xff]  ;;  %v5626_v22 = vcombine.low %v254_v0, %v258_v1  ;;  %v5628_v23 = vcombine.low %v255_v2, %v259_v4  ;;  %v5197_v39 = vld [vmem:[%s5482_s17 + $0x170] sm:$0xff]  }
  0x2d   : > { %4521 = vmatprep.subr.bf16.mxu1 %v5159_v24  ;;  %v266_v16 = vld [vmem:[%s7060_s1 + $0x120] sm:$0xff]  ;;  %v267_v21 = vld [vmem:[%s7060_s1 + $0x128] sm:$0xff]  ;;  %v5198_v40 = vld [vmem:[%s5482_s17 + $0x130] sm:$0xff]  }
  0x2e   : > { %v5189_v17 = vld [vmem:[%s5482_s17 + $0x160] sm:$0xff]   ;;  %v5630_v24 = vcombine.high %v262_v15, %v266_v16  ;;  %v5201_v51 = vld [vmem:[%s5482_s17 + $0x178] sm:$0xff]   ;;  %v5196_v56 = vld [vmem:[%s5482_s17 + $0x1d0] sm:$0xff]  }
  0x2f   : > { %4410 = vmatpush3.bf16.msra.mxu0 %v5160_v25  ;;  %v5190_v18 = vld [vmem:[%s5482_s17 + $0x120] sm:$0xff]   ;;  %v5632_v25 = vcombine.high %v263_v20, %v267_v21  ;;  %v291_v0 = vld [vmem:[%s7060_s1 + $0x1e8] sm:$0xff]  ;;  %v5199_v1 = vld [vmem:[%s5482_s17 + $0x1d8] sm:$0xff]  }
  0x30   : > { %4522 = vmatpush3.bf16.msra.mxu1 %v5161_v26  ;;  %4411 = vmatprep.subr.bf16.mxu0 %v5162_v27  ;;  %v5188_v26 = vld [vmem:[%s5482_s17 + $0x1b0] sm:$0xff]   ;;  %v5193_v27 = vld [vmem:[%s5482_s17 + $0x168] sm:$0xff]   ;;  %v5192_v37 = vld [vmem:[%s5482_s17 + $0x1c0] sm:$0xff]  }
  0x31   : > { %4523 = vmatprep.subr.bf16.mxu1 %v5163_v28  ;;  %v5194_v28 = vld [vmem:[%s5482_s17 + $0x128] sm:$0xff]   ;;  %v5205_v2 = vld [vmem:[%s5482_s17 + $0x234] sm:$0xff]  }
  0x33   : > { %4412 = vmatpush3.bf16.msra.mxu0 %v5164_v29  ;;  %v270_v29 = vld [vmem:[%s7060_s1 + $0x140] sm:$0xff] }
  0x34   : > { %4524 = vmatpush3.bf16.msra.mxu1 %v5165_v30  ;;  %4413 = vmatprep.subr.bf16.mxu0 %v5166_v31  ;;  %v274_v30 = vld [vmem:[%s7060_s1 + $0x160] sm:$0xff]  ;;  %v271_v31 = vld [vmem:[%s7060_s1 + $0x148] sm:$0xff] }
  0x35   : > { %4525 = vmatprep.subr.bf16.mxu1 %v5167_v32  ;;  %v5191_v32 = vld [vmem:[%s5482_s17 + $0x1b8] sm:$0xff]   ;;  %v5660_v36 = vcombine.high %v270_v29, %v274_v30  ;;  %v5686_v50 = vcombine.low %v270_v29, %v274_v30 }
  0x36   : > { %v5207_v30 = vld [vmem:[%s5482_s17 + $0x2b4] sm:$0xff]  }
  0x37   : > { %4414 = vmatpush3.bf16.msra.mxu0 %v5168_v33  ;;  %v275_v33 = vld [vmem:[%s7060_s1 + $0x168] sm:$0xff] }
  0x38   : > { %4526 = vmatpush3.bf16.msra.mxu1 %v5169_v34  ;;  %4415 = vmatprep.subr.bf16.mxu0 %v5170_v35  ;;  %v5656_v34 = vcombine.low %v262_v15, %v266_v16  ;;  %v5658_v35 = vcombine.low %v263_v20, %v267_v21  ;;  %v294_v15 = vld [vmem:[%s7060_s1 + $0x200] sm:$0xff]  ;;  %v5204_v20 = vld [vmem:[%s5482_s17 + $0x1f0] ss:$0 sps:$4 sm:$0xff]  }
  0x39   : > { %4527 = vmatprep.subr.bf16.mxu1 %v5171_v38  ;;  %v5663_v38 = vcombine.high %v271_v31, %v275_v33  ;;  %v298_v16 = vld [vmem:[%s7060_s1 + $0x220] sm:$0xff]  ;;  %v1554_v29 = vsel %vm1552_vm0, %v5204_v20, 0  ;;  %v327_v20 = vld [vmem:[%s7060_s1 + $0x308] sm:$0xff] }
  0x3b   : > { %4416 = vmatpush3.bf16.msra.mxu0 %v5172_v41  ;;  %v278_v41 = vld [vmem:[%s7060_s1 + $0x180] sm:$0xff] }
  0x3c   : > { %4528 = vmatpush3.bf16.msra.mxu1 %v5173_v42  ;;  %4625 = vmatprep.subr.bf16.mxu0 %v5174_v45  ;;  %v282_v42 = vld [vmem:[%s7060_s1 + $0x1a0] sm:$0xff]  ;;  %v5195_v45 = vld [vmem:[%s5482_s17 + $0x1c8] sm:$0xff]  }
  0x3d   : > { %2039 = vmatprep.subr.bf16.mxu1 %v7065_v5  ;;  %v5691_v53 = vcombine.high %v278_v41, %v282_v42  ;;  %v5717_v4 = vcombine.low %v278_v41, %v282_v42 }
  0x3e   : > { %1589 = vmatmul.mubr.bf16.vlgmr.msra.gmra.mrb[0].mxu0 %v5530_v43 }
  0x3f   : > { %1750 = vmatmul.mubr.bf16.vlgmr.msra.gmra.mrb[0].mxu1 %v5534_v44  ;;  %4626 = vmatpush3.bf16.msra.mxu0 %v5175_v46  ;;  %v279_v46 = vld [vmem:[%s7060_s1 + $0x188] sm:$0xff] }
  0x40   : > { %2040 = vmatpush1.bf16.msra.mxu1 %v5176_v48  ;;  %1596 = vmatprep.mubr.bf16.mxu0 %v5538_v47  ;;  %v283_v48 = vld [vmem:[%s7060_s1 + $0x1a8] sm:$0xff] }
  0x41   : > { %1757 = vmatprep.mubr.bf16.mxu1 %v5542_v49  ;;  %2041 = vmatprep.subr.bf16.mxu1 %v7065_v5 }
  0x42   : > { %4627 = vmatprep.subr.bf16.mxu0 %v5178_v54  ;;  %v5202_v54 = vld [vmem:[%s5482_s17 + $0x138] sm:$0xff]  }
  0x43   : > { %4628 = vmatpush3.bf16.msra.mxu0 %v5179_v55  ;;  %v5694_v55 = vcombine.high %v279_v46, %v283_v48 }
  0x44   : > { %2042 = vmatpush1.bf16.msra.mxu1 %v5177_v52  ;;  %4629 = vmatprep.subr.bf16.mxu0 %v5181_v58  ;;  %v5689_v52 = vcombine.low %v271_v31, %v275_v33  ;;  %v286_v58 = vld [vmem:[%s7060_s1 + $0x1c0] sm:$0xff]  ;;  %v303_v33 = vld [vmem:[%s7060_s1 + $0x248] sm:$0xff] }
  0x45   : > { %2043 = vmatprep.subr.bf16.mxu1 %v7065_v5  ;;  %v302_v31 = vld [vmem:[%s7060_s1 + $0x240] sm:$0xff] }
  0x46   : > { %1597 = vmatmul.mubr.bf16.gmra.mrb[4].mxu0 %v5564_v57 }
  0x47   : > { %1758 = vmatmul.mubr.bf16.gmra.mrb[4].mxu1 %v5567_v59  ;;  %1604 = vmatprep.mubr.bf16.mxu0 %v5569_v60 }
  0x48   : > { %1765 = vmatprep.mubr.bf16.mxu1 %v5571_v61  ;;  %2044 = vmatpush1.bf16.msra.mxu1 %v5180_v62  ;;  %v290_v62 = vld [vmem:[%s7060_s1 + $0x1e0] sm:$0xff] }
  0x49   : > { %2045 = vmatprep.subr.bf16.mxu1 %v7065_v5  ;;  %4630 = vmatpush3.bf16.msra.mxu0 %v5183_v63  ;;  %v287_v63 = vld [vmem:[%s7060_s1 + $0x1c8] sm:$0xff]  ;;  %v5746_v21 = vcombine.low %v286_v58, %v290_v62 }
  0x4a   : > { %4631 = vmatprep.subr.bf16.mxu0 %v5185_v8  ;;  %v5721_v8 = vcombine.high %v286_v58, %v290_v62 }
  0x4c   : > { %2046 = vmatpush1.bf16.msra.mxu1 %v5182_v7  ;;  %v5719_v7 = vcombine.low %v279_v46, %v283_v48  ;;  %v314_v46 = vld [vmem:[%s7060_s1 + $0x2a0] sm:$0xff]  ;;  %v311_v48 = vld [vmem:[%s7060_s1 + $0x288] sm:$0xff] }
  0x4d   : > { %2047 = vmatprep.subr.bf16.mxu1 %v7065_v5  ;;  %4632 = vmatpush3.bf16.msra.mxu0 %v5186_v9  ;;  %v5723_v9 = vcombine.high %v287_v63, %v291_v0 }
  0x4e   : > { %1605 = vmatmul.mubr.bf16.gmra.mrb[8].mxu0 %v5596_v10  ;;  %4633 = vmatprep.subr.bf16.mxu0 %v5189_v17  ;;  %v295_v17 = vld [vmem:[%s7060_s1 + $0x208] sm:$0xff] }
  0x4f   : > { %1766 = vmatmul.mubr.bf16.gmra.mrb[8].mxu1 %v5598_v11  ;;  %1612 = vmatprep.mubr.bf16.mxu0 %v5600_v12 }
  0x50   : > { %1773 = vmatprep.mubr.bf16.mxu1 %v5602_v13  ;;  %2048 = vmatpush1.bf16.msra.mxu1 %v5184_v14  ;;  %v5200_v14 = vld [vmem:[%s5482_s17 + $0x1e0] sm:$0xff]  }
  0x51   : > { %2049 = vmatprep.subr.bf16.mxu1 %v7065_v5  ;;  %4634 = vmatpush3.bf16.msra.mxu0 %v5190_v18  ;;  %v299_v18 = vld [vmem:[%s7060_s1 + $0x228] sm:$0xff] }
  0x52   : > { %4635 = vmatprep.subr.bf16.mxu0 %v5193_v27  ;;  %v5750_v27 = vcombine.high %v294_v15, %v298_v16 }
  0x54   : > { %2050 = vmatpush1.bf16.msra.mxu1 %v5187_v19  ;;  %v5203_v19 = vld [vmem:[%s5482_s17 + $0x1e8] sm:$0xff]  }
  0x55   : > { %2051 = vmatprep.subr.bf16.mxu1 %v7065_v5  ;;  %4636 = vmatpush3.bf16.msra.mxu0 %v5194_v28  ;;  %v5752_v28 = vcombine.high %v295_v17, %v299_v18 }
  0x56   : > { %1613 = vmatmul.mubr.bf16.gmra.mrb[12].mxu0 %v5626_v22  ;;  %4637 = vmatprep.subr.bf16.mxu0 %v5197_v39  ;;  %v5773_v39 = vcombine.low %v294_v15, %v298_v16 }
  0x57   : > { %1774 = vmatmul.mubr.bf16.gmra.mrb[12].mxu1 %v5628_v23  ;;  %1620 = vmatprep.mubr.bf16.mxu0 %v5630_v24 }
  0x58   : > { %1781 = vmatprep.mubr.bf16.mxu1 %v5632_v25  ;;  %2052 = vmatpush1.bf16.msra.mxu1 %v5188_v26  ;;  %v5748_v26 = vcombine.low %v287_v63, %v291_v0  ;;  %v318_v63 = vld [vmem:[%s7060_s1 + $0x2c0] sm:$0xff] }
  0x59   : > { %2053 = vmatprep.subr.bf16.mxu1 %v7065_v5  ;;  %4638 = vmatpush3.bf16.msra.mxu0 %v5198_v40  ;;  %v5775_v40 = vcombine.low %v295_v17, %v299_v18  ;;  %v322_v0 = vld [vmem:[%s7060_s1 + $0x2e0] sm:$0xff] }
  0x5a   : > { %4639 = vmatprep.subr.bf16.mxu0 %v5201_v51  ;;  %v315_v51 = vld [vmem:[%s7060_s1 + $0x2a8] sm:$0xff]  ;;  %v5825_v16 = vcombine.high %v318_v63, %v322_v0  ;;  %v326_v18 = vld [vmem:[%s7060_s1 + $0x300] sm:$0xff] }
  0x5b   : > { %v5803_v62 = vcombine.high %v311_v48, %v315_v51  ;;  %v5823_v15 = vcombine.low %v311_v48, %v315_v51  ;;  %v339_v48 = vld [vmem:[%s7060_s1 + $0x368] sm:$0xff] }
  0x5c   : > { %2054 = vmatpush1.bf16.msra.mxu1 %v5191_v32  ;;  %v306_v32 = vld [vmem:[%s7060_s1 + $0x260] sm:$0xff]  ;;  %7159 = vst [vmem:[#allocation11_spill] sm:$0xff] %v5825_v16 }
  0x5d   : > { %2055 = vmatprep.subr.bf16.mxu1 %v7065_v5  ;;  %4640 = vmatpush3.bf16.msra.mxu0 %v5202_v54  ;;  %v5777_v41 = vcombine.high %v302_v31, %v306_v32  ;;  %v5797_v54 = vcombine.low %v302_v31, %v306_v32  ;;  %7156 = vst [vmem:[#allocation8_spill] sm:$0xff] %v5803_v62  ;;  %7158 = vst [vmem:[#allocation10_spill] sm:$0xff] %v5823_v15 }
  0x5e   : > { %1621 = vmatmul.mubr.bf16.gmra.mrb[16].mxu0 %v5656_v34  ;;  %4737 = vmatprep.subr.bf16.mxu0 %v5205_v2  ;;  %v323_v2 = vld [vmem:[%s7060_s1 + $0x2e8] sm:$0xff] }
  0x5f   : > { %1782 = vmatmul.mubr.bf16.gmra.mrb[16].mxu1 %v5658_v35  ;;  %1628 = vmatprep.mubr.bf16.mxu0 %v5660_v36  ;;  %7153 = vst [vmem:[#allocation5_spill] sm:$0xff] %v5797_v54 }
  0x60   : > { %1789 = vmatprep.mubr.bf16.mxu1 %v5663_v38  ;;  %2056 = vmatpush1.bf16.msra.mxu1 %v5192_v37  ;;  %v307_v37 = vld [vmem:[%s7060_s1 + $0x268] sm:$0xff] }
  0x61   : > { %2057 = vmatprep.subr.bf16.mxu1 %v7065_v5  ;;  %v5779_v42 = vcombine.high %v303_v33, %v307_v37 }
  0x64   : > { %2058 = vmatpush1.bf16.msra.mxu1 %v5195_v45  ;;  %v310_v45 = vld [vmem:[%s7060_s1 + $0x280] sm:$0xff] }
  0x65   : > { %2059 = vmatprep.subr.bf16.mxu1 %v7065_v5  ;;  %v5801_v58 = vcombine.high %v310_v45, %v314_v46 }
  0x66   : > { %1629 = vmatmul.mubr.bf16.gmra.mrb[20].mxu0 %v5686_v50 }
  0x67   : > { %1790 = vmatmul.mubr.bf16.gmra.mrb[20].mxu1 %v5689_v52  ;;  %1636 = vmatprep.mubr.bf16.mxu0 %v5691_v53  ;;  %7155 = vst [vmem:[#allocation7_spill] sm:$0xff] %v5801_v58 }
  0x68   : > { %1797 = vmatprep.mubr.bf16.mxu1 %v5694_v55  ;;  %2060 = vmatpush1.bf16.msra.mxu1 %v5196_v56  ;;  %v5799_v56 = vcombine.low %v303_v33, %v307_v37  ;;  %v334_v37 = vld [vmem:[%s7060_s1 + $0x340] sm:$0xff] }
  0x69   : > { %2061 = vmatprep.subr.bf16.mxu1 %v7065_v5 }
  0x6a   : > { %7154 = vst [vmem:[#allocation6_spill] sm:$0xff] %v5799_v56 }
  0x6c   : > { %2062 = vmatpush1.bf16.msra.mxu1 %v5199_v1  ;;  %v319_v1 = vld [vmem:[%s7060_s1 + $0x2c8] sm:$0xff] }
  0x6d   : > { %2063 = vmatprep.subr.bf16.mxu1 %v7065_v5  ;;  %v5827_v17 = vcombine.high %v319_v1, %v323_v2  ;;  %v5847_v31 = vcombine.low %v319_v1, %v323_v2  ;;  %v342_v2 = vld [vmem:[%s7060_s1 + $0x380] sm:$0xff] }
  0x6e   : > { %1637 = vmatmul.mubr.bf16.gmra.mrb[24].mxu0 %v5717_v4 }
  0x6f   : > { %1798 = vmatmul.mubr.bf16.gmra.mrb[24].mxu1 %v5719_v7  ;;  %1644 = vmatprep.mubr.bf16.mxu0 %v5721_v8  ;;  %7160 = vst [vmem:[#allocation12_spill] sm:$0xff] %v5827_v17  ;;  %7162 = vst [vmem:[#allocation14_spill] sm:$0xff] %v5847_v31 }
  0x70   : > { %1805 = vmatprep.mubr.bf16.mxu1 %v5723_v9  ;;  %2064 = vmatpush1.bf16.msra.mxu1 %v5200_v14  ;;  %v5821_v14 = vcombine.low %v310_v45, %v314_v46  ;;  %v338_v45 = vld [vmem:[%s7060_s1 + $0x360] sm:$0xff]  ;;  %v335_v46 = vld [vmem:[%s7060_s1 + $0x348] sm:$0xff] }
  0x71   : > { %2065 = vmatprep.subr.bf16.mxu1 %v7065_v5  ;;  %v5875_v1 = vcombine.high %v335_v46, %v339_v48 }
  0x72   : > { %7157 = vst [vmem:[#allocation9_spill] sm:$0xff] %v5821_v14 }
  0x73   : > { %7168 = vst [vmem:[#allocation20_spill] sm:$0xff] %v5875_v1 }
  0x74   : > { %2066 = vmatpush1.bf16.msra.mxu1 %v5203_v19  ;;  %v330_v19 = vld [vmem:[%s7060_s1 + $0x320] sm:$0xff] }
  0x75   : > { %2067 = vmatprep.subr.bf16.mxu1 %v7065_v5  ;;  %v5849_v32 = vcombine.high %v326_v18, %v330_v19  ;;  %v5869_v51 = vcombine.low %v326_v18, %v330_v19  ;;  %v346_v5 = vld [vmem:[%s7060_s1 + $0x3a0] sm:$0xff]  ;;  %v343_v18 = vld [vmem:[%s7060_s1 + $0x388] sm:$0xff] }
  0x76   : > { %1645 = vmatmul.mubr.bf16.gmra.mrb[28].mxu0 %v5746_v21  ;;  %v347_v19 = vld [vmem:[%s7060_s1 + $0x3a8] sm:$0xff] }
  0x77   : > { %1806 = vmatmul.mubr.bf16.gmra.mrb[28].mxu1 %v5748_v26  ;;  %1652 = vmatprep.mubr.bf16.mxu0 %v5750_v27  ;;  %7163 = vst [vmem:[#allocation15_spill] sm:$0xff] %v5849_v32  ;;  %7165 = vst [vmem:[#allocation17_spill] sm:$0xff] %v5869_v51 }
  0x78   : > { %1813 = vmatprep.mubr.bf16.mxu1 %v5752_v28  ;;  %2068 = vmatpush1.bf16.msra.mxu1 %v1554_v29  ;;  %v331_v29 = vld [vmem:[%s7060_s1 + $0x328] sm:$0xff] }
  0x79   : > { %4849 = vmatprep.subr.bf16.mxu1 %v5207_v30  ;;  %v5845_v30 = vcombine.low %v318_v63, %v322_v0  ;;  %v5851_v33 = vcombine.high %v327_v20, %v331_v29  ;;  %v5871_v63 = vcombine.low %v327_v20, %v331_v29  ;;  %v5873_v0 = vcombine.high %v334_v37, %v338_v45 }
  0x7a   : > { %v5893_v20 = vcombine.low %v334_v37, %v338_v45  ;;  %v5895_v29 = vcombine.low %v335_v46, %v339_v48  ;;  %v351_v37 = vld [vmem:[%s7060_s1 + $0x3c8] sm:$0xff]  ;;  %v5917_v46 = vcombine.low %v342_v2, %v346_v5  ;;  %v5919_v48 = vcombine.low %v343_v18, %v347_v19 }
  0x7b   : > { %7161 = vst [vmem:[#allocation13_spill] sm:$0xff] %v5845_v30  ;;  %7164 = vst [vmem:[#allocation16_spill] sm:$0xff] %v5851_v33  ;;  %v355_v45 = vld [vmem:[%s7060_s1 + $0x3e8] sm:$0xff] }
  0x7c   : > { %7166 = vst [vmem:[#allocation18_spill] sm:$0xff] %v5871_v63  ;;  %7167 = vst [vmem:[#allocation19_spill] sm:$0xff] %v5873_v0 }
  0x7d   : > { %7169 = vst [vmem:[#allocation21_spill] sm:$0xff] %v5893_v20  ;;  %7170 = vst [vmem:[#allocation22_spill] sm:$0xff] %v5895_v29 }
  0x7e   : > { %1653 = vmatmul.mubr.bf16.gmra.mrb[32].mxu0 %v5773_v39  ;;  %7173 = vst [vmem:[#allocation25_spill] sm:$0xff] %v5917_v46  ;;  %7174 = vst [vmem:[#allocation26_spill] sm:$0xff] %v5919_v48 }
  0x7f   : > { %1814 = vmatmul.mubr.bf16.gmra.mrb[32].mxu1 %v5775_v40  ;;  %1660 = vmatprep.mubr.bf16.mxu0 %v5777_v41 }
  0x80   : > { %1821 = vmatprep.mubr.bf16.mxu1 %v5779_v42 }
  0x86   : > { %1661 = vmatmul.mubr.bf16.gmra.mrb[36].mxu0 %v5797_v54 }
  0x87   : > { %1822 = vmatmul.mubr.bf16.gmra.mrb[36].mxu1 %v5799_v56  ;;  %1668 = vmatprep.mubr.bf16.mxu0 %v5801_v58 }
  0x88   : > { %1829 = vmatprep.mubr.bf16.mxu1 %v5803_v62 }
  0x8e   : > { %1669 = vmatmul.mubr.bf16.gmra.mrb[40].mxu0 %v5821_v14 }
  0x8f   : > { %1830 = vmatmul.mubr.bf16.gmra.mrb[40].mxu1 %v5823_v15  ;;  %1676 = vmatprep.mubr.bf16.mxu0 %v5825_v16  ;;  %v5216_v16 = vld [vmem:[%s5482_s17 + $0x284] sm:$0xff]  }
  0x90   : > { %1837 = vmatprep.mubr.bf16.mxu1 %v5827_v17  ;;  %v5214_v17 = vld [vmem:[%s5482_s17 + $0x204] sm:$0xff]  }
  0x96   : > { %1677 = vmatmul.mubr.bf16.gmra.mrb[44].mxu0 %v5845_v30 }
  0x97   : > { %1838 = vmatmul.mubr.bf16.gmra.mrb[44].mxu1 %v5847_v31  ;;  %1684 = vmatprep.mubr.bf16.mxu0 %v5849_v32  ;;  %v5212_v32 = vld [vmem:[%s5482_s17 + $0x27c] sm:$0xff]   ;;  %v5213_v31 = vld [vmem:[%s5482_s17 + $0x244] sm:$0xff]  }
  0x98   : > { %1845 = vmatprep.mubr.bf16.mxu1 %v5851_v33  ;;  %v5899_v33 = vcombine.high %v343_v18, %v347_v19  ;;  %v5943_v19 = vcombine.low %v351_v37, %v355_v45 }
  0x9a   : > { %7172 = vst [vmem:[#allocation24_spill] sm:$0xff] %v5899_v33  ;;  %7178 = vst [vmem:[#allocation30_spill] sm:$0xff] %v5943_v19 }
  0x9e   : > { %1685 = vmatmul.mubr.bf16.gmra.mrb[48].mxu0 %v5869_v51  ;;  %v5897_v51 = vcombine.high %v342_v2, %v346_v5  ;;  %v233_v5 = vld [vmem:[%s7060_s1 + $0x18] sm:$0xff] }
  0x9f   : > { %1846 = vmatmul.mubr.bf16.gmra.mrb[48].mxu1 %v5871_v63  ;;  %1692 = vmatprep.mubr.bf16.mxu0 %v5873_v0  ;;  %v350_v0 = vld [vmem:[%s7060_s1 + $0x3c0] sm:$0xff]  ;;  %v237_v2 = vld [vmem:[%s7060_s1 + $0x38] sm:$0xff] }
  0xa0   : > { %1853 = vmatprep.mubr.bf16.mxu1 %v5875_v1  ;;  %7171 = vst [vmem:[#allocation23_spill] sm:$0xff] %v5897_v51  ;;  %v354_v63 = vld [vmem:[%s7060_s1 + $0x3e0] sm:$0xff]  ;;  %v5923_v1 = vcombine.high %v351_v37, %v355_v45  ;;  %v241_v45 = vld [vmem:[%s7060_s1 + $0x58] sm:$0xff] }
  0xa1   : > { %v5941_v18 = vcombine.low %v350_v0, %v354_v63 }
  0xa2   : > { %7176 = vst [vmem:[#allocation28_spill] sm:$0xff] %v5923_v1 }
  0xa3   : > { %7177 = vst [vmem:[#allocation29_spill] sm:$0xff] %v5941_v18 }
  0xa6   : > { %1693 = vmatmul.mubr.bf16.gmra.mrb[52].mxu0 %v5893_v20  ;;  %v5921_v20 = vcombine.high %v350_v0, %v354_v63  ;;  %v240_v63 = vld [vmem:[%s7060_s1 + $0x50] sm:$0xff] }
  0xa7   : > { %1854 = vmatmul.mubr.bf16.gmra.mrb[52].mxu1 %v5895_v29  ;;  %1700 = vmatprep.mubr.bf16.mxu0 %v5897_v51  ;;  %v232_v51 = vld [vmem:[%s7060_s1 + $0x10] sm:$0xff] }
  0xa8   : > { %1861 = vmatprep.mubr.bf16.mxu1 %v5899_v33  ;;  %7175 = vst [vmem:[#allocation27_spill] sm:$0xff] %v5921_v20  ;;  %v236_v33 = vld [vmem:[%s7060_s1 + $0x30] sm:$0xff] }
  0xa9   : > { %v244_v0 = vld [vmem:[%s7060_s1 + $0x70] sm:$0xff]  ;;  %v5960_v37 = vcombine.low %v232_v51, %v236_v33 }
  0xaa   : > { %v252_v29 = vld [vmem:[%s7060_s1 + $0xb0] sm:$0xff] }
  0xab   : > { %7181 = vst [vmem:[#allocation33_spill] sm:$0xff] %v5960_v37 }
  0xae   : > { %1701 = vmatmul.mubr.bf16.gmra.mrb[56].mxu0 %v5917_v46  ;;  %v5945_v46 = vcombine.high %v232_v51, %v236_v33  ;;  %v5209_v33 = vld [vmem:[%s5482_s17 + $0x23c] sm:$0xff]  }
  0xaf   : > { %1862 = vmatmul.mubr.bf16.gmra.mrb[56].mxu1 %v5919_v48  ;;  %1708 = vmatprep.mubr.bf16.mxu0 %v5921_v20  ;;  %v5947_v48 = vcombine.high %v233_v5, %v237_v2  ;;  %v5211_v51 = vld [vmem:[%s5482_s17 + $0x2bc] sm:$0xff]  }
  0xb0   : > { %1869 = vmatprep.mubr.bf16.mxu1 %v5923_v1  ;;  %7179 = vst [vmem:[#allocation31_spill] sm:$0xff] %v5945_v46  ;;  %v5972_v1 = vcombine.high %v240_v63, %v244_v0 }
  0xb1   : > { %7180 = vst [vmem:[#allocation32_spill] sm:$0xff] %v5947_v48 }
  0xb2   : > { %7183 = vst [vmem:[#allocation35_spill] sm:$0xff] %v5972_v1 }
  0xb6   : > { %1709 = vmatmul.mubr.bf16.gmra.mrb[60].mxu0 %v5941_v18  ;;  %v5208_v18 = vld [vmem:[%s5482_s17 + $0x274] sm:$0xff]  }
  0xb7   : > { %1870 = vmatmul.mubr.bf16.gmra.mrb[60].mxu1 %v5943_v19  ;;  %1910 = vmatprep.mubr.bf16.mxu0 %v5945_v46  ;;  %v245_v46 = vld [vmem:[%s7060_s1 + $0x78] sm:$0xff] }
  0xb8   : > { %4145 = vmatprep.mubr.msk.bf16.mxu1 %vm1503_vm1, %v5947_v48  ;;  %v5968_v48 = vcombine.low %v233_v5, %v237_v2  ;;  %v5206_v19 = vld [vmem:[%s5482_s17 + $0x1f4] sm:$0xff]   ;;  %v5974_v20 = vcombine.high %v241_v45, %v245_v46  ;;  %v5210_v2 = vld [vmem:[%s5482_s17 + $0x1fc] sm:$0xff]  }
  0xb9   : > { %v248_v5 = vld [vmem:[%s7060_s1 + $0x90] sm:$0xff] }
  0xba   : > { %7182 = vst [vmem:[#allocation34_spill] sm:$0xff] %v5968_v48  ;;  %7184 = vst [vmem:[#allocation36_spill] sm:$0xff] %v5974_v20  ;;  %v6003_v30 = vcombine.high %v248_v5, %v252_v29 }
  0xbc   : > { %7187 = vst [vmem:[#allocation39_spill] sm:$0xff] %v6003_v30 }
  0xbe   : > { %1911 = vmatmul.mubr.bf16.vlgmr.msra.gmra.mrb[64].mxu0 %v5960_v37  ;;  %v6001_v37 = vcombine.low %v241_v45, %v245_v46  ;;  %v256_v46 = vld [vmem:[%s7060_s1 + $0xd0] sm:$0xff] }
  0xbf   : > { %2072 = vmatmul.mubr.bf16.vlgmr.msra.gmra.mrb[64].mxu1 %v5968_v48  ;;  %4738 = vmatpush3.bf16.msra.mxu0 %v5206_v19  ;;  %v249_v19 = vld [vmem:[%s7060_s1 + $0x98] sm:$0xff]  ;;  %v5999_v48 = vcombine.low %v240_v63, %v244_v0  ;;  %v5219_v63 = vld [vmem:[%s5482_s17 + $0x2cc] sm:$0xff]  }
  0xc0   : > { %4850 = vmatpush3.bf16.msra.mxu1 %v5208_v18  ;;  %1918 = vmatprep.mubr.bf16.mxu0 %v5972_v1  ;;  %v253_v18 = vld [vmem:[%s7060_s1 + $0xb8] sm:$0xff]  ;;  %v5215_v1 = vld [vmem:[%s5482_s17 + $0x2c4] sm:$0xff]   ;;  %7186 = vst [vmem:[#allocation38_spill] sm:$0xff] %v6001_v37  ;;  %v5220_v45 = vld [vmem:[%s5482_s17 + $0x28c] sm:$0xff]  }
  0xc1   : > { %4146 = vmatprep.mubr.msk.bf16.mxu1 %vm1503_vm1, %v5974_v20  ;;  %4739 = vmatprep.subr.bf16.mxu0 %v5209_v33  ;;  %7185 = vst [vmem:[#allocation37_spill] sm:$0xff] %v5999_v48  ;;  %v6005_v20 = vcombine.high %v249_v19, %v253_v18  ;;  %v5217_v33 = vld [vmem:[%s5482_s17 + $0x24c] sm:$0xff]   ;;  %v261_v0 = vld [vmem:[%s7060_s1 + $0xf8] sm:$0xff] }
  0xc2   : > { %4851 = vmatprep.subr.bf16.mxu1 %v5211_v51  ;;  %v5221_v51 = vld [vmem:[%s5482_s17 + $0x254] sm:$0xff]  }
  0xc3   : > { %4740 = vmatpush3.bf16.msra.mxu0 %v5210_v2  ;;  %7188 = vst [vmem:[#allocation40_spill] sm:$0xff] %v6005_v20  ;;  %v6031_v2 = vcombine.low %v248_v5, %v252_v29  ;;  %v5227_v29 = vld [vmem:[%s5482_s17 + $0x2dc] sm:$0xff]   ;;  %v264_v5 = vld [vmem:[%s7060_s1 + $0x110] sm:$0xff] }
  0xc4   : > { %4852 = vmatpush3.bf16.msra.mxu1 %v5212_v32  ;;  %4741 = vmatprep.subr.bf16.mxu0 %v5213_v31  ;;  %v260_v31 = vld [vmem:[%s7060_s1 + $0xf0] sm:$0xff]  ;;  %v257_v32 = vld [vmem:[%s7060_s1 + $0xd8] sm:$0xff] }
  0xc5   : > { %4853 = vmatprep.subr.bf16.mxu1 %v5215_v1  ;;  %v5218_v1 = vld [vmem:[%s5482_s17 + $0x20c] sm:$0xff]   ;;  %7189 = vst [vmem:[#allocation41_spill] sm:$0xff] %v6031_v2 }
  0xc6   : > { %1919 = vmatmul.mubr.bf16.gmra.mrb[68].mxu0 %v5999_v48  ;;  %v5222_v48 = vld [vmem:[%s5482_s17 + $0x214] sm:$0xff]  }
  0xc7   : > { %2080 = vmatmul.mubr.bf16.gmra.mrb[68].mxu1 %v6001_v37  ;;  %1926 = vmatprep.mubr.bf16.mxu0 %v6003_v30  ;;  %v6034_v30 = vcombine.low %v249_v19, %v253_v18  ;;  %v6036_v37 = vcombine.high %v256_v46, %v260_v31  ;;  %v268_v19 = vld [vmem:[%s7060_s1 + $0x130] sm:$0xff]  ;;  %v5226_v18 = vld [vmem:[%s5482_s17 + $0x21c] sm:$0xff]  }
  0xc8   : > { %4147 = vmatprep.mubr.msk.bf16.mxu1 %vm1503_vm1, %v6005_v20  ;;  %4742 = vmatpush3.bf16.msra.mxu0 %v5214_v17  ;;  %v5223_v20 = vld [vmem:[%s5482_s17 + $0x2d4] sm:$0xff]   ;;  %v6038_v17 = vcombine.high %v257_v32, %v261_v0 }
  0xc9   : > { %4854 = vmatpush3.bf16.msra.mxu1 %v5216_v16  ;;  %4743 = vmatprep.subr.bf16.mxu0 %v5217_v33  ;;  %7190 = vst [vmem:[#allocation42_spill] sm:$0xff] %v6034_v30  ;;  %7191 = vst [vmem:[#allocation43_spill] sm:$0xff] %v6036_v37  ;;  %v5224_v16 = vld [vmem:[%s5482_s17 + $0x294] sm:$0xff]   ;;  %v5225_v33 = vld [vmem:[%s5482_s17 + $0x25c] sm:$0xff]  }
  0xca   : > { %4855 = vmatprep.subr.bf16.mxu1 %v5219_v63  ;;  %7192 = vst [vmem:[#allocation44_spill] sm:$0xff] %v6038_v17  ;;  %v269_v63 = vld [vmem:[%s7060_s1 + $0x138] sm:$0xff] }
  0xcc   : > { %4744 = vmatpush3.bf16.msra.mxu0 %v5218_v1  ;;  %v5228_v1 = vld [vmem:[%s5482_s17 + $0x29c] sm:$0xff]  }
  0xcd   : > { %4856 = vmatpush3.bf16.msra.mxu1 %v5220_v45  ;;  %4745 = vmatprep.subr.bf16.mxu0 %v5221_v51  ;;  %v5229_v45 = vld [vmem:[%s5482_s17 + $0x264] sm:$0xff]   ;;  %v6064_v51 = vcombine.low %v256_v46, %v260_v31  ;;  %v5235_v46 = vld [vmem:[%s5482_s17 + $0x2ec] sm:$0xff]  }
  0xce   : > { %1927 = vmatmul.mubr.bf16.gmra.mrb[72].mxu0 %v6031_v2  ;;  %4857 = vmatprep.subr.bf16.mxu1 %v5223_v20  ;;  %v265_v20 = vld [vmem:[%s7060_s1 + $0x118] sm:$0xff]  ;;  %v5230_v2 = vld [vmem:[%s5482_s17 + $0x224] sm:$0xff]   ;;  %v272_v31 = vld [vmem:[%s7060_s1 + $0x150] sm:$0xff] }
  0xcf   : > { %2088 = vmatmul.mubr.bf16.gmra.mrb[72].mxu1 %v6034_v30  ;;  %1934 = vmatprep.mubr.bf16.mxu0 %v6036_v37  ;;  %7193 = vst [vmem:[#allocation45_spill] sm:$0xff] %v6064_v51  ;;  %v6067_v37 = vcombine.low %v257_v32, %v261_v0  ;;  %v6069_v30 = vcombine.high %v264_v5, %v268_v19  ;;  %v276_v32 = vld [vmem:[%s7060_s1 + $0x170] sm:$0xff]  ;;  %v273_v0 = vld [vmem:[%s7060_s1 + $0x158] sm:$0xff] }
  0xd0   : > { %4148 = vmatprep.mubr.msk.bf16.mxu1 %vm1503_vm1, %v6038_v17  ;;  %4746 = vmatpush3.bf16.msra.mxu0 %v5222_v48  ;;  %v5231_v17 = vld [vmem:[%s5482_s17 + $0x2e4] sm:$0xff]   ;;  %v6071_v48 = vcombine.high %v265_v20, %v269_v63 }
  0xd1   : > { %4858 = vmatpush3.bf16.msra.mxu1 %v5224_v16  ;;  %4747 = vmatprep.subr.bf16.mxu0 %v5225_v33  ;;  %7194 = vst [vmem:[#allocation46_spill] sm:$0xff] %v6067_v37  ;;  %7195 = vst [vmem:[#allocation47_spill] sm:$0xff] %v6069_v30  ;;  %v5232_v16 = vld [vmem:[%s5482_s17 + $0x2a4] sm:$0xff]   ;;  %v5233_v33 = vld [vmem:[%s5482_s17 + $0x26c] sm:$0xff]  }
  0xd2   : > { %4859 = vmatprep.subr.bf16.mxu1 %v5227_v29  ;;  %7196 = vst [vmem:[#allocation48_spill] sm:$0xff] %v6071_v48  ;;  %v277_v29 = vld [vmem:[%s7060_s1 + $0x178] sm:$0xff] }
  0xd4   : > { %4748 = vmatpush3.bf16.msra.mxu0 %v5226_v18  ;;  %v5236_v18 = vld [vmem:[%s5482_s17 + $0x2ac] sm:$0xff]  }
  0xd5   : > { %4860 = vmatpush3.bf16.msra.mxu1 %v5228_v1  ;;  %4749 = vmatprep.subr.bf16.mxu0 %v5229_v45  ;;  %v5237_v1 = vld [vmem:[%s5482_s17 + $0x334] sm:$0xff]   ;;  %v6097_v45 = vcombine.low %v264_v5, %v268_v19 }
  0xd6   : > { %1935 = vmatmul.mubr.bf16.gmra.mrb[76].mxu0 %v6064_v51  ;;  %4861 = vmatprep.subr.bf16.mxu1 %v5231_v17  ;;  %v5234_v17 = vld [vmem:[%s5482_s17 + $0x22c] sm:$0xff]  }
  0xd7   : > { %2096 = vmatmul.mubr.bf16.gmra.mrb[76].mxu1 %v6067_v37  ;;  %1942 = vmatprep.mubr.bf16.mxu0 %v6069_v30  ;;  %7197 = vst [vmem:[#allocation49_spill] sm:$0xff] %v6097_v45  ;;  %v6101_v30 = vcombine.high %v272_v31, %v276_v32  ;;  %v6103_v37 = vcombine.high %v273_v0, %v277_v29  ;;  %v280_v5 = vld [vmem:[%s7060_s1 + $0x190] sm:$0xff] }
  0xd8   : > { %4149 = vmatprep.mubr.msk.bf16.mxu1 %vm1503_vm1, %v6071_v48  ;;  %4750 = vmatpush3.bf16.msra.mxu0 %v5230_v2  ;;  %v6099_v48 = vcombine.low %v265_v20, %v269_v63  ;;  %v7201_v2 = vmov 0   ;;  %v284_v19 = vld [vmem:[%s7060_s1 + $0x1b0] sm:$0xff]  ;;  %v281_v20 = vld [vmem:[%s7060_s1 + $0x198] sm:$0xff] }
  0xd9   : > { %4862 = vmatpush3.bf16.msra.mxu1 %v5232_v16  ;;  %4751 = vmatprep.subr.bf16.mxu0 %v5233_v33  ;;  %7199 = vst [vmem:[#allocation51_spill] sm:$0xff] %v6101_v30  ;;  %7200 = vst [vmem:[#allocation52_spill] sm:$0xff] %v6103_v37  ;;  %v285_v63 = vld [vmem:[%s7060_s1 + $0x1b8] sm:$0xff]  ;;  %v6123_v16 = vcombine.low %v272_v31, %v276_v32  ;;  %v6125_v33 = vcombine.low %v273_v0, %v277_v29  ;;  %v288_v31 = vld [vmem:[%s7060_s1 + $0x1d0] sm:$0xff] }
  0xda   : > { %4863 = vmatprep.subr.bf16.mxu1 %v5235_v46  ;;  %7198 = vst [vmem:[#allocation50_spill] sm:$0xff] %v6099_v48  ;;  %v6127_v46 = vcombine.high %v280_v5, %v284_v19  ;;  %v292_v32 = vld [vmem:[%s7060_s1 + $0x1f0] sm:$0xff]  ;;  %v289_v0 = vld [vmem:[%s7060_s1 + $0x1d8] sm:$0xff] }
  0xdb   : > { %7202 = vst [vmem:[#allocation53_spill] sm:$0xff] %v6123_v16  ;;  %7203 = vst [vmem:[#allocation54_spill] sm:$0xff] %v6125_v33  ;;  %v293_v29 = vld [vmem:[%s7060_s1 + $0x1f8] sm:$0xff] }
  0xdc   : > { %4752 = vmatpush3.bf16.msra.mxu0 %v5234_v17  ;;  %7204 = vst [vmem:[#allocation55_spill] sm:$0xff] %v6127_v46  ;;  %v6129_v17 = vcombine.high %v281_v20, %v285_v63 }
  0xdd   : > { %4864 = vmatpush3.bf16.msra.mxu1 %v5236_v18  ;;  %4961 = vmatprep.subr.bf16.mxu0 %v5237_v1  ;;  %v6148_v18 = vcombine.low %v280_v5, %v284_v19  ;;  %v6150_v1 = vcombine.low %v281_v20, %v285_v63  ;;  %v296_v5 = vld [vmem:[%s7060_s1 + $0x210] sm:$0xff]  ;;  %v297_v20 = vld [vmem:[%s7060_s1 + $0x218] sm:$0xff] }
  0xde   : > { %1943 = vmatmul.mubr.bf16.gmra.mrb[80].mxu0 %v6097_v45  ;;  %3357 = vmatprep.subr.bf16.mxu1 %v7201_v2  ;;  %7205 = vst [vmem:[#allocation56_spill] sm:$0xff] %v6129_v17  ;;  %v300_v19 = vld [vmem:[%s7060_s1 + $0x230] sm:$0xff]  ;;  %v301_v63 = vld [vmem:[%s7060_s1 + $0x238] sm:$0xff]  ;;  %v358_v45 = vld [vmem:[%s7061_s2] sm:$0xff] }
  0xdf   : > { %2104 = vmatmul.mubr.bf16.gmra.mrb[80].mxu1 %v6099_v48  ;;  %1950 = vmatprep.mubr.bf16.mxu0 %v6101_v30  ;;  %7206 = vst [vmem:[#allocation57_spill] sm:$0xff] %v6148_v18  ;;  %7207 = vst [vmem:[#allocation58_spill] sm:$0xff] %v6150_v1 }
  0xe0   : > { %4150 = vmatprep.mubr.msk.bf16.mxu1 %vm1503_vm1, %v6103_v37  ;;  %2342 = vperm.xlu0 %5140, %v358_v45   ;;  %v337_v45 = vld [vmem:[%s7060_s1 + $0x358] sm:$0xff] }
  0xe6   : > { %1951 = vmatmul.mubr.bf16.gmra.mrb[84].mxu0 %v6123_v16 }
  0xe7   : > { %2112 = vmatmul.mubr.bf16.gmra.mrb[84].mxu1 %v6125_v33  ;;  %1958 = vmatprep.mubr.bf16.mxu0 %v6127_v46  ;;  %v6154_v46 = vcombine.high %v289_v0, %v293_v29 }
  0xe8   : > { %4151 = vmatprep.mubr.msk.bf16.mxu1 %vm1503_vm1, %v6129_v17  ;;  %v6152_v17 = vcombine.high %v288_v31, %v292_v32 }
  0xe9   : > { %7209 = vst [vmem:[#allocation60_spill] sm:$0xff] %v6154_v46 }
  0xea   : > { %7208 = vst [vmem:[#allocation59_spill] sm:$0xff] %v6152_v17 }
  0xee   : > { %1959 = vmatmul.mubr.bf16.gmra.mrb[88].mxu0 %v6148_v18  ;;  %v6179_v18 = vcombine.high %v297_v20, %v301_v63 }
  0xef   : > { %2120 = vmatmul.mubr.bf16.gmra.mrb[88].mxu1 %v6150_v1  ;;  %1966 = vmatprep.mubr.bf16.mxu0 %v6152_v17  ;;  %v6173_v17 = vcombine.low %v288_v31, %v292_v32  ;;  %v6175_v1 = vcombine.low %v289_v0, %v293_v29  ;;  %v304_v31 = vld [vmem:[%s7060_s1 + $0x250] sm:$0xff]  ;;  %v305_v0 = vld [vmem:[%s7060_s1 + $0x258] sm:$0xff] }
  0xf0   : > { %4152 = vmatprep.mubr.msk.bf16.mxu1 %vm1503_vm1, %v6154_v46  ;;  %v6177_v46 = vcombine.high %v296_v5, %v300_v19  ;;  %7213 = vst [vmem:[#allocation64_spill] sm:$0xff] %v6179_v18  ;;  %v308_v32 = vld [vmem:[%s7060_s1 + $0x270] sm:$0xff]  ;;  %v309_v29 = vld [vmem:[%s7060_s1 + $0x278] sm:$0xff] }
  0xf1   : > { %7210 = vst [vmem:[#allocation61_spill] sm:$0xff] %v6173_v17  ;;  %7211 = vst [vmem:[#allocation62_spill] sm:$0xff] %v6175_v1 }
  0xf2   : > { %7212 = vst [vmem:[#allocation63_spill] sm:$0xff] %v6177_v46 }
  0xf6   : > { %1967 = vmatmul.mubr.bf16.gmra.mrb[92].mxu0 %v6173_v17  ;;  %v6204_v17 = vcombine.high %v305_v0, %v309_v29 }
  0xf7   : > { %2128 = vmatmul.mubr.bf16.gmra.mrb[92].mxu1 %v6175_v1  ;;  %1974 = vmatprep.mubr.bf16.mxu0 %v6177_v46  ;;  %v6198_v46 = vcombine.low %v296_v5, %v300_v19  ;;  %v6200_v1 = vcombine.low %v297_v20, %v301_v63  ;;  %v312_v5 = vld [vmem:[%s7060_s1 + $0x290] sm:$0xff]  ;;  %v313_v20 = vld [vmem:[%s7060_s1 + $0x298] sm:$0xff] }
  0xf8   : > { %4153 = vmatprep.mubr.msk.bf16.mxu1 %vm1503_vm1, %v6179_v18  ;;  %v6202_v18 = vcombine.high %v304_v31, %v308_v32  ;;  %7217 = vst [vmem:[#allocation68_spill] sm:$0xff] %v6204_v17  ;;  %v316_v19 = vld [vmem:[%s7060_s1 + $0x2b0] sm:$0xff]  ;;  %v317_v63 = vld [vmem:[%s7060_s1 + $0x2b8] sm:$0xff] }
  0xf9   : > { %7214 = vst [vmem:[#allocation65_spill] sm:$0xff] %v6198_v46  ;;  %7215 = vst [vmem:[#allocation66_spill] sm:$0xff] %v6200_v1 }
  0xfa   : > { %7216 = vst [vmem:[#allocation67_spill] sm:$0xff] %v6202_v18 }
  0xfe   : > { %1975 = vmatmul.mubr.bf16.gmra.mrb[96].mxu0 %v6198_v46  ;;  %v6229_v46 = vcombine.high %v313_v20, %v317_v63 }
  0xff   : > { %2136 = vmatmul.mubr.bf16.gmra.mrb[96].mxu1 %v6200_v1  ;;  %1982 = vmatprep.mubr.bf16.mxu0 %v6202_v18  ;;  %v6223_v18 = vcombine.low %v304_v31, %v308_v32  ;;  %v6225_v1 = vcombine.low %v305_v0, %v309_v29  ;;  %v320_v31 = vld [vmem:[%s7060_s1 + $0x2d0] sm:$0xff]  ;;  %v321_v0 = vld [vmem:[%s7060_s1 + $0x2d8] sm:$0xff] }
 0x100   : > { %4154 = vmatprep.mubr.msk.bf16.mxu1 %vm1503_vm1, %v6204_v17  ;;  %v6227_v17 = vcombine.high %v312_v5, %v316_v19  ;;  %7221 = vst [vmem:[#allocation72_spill] sm:$0xff] %v6229_v46  ;;  %v324_v32 = vld [vmem:[%s7060_s1 + $0x2f0] sm:$0xff]  ;;  %v325_v29 = vld [vmem:[%s7060_s1 + $0x2f8] sm:$0xff] }
 0x101   : > { %7218 = vst [vmem:[#allocation69_spill] sm:$0xff] %v6223_v18  ;;  %7219 = vst [vmem:[#allocation70_spill] sm:$0xff] %v6225_v1  ;;  %v6275_v30 = vcombine.low %v321_v0, %v325_v29 }
 0x102   : > { %7220 = vst [vmem:[#allocation71_spill] sm:$0xff] %v6227_v17 }
 0x103   : > { %7227 = vst [vmem:[#allocation78_spill] sm:$0xff] %v6275_v30 }
 0x106   : > { %1983 = vmatmul.mubr.bf16.gmra.mrb[100].mxu0 %v6223_v18  ;;  %v6254_v18 = vcombine.high %v321_v0, %v325_v29 }
 0x107   : > { %2144 = vmatmul.mubr.bf16.gmra.mrb[100].mxu1 %v6225_v1  ;;  %1990 = vmatprep.mubr.bf16.mxu0 %v6227_v17  ;;  %v6248_v17 = vcombine.low %v312_v5, %v316_v19  ;;  %v6250_v1 = vcombine.low %v313_v20, %v317_v63  ;;  %v328_v5 = vld [vmem:[%s7060_s1 + $0x310] sm:$0xff]  ;;  %v329_v63 = vld [vmem:[%s7060_s1 + $0x318] sm:$0xff] }
 0x108   : > { %4155 = vmatprep.mubr.msk.bf16.mxu1 %vm1503_vm1, %v6229_v46  ;;  %v6252_v46 = vcombine.high %v320_v31, %v324_v32  ;;  %7225 = vst [vmem:[#allocation76_spill] sm:$0xff] %v6254_v18  ;;  %v332_v19 = vld [vmem:[%s7060_s1 + $0x330] sm:$0xff] }
 0x109   : > { %7222 = vst [vmem:[#allocation73_spill] sm:$0xff] %v6248_v17  ;;  %7223 = vst [vmem:[#allocation74_spill] sm:$0xff] %v6250_v1  ;;  %v6277_v48 = vcombine.high %v328_v5, %v332_v19  ;;  %v6308_v29 = vcombine.low %v328_v5, %v332_v19 }
 0x10a   : > { %7224 = vst [vmem:[#allocation75_spill] sm:$0xff] %v6252_v46 }
 0x10b   : > { %7228 = vst [vmem:[#allocation79_spill] sm:$0xff] %v6277_v48  ;;  %7232 = vst [vmem:[#allocation83_spill] sm:$0xff] %v6308_v29 }
 0x10e   : > { %1991 = vmatmul.mubr.bf16.gmra.mrb[104].mxu0 %v6248_v17 }
 0x10f   : > { %2152 = vmatmul.mubr.bf16.gmra.mrb[104].mxu1 %v6250_v1  ;;  %1998 = vmatprep.mubr.bf16.mxu0 %v6252_v46  ;;  %v333_v46 = vld [vmem:[%s7060_s1 + $0x338] sm:$0xff] }
 0x110   : > { %4156 = vmatprep.mubr.msk.bf16.mxu1 %vm1503_vm1, %v6254_v18  ;;  %v6273_v18 = vcombine.low %v320_v31, %v324_v32  ;;  %v6282_v62 = vcombine.high %v329_v63, %v333_v46 }
 0x111   : > { %v4417_v20 = vpop.f32.mrb[0].mxu0 }
 0x112   : > { %v4529_v1 = vpop.f32.mrb[0].mxu1  ;;  %v4418_v17 = vpop.f32.mrb[1].mxu0  ;;  %7226 = vst [vmem:[#allocation77_spill] sm:$0xff] %v6273_v18  ;;  %7229 = vst [vmem:[#allocation80_spill] sm:$0xff] %v6282_v62 }
 0x113   : > { %v4419_v33 = vadd.f32 %v4418_v17, %v4417_v20  ;;  %v4530_v16 = vpop.f32.mrb[1].mxu1  ;;  %v4420_v37 = vpop.f32.mrb[2].mxu0 }
 0x114   : > { %v4531_v51 = vadd.f32 %v4530_v16, %v4529_v1  ;;  %v4532_v15 = vpop.f32.mrb[2].mxu1  ;;  %v4421_v14 = vpop.f32.mrb[3].mxu0  ;;  %v336_v16 = vld [vmem:[%s7060_s1 + $0x350] sm:$0xff] }
 0x115   : > { %v4422_v58 = vadd.f32 %v4421_v14, %v4420_v37  ;;  %v4533_v31 = vpop.f32.mrb[3].mxu1  ;;  %v340_v14 = vld [vmem:[%s7060_s1 + $0x370] sm:$0xff]  ;;  %v361_v37 = vld [vmem:[%s7061_s2 + $0x18] sm:$0xff] }
 0x116   : > { %v4534_v32 = vadd.f32 %v4533_v31, %v4532_v15  ;;  %1999 = vmatmul.mubr.bf16.gmra.mrb[108].mxu0 %v6273_v18  ;;  %v6285_v17 = vadd.f32 %v4531_v51, %v4419_v33  ;;  %v341_v33 = vld [vmem:[%s7060_s1 + $0x378] sm:$0xff]  ;;  %2357 = vperm.xlu0 %5140, %v361_v37  }
 0x117   : > { %2160 = vmatmul.mubr.bf16.gmra.mrb[108].mxu1 %v6275_v30  ;;  %2006 = vmatprep.mubr.bf16.mxu0 %v6277_v48  ;;  %v359_v48 = vld [vmem:[%s7061_s2 + $0x8] sm:$0xff] }
 0x118   : > { %7230 = vst [vmem:[#allocation81_spill] sm:$0xff] %v6285_v17  ;;  %4157 = vmatprep.mubr.msk.bf16.mxu1 %vm1503_vm1, %v6282_v62  ;;  %v6297_v15 = vadd.f32 %v4534_v32, %v4422_v58  ;;  %v6310_v32 = vcombine.low %v329_v63, %v333_v46  ;;  %v6312_v62 = vcombine.high %v336_v16, %v340_v14  ;;  %v344_v46 = vld [vmem:[%s7060_s1 + $0x390] sm:$0xff] }
 0x119   : > { %v4423_v51 = vpop.f32.mrb[4].mxu0  ;;  %v6317_v17 = vcombine.high %v337_v45, %v341_v33  ;;  %2347 = vperm.xlu1 %5141, %v359_v48   ;;  %v348_v48 = vld [vmem:[%s7060_s1 + $0x3b0] sm:$0xff] }
 0x11a   : > { %7231 = vst [vmem:[#allocation82_spill] sm:$0xff] %v6297_v15  ;;  %v4535_v1 = vpop.f32.mrb[4].mxu1  ;;  %v4424_v0 = vpop.f32.mrb[5].mxu0  ;;  %7233 = vst [vmem:[#allocation84_spill] sm:$0xff] %v6310_v32 }
 0x11b   : > { %v4425_v58 = vadd.f32 %v4424_v0, %v4423_v51  ;;  %v4536_v20 = vpop.f32.mrb[5].mxu1  ;;  %v4426_v31 = vpop.f32.mrb[6].mxu0  ;;  %7234 = vst [vmem:[#allocation85_spill] sm:$0xff] %v6312_v62  ;;  %7235 = vst [vmem:[#allocation86_spill] sm:$0xff] %v6317_v17 }
 0x11c   : > { %v4537_v30 = vadd.f32 %v4536_v20, %v4535_v1  ;;  %v4538_v18 = vpop.f32.mrb[6].mxu1  ;;  %v4427_v15 = vpop.f32.mrb[7].mxu0  ;;  %v349_v1 = vld [vmem:[%s7060_s1 + $0x3b8] sm:$0xff]  ;;  %v6343_v20 = vcombine.low %v336_v16, %v340_v14  ;;  %v352_v14 = vld [vmem:[%s7060_s1 + $0x3d0] sm:$0xff] }
 0x11d   : > { %v4428_v37 = vadd.f32 %v4427_v15, %v4426_v31  ;;  %v4539_v5 = vpop.f32.mrb[7].mxu1  ;;  %v345_v15 = vld [vmem:[%s7060_s1 + $0x398] sm:$0xff] }
 0x11e   : > { %v4540_v19 = vadd.f32 %v4539_v5, %v4538_v18  ;;  %2007 = vmatmul.mubr.bf16.gmra.mrb[112].mxu0 %v6308_v29  ;;  %v6320_v51 = vadd.f32 %v4537_v30, %v4425_v58  ;;  %v360_v30 = vld [vmem:[%s7061_s2 + $0x10] sm:$0xff]  ;;  %7238 = vst [vmem:[#allocation89_spill] sm:$0xff] %v6343_v20 }
 0x11f   : > { %2168 = vmatmul.mubr.bf16.gmra.mrb[112].mxu1 %v6310_v32  ;;  %2014 = vmatprep.mubr.bf16.mxu0 %v6312_v62 }
 0x120   : > { %7236 = vst [vmem:[#allocation87_spill] sm:$0xff] %v6320_v51  ;;  %4158 = vmatprep.mubr.msk.bf16.mxu1 %vm1503_vm1, %v6317_v17  ;;  %v6332_v18 = vadd.f32 %v4540_v19, %v4428_v37  ;;  %2352 = vperm.xlu1 %5141, %v360_v30   ;;  %v6345_v19 = vcombine.low %v337_v45, %v341_v33  ;;  %v353_v45 = vld [vmem:[%s7060_s1 + $0x3d8] sm:$0xff] }
 0x121   : > { %v4429_v63 = vpop.f32.mrb[8].mxu0  ;;  %v6347_v17 = vcombine.high %v344_v46, %v348_v48  ;;  %v357_v33 = vld [vmem:[%s7060_s1 + $0x3f8] sm:$0xff] }
 0x122   : > { %7237 = vst [vmem:[#allocation88_spill] sm:$0xff] %v6332_v18  ;;  %v4541_v0 = vpop.f32.mrb[8].mxu1  ;;  %v4430_v58 = vpop.f32.mrb[9].mxu0  ;;  %7239 = vst [vmem:[#allocation90_spill] sm:$0xff] %v6345_v19  ;;  %v6349_v18 = vcombine.high %v345_v15, %v349_v1 }
 0x123   : > { %v4431_v31 = vadd.f32 %v4430_v58, %v4429_v63  ;;  %v4542_v37 = vpop.f32.mrb[9].mxu1  ;;  %v4432_v5 = vpop.f32.mrb[10].mxu0  ;;  %7240 = vst [vmem:[#allocation91_spill] sm:$0xff] %v6347_v17 }
 0x124   : > { %v4543_v62 = vadd.f32 %v4542_v37, %v4541_v0  ;;  %v4544_v32 = vpop.f32.mrb[10].mxu1  ;;  %v4433_v29 = vpop.f32.mrb[11].mxu0  ;;  %7241 = vst [vmem:[#allocation92_spill] sm:$0xff] %v6349_v18 }
 0x125   : > { %v4434_v51 = vadd.f32 %v4433_v29, %v4432_v5  ;;  %v4545_v56 = vpop.f32.mrb[11].mxu1 }
 0x126   : > { %v6351_v54 = vadd.f32 %v4543_v62, %v4431_v31  ;;  %v4546_v30 = vadd.f32 %v4545_v56, %v4544_v32  ;;  %2015 = vmatmul.mubr.bf16.gmra.mrb[116].mxu0 %v6343_v20  ;;  %v356_v62 = vld [vmem:[%s7060_s1 + $0x3f0] sm:$0xff]  ;;  %v6374_v31 = vcombine.low %v345_v15, %v349_v1 }
 0x127   : > { %2176 = vmatmul.mubr.bf16.gmra.mrb[116].mxu1 %v6345_v19  ;;  %2022 = vmatprep.mubr.bf16.mxu0 %v6347_v17  ;;  %v6376_v37 = vcombine.high %v352_v14, %v356_v62  ;;  %v6378_v17 = vcombine.high %v353_v45, %v357_v33 }
 0x128   : > { %7242 = vst [vmem:[#allocation93_spill] sm:$0xff] %v6351_v54  ;;  %v6356_v16 = vadd.f32 %v4546_v30, %v4434_v51  ;;  %4159 = vmatprep.mubr.msk.bf16.mxu1 %vm1503_vm1, %v6349_v18  ;;  %v6372_v51 = vcombine.low %v344_v46, %v348_v48 }
 0x129   : > { %v4435_v56 = vpop.f32.mrb[12].mxu0 }
 0x12a   : > { %7243 = vst [vmem:[#allocation94_spill] sm:$0xff] %v6356_v16  ;;  %v4547_v29 = vpop.f32.mrb[12].mxu1  ;;  %v4436_v32 = vpop.f32.mrb[13].mxu0 }
 0x12b   : > { %v4437_v63 = vadd.f32 %v4436_v32, %v4435_v56  ;;  %v4548_v0 = vpop.f32.mrb[13].mxu1  ;;  %v4438_v58 = vpop.f32.mrb[14].mxu0  ;;  %v6389_v56 = vcombine.low %v352_v14, %v356_v62 }
 0x12c   : > { %v4549_v5 = vadd.f32 %v4548_v0, %v4547_v29  ;;  %v4550_v30 = vpop.f32.mrb[14].mxu1  ;;  %v4439_v18 = vpop.f32.mrb[15].mxu0 }
 0x12d   : > { %v4440_v19 = vadd.f32 %v4439_v18, %v4438_v58  ;;  %v4551_v20 = vpop.f32.mrb[15].mxu1 }
 0x12e   : > { %v6380_v16 = vadd.f32 %v4549_v5, %v4437_v63  ;;  %v4552_v54 = vadd.f32 %v4551_v20, %v4550_v30  ;;  %2023 = vmatmul.mubr.bf16.gmra.mrb[120].mxu0 %v6372_v51  ;;  %v6391_v20 = vcombine.low %v353_v45, %v357_v33 }
 0x12f   : > { %2184 = vmatmul.mubr.bf16.gmra.mrb[120].mxu1 %v6374_v31  ;;  %2030 = vmatprep.mubr.bf16.mxu0 %v6376_v37 }
 0x130   : > { %v6385_v46 = vadd.f32 %v4552_v54, %v4440_v19  ;;  %4160 = vmatprep.mubr.msk.bf16.mxu1 %vm1503_vm1, %v6378_v17 }
 0x131   : > { %v4441_v48 = vpop.f32.mrb[16].mxu0 }
 0x132   : > { %v4553_v15 = vpop.f32.mrb[16].mxu1  ;;  %v4442_v1 = vpop.f32.mrb[17].mxu0 }
 0x133   : > { %v4443_v18 = vadd.f32 %v4442_v1, %v4441_v48  ;;  %v4554_v29 = vpop.f32.mrb[17].mxu1  ;;  %v4444_v32 = vpop.f32.mrb[18].mxu0 }
 0x134   : > { %v4555_v63 = vadd.f32 %v4554_v29, %v4553_v15  ;;  %v4556_v0 = vpop.f32.mrb[18].mxu1  ;;  %v4445_v58 = vpop.f32.mrb[19].mxu0 }
 0x135   : > { %v4446_v5 = vadd.f32 %v4445_v58, %v4444_v32  ;;  %v4557_v54 = vpop.f32.mrb[19].mxu1 }
 0x136   : > { %v6393_v19 = vadd.f32 %v4555_v63, %v4443_v18  ;;  %v4558_v30 = vadd.f32 %v4557_v54, %v4556_v0  ;;  %2031 = vmatmul.mubr.bf16.gmra.mrb[124].mxu0 %v6389_v56  ;;  %v5238_v18 = vld [vmem:[%s5482_s17 + $0x2f4] sm:$0xff]   ;;  %v5241_v54 = vld [vmem:[%s5482_s17 + $0x33c] sm:$0xff]  }
 0x137   : > { %2192 = vmatmul.mubr.bf16.gmra.mrb[124].mxu1 %v6391_v20  ;;  %2906 = vmatprep.mubr.bf16.mxu0 %v5464_v3  ;;  %v5239_v0 = vld [vmem:[%s5482_s17 + $0x374] sm:$0xff]  }
 0x138   : > { %v6398_v14 = vadd.f32 %v4558_v30, %v4446_v5  ;;  %3067 = vmatprep.mubr.bf16.mxu1 %v5475_v6  ;;  %v5242_v30 = vld [vmem:[%s5482_s17 + $0x2fc] sm:$0xff]  }
 0x139   : > { %v4447_v62 = vpop.f32.mrb[20].mxu0 }
 0x13a   : > { %v4559_v45 = vpop.f32.mrb[20].mxu1  ;;  %v4448_v33 = vpop.f32.mrb[21].mxu0 }
 0x13b   : > { %v4449_v48 = vadd.f32 %v4448_v33, %v4447_v62  ;;  %v4560_v15 = vpop.f32.mrb[21].mxu1  ;;  %v4450_v1 = vpop.f32.mrb[22].mxu0  ;;  %v5244_v33 = vld [vmem:[%s5482_s17 + $0x344] sm:$0xff]  }
 0x13c   : > { %v4561_v29 = vadd.f32 %v4560_v15, %v4559_v45  ;;  %v4562_v32 = vpop.f32.mrb[22].mxu1  ;;  %v4451_v63 = vpop.f32.mrb[23].mxu0  ;;  %v5240_v45 = vld [vmem:[%s5482_s17 + $0x37c] sm:$0xff]  }
 0x13d   : > { %v4452_v3 = vadd.f32 %v4451_v63, %v4450_v1  ;;  %v4563_v58 = vpop.f32.mrb[23].mxu1  ;;  %v5243_v63 = vld [vmem:[%s5482_s17 + $0x384] sm:$0xff]  }
 0x13e   : > { %v6403_v5 = vadd.f32 %v4561_v29, %v4449_v48  ;;  %v4564_v6 = vadd.f32 %v4563_v58, %v4562_v32  ;;  %2907 = vmatmul.mubr.bf16.vlgmr.msra.gmra.mrb[128].mxu0 %v5530_v43 }
 0x13f   : > { %3068 = vmatmul.mubr.bf16.vlgmr.msra.gmra.mrb[128].mxu1 %v5534_v44  ;;  %4962 = vmatpush3.bf16.msra.mxu0 %v5238_v18 }
 0x140   : > { %v6409_v62 = vadd.f32 %v4564_v6, %v4452_v3  ;;  %3358 = vmatpush1.bf16.msra.mxu1 %v5239_v0  ;;  %2914 = vmatprep.mubr.bf16.mxu0 %v5538_v47  ;;  %v5246_v3 = vld [vmem:[%s5482_s17 + $0x304] sm:$0xff]  }
 0x141   : > { %v4453_v15 = vpop.f32.mrb[24].mxu0  ;;  %3075 = vmatprep.mubr.bf16.mxu1 %v5542_v49  ;;  %3359 = vmatprep.subr.bf16.mxu1 %v7201_v2 }
 0x142   : > { %v4565_v48 = vpop.f32.mrb[24].mxu1  ;;  %v4454_v43 = vpop.f32.mrb[25].mxu0  ;;  %4963 = vmatprep.subr.bf16.mxu0 %v5241_v54  ;;  %v5248_v54 = vld [vmem:[%s5482_s17 + $0x34c] sm:$0xff]  }
 0x143   : > { %v4455_v44 = vadd.f32 %v4454_v43, %v4453_v15  ;;  %v4566_v1 = vpop.f32.mrb[25].mxu1  ;;  %v4456_v18 = vpop.f32.mrb[26].mxu0  ;;  %4964 = vmatpush3.bf16.msra.mxu0 %v5242_v30  ;;  %v5249_v15 = vld [vmem:[%s5482_s17 + $0x30c] sm:$0xff]   ;;  %v5252_v43 = vld [vmem:[%s5482_s17 + $0x354] sm:$0xff]  }
 0x144   : > { %v4567_v29 = vadd.f32 %v4566_v1, %v4565_v48  ;;  %v4568_v32 = vpop.f32.mrb[26].mxu1  ;;  %v4457_v47 = vpop.f32.mrb[27].mxu0  ;;  %3360 = vmatpush1.bf16.msra.mxu1 %v5240_v45  ;;  %4965 = vmatprep.subr.bf16.mxu0 %v5244_v33  ;;  %v5245_v45 = vld [vmem:[%s5482_s17 + $0x38c] sm:$0xff]  }
 0x145   : > { %v4458_v0 = vadd.f32 %v4457_v47, %v4456_v18  ;;  %v4569_v49 = vpop.f32.mrb[27].mxu1  ;;  %3361 = vmatprep.subr.bf16.mxu1 %v7201_v2 }
 0x146   : > { %v6419_v58 = vadd.f32 %v4567_v29, %v4455_v44  ;;  %v4570_v6 = vadd.f32 %v4569_v49, %v4568_v32  ;;  %2915 = vmatmul.mubr.bf16.gmra.mrb[132].mxu0 %v5564_v57  ;;  %v5247_v29 = vld [vmem:[%s5482_s17 + $0x394] sm:$0xff]  }
 0x147   : > { %3076 = vmatmul.mubr.bf16.gmra.mrb[132].mxu1 %v5567_v59  ;;  %2922 = vmatprep.mubr.bf16.mxu0 %v5569_v60 }
 0x148   : > { %v6425_v30 = vadd.f32 %v4570_v6, %v4458_v0  ;;  %3083 = vmatprep.mubr.bf16.mxu1 %v5571_v61  ;;  %3362 = vmatpush1.bf16.msra.mxu1 %v5243_v63  ;;  %v5253_v63 = vld [vmem:[%s5482_s17 + $0x314] sm:$0xff]  }
 0x149   : > { %v4459_v33 = vpop.f32.mrb[28].mxu0  ;;  %3363 = vmatprep.subr.bf16.mxu1 %v7201_v2  ;;  %4966 = vmatpush3.bf16.msra.mxu0 %v5246_v3  ;;  %v5256_v3 = vld [vmem:[%s5482_s17 + $0x35c] sm:$0xff]  }
 0x14a   : > { %v4571_v48 = vpop.f32.mrb[28].mxu1  ;;  %v4460_v57 = vpop.f32.mrb[29].mxu0  ;;  %4967 = vmatprep.subr.bf16.mxu0 %v5248_v54  ;;  %v5250_v54 = vld [vmem:[%s5482_s17 + $0x39c] sm:$0xff]  }
 0x14b   : > { %v4461_v59 = vadd.f32 %v4460_v57, %v4459_v33  ;;  %v4572_v44 = vpop.f32.mrb[29].mxu1  ;;  %v4462_v60 = vpop.f32.mrb[30].mxu0  ;;  %v5257_v33 = vld [vmem:[%s5482_s17 + $0x31c] sm:$0xff]  }
 0x14c   : > { %v4573_v1 = vadd.f32 %v4572_v44, %v4571_v48  ;;  %v4574_v18 = vpop.f32.mrb[30].mxu1  ;;  %v4463_v61 = vpop.f32.mrb[31].mxu0  ;;  %3364 = vmatpush1.bf16.msra.mxu1 %v5245_v45  ;;  %v5260_v48 = vld [vmem:[%s5482_s17 + $0x364] sm:$0xff]  }
 0x14d   : > { %v4464_v32 = vadd.f32 %v4463_v61, %v4462_v60  ;;  %v4575_v47 = vpop.f32.mrb[31].mxu1  ;;  %3365 = vmatprep.subr.bf16.mxu1 %v7201_v2  ;;  %4968 = vmatpush3.bf16.msra.mxu0 %v5249_v15  ;;  %v5251_v44 = vld [vmem:[%s5482_s17 + $0x3a4] sm:$0xff]  }
 0x14e   : > { %v6435_v0 = vadd.f32 %v4573_v1, %v4461_v59  ;;  %v4576_v49 = vadd.f32 %v4575_v47, %v4574_v18  ;;  %2923 = vmatmul.mubr.bf16.gmra.mrb[136].mxu0 %v5596_v10  ;;  %4969 = vmatprep.subr.bf16.mxu0 %v5252_v43  ;;  %v5261_v18 = vld [vmem:[%s5482_s17 + $0x324] sm:$0xff]  }
 0x14f   : > { %3084 = vmatmul.mubr.bf16.gmra.mrb[136].mxu1 %v5598_v11  ;;  %2930 = vmatprep.mubr.bf16.mxu0 %v5600_v12 }
 0x150   : > { %v6441_v6 = vadd.f32 %v4576_v49, %v4464_v32  ;;  %3091 = vmatprep.mubr.bf16.mxu1 %v5602_v13  ;;  %3366 = vmatpush1.bf16.msra.mxu1 %v5247_v29  ;;  %v5264_v32 = vld [vmem:[%s5482_s17 + $0x36c] sm:$0xff]  }
 0x151   : > { %v4465_v45 = vpop.f32.mrb[32].mxu0  ;;  %3367 = vmatprep.subr.bf16.mxu1 %v7201_v2  ;;  %4970 = vmatpush3.bf16.msra.mxu0 %v5253_v63  ;;  %v5254_v63 = vld [vmem:[%s5482_s17 + $0x3ac] sm:$0xff]  }
 0x152   : > { %v4577_v10 = vpop.f32.mrb[32].mxu1  ;;  %v4466_v15 = vpop.f32.mrb[33].mxu0  ;;  %4971 = vmatprep.subr.bf16.mxu0 %v5256_v3  ;;  %v5265_v3 = vld [vmem:[%s5482_s17 + $0x32c] sm:$0xff]  }
 0x153   : > { %v4467_v11 = vadd.f32 %v4466_v15, %v4465_v45  ;;  %v4578_v57 = vpop.f32.mrb[33].mxu1  ;;  %v4468_v12 = vpop.f32.mrb[34].mxu0 }
 0x154   : > { %v4579_v43 = vadd.f32 %v4578_v57, %v4577_v10  ;;  %v4580_v59 = vpop.f32.mrb[34].mxu1  ;;  %v4469_v13 = vpop.f32.mrb[35].mxu0  ;;  %3368 = vmatpush1.bf16.msra.mxu1 %v5250_v54 }
 0x155   : > { %v4470_v60 = vadd.f32 %v4469_v13, %v4468_v12  ;;  %v4581_v1 = vpop.f32.mrb[35].mxu1  ;;  %3369 = vmatprep.subr.bf16.mxu1 %v7201_v2  ;;  %4972 = vmatpush3.bf16.msra.mxu0 %v5257_v33 }
 0x156   : > { %v6451_v61 = vadd.f32 %v4579_v43, %v4467_v11  ;;  %v4582_v29 = vadd.f32 %v4581_v1, %v4580_v59  ;;  %2931 = vmatmul.mubr.bf16.gmra.mrb[140].mxu0 %v5626_v22  ;;  %4973 = vmatprep.subr.bf16.mxu0 %v5260_v48  ;;  %v5258_v59 = vld [vmem:[%s5482_s17 + $0x3bc] sm:$0xff]  }
 0x157   : > { %3092 = vmatmul.mubr.bf16.gmra.mrb[140].mxu1 %v5628_v23  ;;  %2938 = vmatprep.mubr.bf16.mxu0 %v5630_v24 }
 0x158   : > { %v6457_v47 = vadd.f32 %v4582_v29, %v4470_v60  ;;  %3099 = vmatprep.mubr.bf16.mxu1 %v5632_v25  ;;  %3370 = vmatpush1.bf16.msra.mxu1 %v5251_v44  ;;  %v5255_v25 = vld [vmem:[%s5482_s17 + $0x3b4] sm:$0xff]  }
 0x159   : > { %v4471_v49 = vpop.f32.mrb[36].mxu0  ;;  %3371 = vmatprep.subr.bf16.mxu1 %v7201_v2  ;;  %4974 = vmatpush3.bf16.msra.mxu0 %v5261_v18 }
 0x15a   : > { %v4583_v54 = vpop.f32.mrb[36].mxu1  ;;  %v4472_v22 = vpop.f32.mrb[37].mxu0  ;;  %4975 = vmatprep.subr.bf16.mxu0 %v5264_v32 }
 0x15b   : > { %v4473_v45 = vadd.f32 %v4472_v22, %v4471_v49  ;;  %v4584_v33 = vpop.f32.mrb[37].mxu1  ;;  %v4474_v23 = vpop.f32.mrb[38].mxu0  ;;  %v5262_v22 = vld [vmem:[%s5482_s17 + $0x3cc] sm:$0xff]  }
 0x15c   : > { %v4585_v10 = vadd.f32 %v4584_v33, %v4583_v54  ;;  %v4586_v24 = vpop.f32.mrb[38].mxu1  ;;  %v4475_v15 = vpop.f32.mrb[39].mxu0  ;;  %3372 = vmatpush1.bf16.msra.mxu1 %v5254_v63 }
 0x15d   : > { %v4476_v48 = vadd.f32 %v4475_v15, %v4474_v23  ;;  %v4587_v11 = vpop.f32.mrb[39].mxu1  ;;  %3373 = vmatprep.subr.bf16.mxu1 %v7201_v2  ;;  %4976 = vmatpush3.bf16.msra.mxu0 %v5265_v3 }
 0x15e   : > { %v6465_v57 = vadd.f32 %v4585_v10, %v4473_v45  ;;  %v4588_v12 = vadd.f32 %v4587_v11, %v4586_v24  ;;  %2939 = vmatmul.mubr.bf16.gmra.mrb[144].mxu0 %v5656_v34 }
 0x15f   : > { %3100 = vmatmul.mubr.bf16.gmra.mrb[144].mxu1 %v5658_v35  ;;  %2946 = vmatprep.mubr.bf16.mxu0 %v5660_v36  ;;  %v5259_v36 = vld [vmem:[%s5482_s17 + $0x3c4] sm:$0xff]  }
 0x160   : > { %v6470_v43 = vadd.f32 %v4588_v12, %v4476_v48  ;;  %3107 = vmatprep.mubr.bf16.mxu1 %v5663_v38  ;;  %3374 = vmatpush1.bf16.msra.mxu1 %v5255_v25 }
 0x161   : > { %v4477_v13 = vpop.f32.mrb[40].mxu0  ;;  %3375 = vmatprep.subr.bf16.mxu1 %v7201_v2 }
 0x162   : > { %v4589_v44 = vpop.f32.mrb[40].mxu1  ;;  %v4478_v60 = vpop.f32.mrb[41].mxu0 }
 0x163   : > { %v4479_v1 = vadd.f32 %v4478_v60, %v4477_v13  ;;  %v4590_v18 = vpop.f32.mrb[41].mxu1  ;;  %v4480_v29 = vpop.f32.mrb[42].mxu0  ;;  %v5266_v13 = vld [vmem:[%s5482_s17 + $0x3dc] sm:$0xff]   ;;  %v5267_v60 = vld [vmem:[%s5482_s17 + $0x3e4] ss:$0 sps:$4 sm:$0xff]  }
 0x164   : > { %v4591_v34 = vadd.f32 %v4590_v18, %v4589_v44  ;;  %v4592_v35 = vpop.f32.mrb[42].mxu1  ;;  %v4481_v32 = vpop.f32.mrb[43].mxu0  ;;  %3376 = vmatpush1.bf16.msra.mxu1 %v5258_v59 }
 0x165   : > { %v4482_v63 = vadd.f32 %v4481_v32, %v4480_v29  ;;  %v4593_v49 = vpop.f32.mrb[43].mxu1  ;;  %3377 = vmatprep.subr.bf16.mxu1 %v7201_v2 }
 0x166   : > { %v6477_v38 = vadd.f32 %v4591_v34, %v4479_v1  ;;  %v4594_v3 = vadd.f32 %v4593_v49, %v4592_v35  ;;  %2947 = vmatmul.mubr.bf16.gmra.mrb[148].mxu0 %v5686_v50 }
 0x167   : > { %3108 = vmatmul.mubr.bf16.gmra.mrb[148].mxu1 %v5689_v52  ;;  %2954 = vmatprep.mubr.bf16.mxu0 %v5691_v53  ;;  %v5263_v53 = vld [vmem:[%s5482_s17 + $0x3d4] sm:$0xff]   ;;  %s5357_s17 = smov 127  }
 0x168   : > { %v6482_v54 = vadd.f32 %v4594_v3, %v4482_v63  ;;  %3115 = vmatprep.mubr.bf16.mxu1 %v5694_v55  ;;  %3378 = vmatpush1.bf16.msra.mxu1 %v5259_v36 }
 0x169   : > { %v4483_v45 = vpop.f32.mrb[44].mxu0  ;;  %3379 = vmatprep.subr.bf16.mxu1 %v7201_v2 }
 0x16a   : > { %v4595_v33 = vpop.f32.mrb[44].mxu1  ;;  %v4484_v23 = vpop.f32.mrb[45].mxu0 }
 0x16b   : > { %v4485_v10 = vadd.f32 %v4484_v23, %v4483_v45  ;;  %v4596_v24 = vpop.f32.mrb[45].mxu1  ;;  %v4486_v15 = vpop.f32.mrb[46].mxu0 }
 0x16c   : > { %v4597_v50 = vadd.f32 %v4596_v24, %v4595_v33  ;;  %v4598_v52 = vpop.f32.mrb[46].mxu1  ;;  %v4487_v25 = vpop.f32.mrb[47].mxu0  ;;  %3380 = vmatpush1.bf16.msra.mxu1 %v5262_v22 }
 0x16d   : > { %v4488_v48 = vadd.f32 %v4487_v25, %v4486_v15  ;;  %v4599_v11 = vpop.f32.mrb[47].mxu1  ;;  %3381 = vmatprep.subr.bf16.mxu1 %v7201_v2 }
 0x16e   : > { %v6489_v55 = vadd.f32 %v4597_v50, %v4485_v10  ;;  %v4600_v12 = vadd.f32 %v4599_v11, %v4598_v52  ;;  %2955 = vmatmul.mubr.bf16.gmra.mrb[152].mxu0 %v5717_v4 }
 0x16f   : > { %3116 = vmatmul.mubr.bf16.gmra.mrb[152].mxu1 %v5719_v7  ;;  %2962 = vmatprep.mubr.bf16.mxu0 %v5721_v8 }
 0x170   : > { %v6494_v59 = vadd.f32 %v4600_v12, %v4488_v48  ;;  %3123 = vmatprep.mubr.bf16.mxu1 %v5723_v9  ;;  %3382 = vmatpush1.bf16.msra.mxu1 %v5263_v53  ;;  %v2872_v9 = vsel %vm1552_vm0, %v5267_v60, 0 }
 0x171   : > { %v4489_v44 = vpop.f32.mrb[48].mxu0  ;;  %3383 = vmatprep.subr.bf16.mxu1 %v7201_v2 }
 0x172   : > { %v4601_v1 = vpop.f32.mrb[48].mxu1  ;;  %v4490_v18 = vpop.f32.mrb[49].mxu0 }
 0x173   : > { %v4491_v29 = vadd.f32 %v4490_v18, %v4489_v44  ;;  %v4602_v34 = vpop.f32.mrb[49].mxu1  ;;  %v4492_v35 = vpop.f32.mrb[50].mxu0 }
 0x174   : > { %v4603_v4 = vadd.f32 %v4602_v34, %v4601_v1  ;;  %v4604_v32 = vpop.f32.mrb[50].mxu1  ;;  %v4493_v7 = vpop.f32.mrb[51].mxu0  ;;  %3384 = vmatpush1.bf16.msra.mxu1 %v5266_v13 }
 0x175   : > { %v4494_v8 = vadd.f32 %v4493_v7, %v4492_v35  ;;  %v4605_v36 = vpop.f32.mrb[51].mxu1  ;;  %3385 = vmatprep.subr.bf16.mxu1 %v7201_v2  ;;  %v7244_v35 = vld [vmem:[#allocation5_spill] sm:$0xff] }
 0x176   : > { %v6502_v63 = vadd.f32 %v4603_v4, %v4491_v29  ;;  %v4606_v49 = vadd.f32 %v4605_v36, %v4604_v32  ;;  %2963 = vmatmul.mubr.bf16.gmra.mrb[156].mxu0 %v5746_v21  ;;  %v7246_v4 = vld [vmem:[#allocation7_spill] sm:$0xff]  ;;  %v7247_v32 = vld [vmem:[#allocation8_spill] sm:$0xff] }
 0x177   : > { %3124 = vmatmul.mubr.bf16.gmra.mrb[156].mxu1 %v5748_v26  ;;  %2970 = vmatprep.mubr.bf16.mxu0 %v5750_v27 }
 0x178   : > { %v6507_v3 = vadd.f32 %v4606_v49, %v4494_v8  ;;  %3131 = vmatprep.mubr.bf16.mxu1 %v5752_v28  ;;  %3386 = vmatpush1.bf16.msra.mxu1 %v2872_v9 }
 0x179   : > { %v4495_v22 = vpop.f32.mrb[52].mxu0 }
 0x17a   : > { %v4607_v45 = vpop.f32.mrb[52].mxu1  ;;  %v4496_v33 = vpop.f32.mrb[53].mxu0 }
 0x17b   : > { %v4497_v23 = vadd.f32 %v4496_v33, %v4495_v22  ;;  %v4608_v10 = vpop.f32.mrb[53].mxu1  ;;  %v4498_v24 = vpop.f32.mrb[54].mxu0 }
 0x17c   : > { %v4609_v15 = vadd.f32 %v4608_v10, %v4607_v45  ;;  %v4610_v50 = vpop.f32.mrb[54].mxu1  ;;  %v4499_v52 = vpop.f32.mrb[55].mxu0 }
 0x17d   : > { %v4500_v25 = vadd.f32 %v4499_v52, %v4498_v24  ;;  %v4611_v21 = vpop.f32.mrb[55].mxu1  ;;  %v7248_v52 = vld [vmem:[#allocation9_spill] sm:$0xff] }
 0x17e   : > { %v6510_v53 = vadd.f32 %v4609_v15, %v4497_v23  ;;  %v4612_v26 = vadd.f32 %v4611_v21, %v4610_v50  ;;  %2971 = vmatmul.mubr.bf16.gmra.mrb[160].mxu0 %v5773_v39  ;;  %v7250_v21 = vld [vmem:[#allocation11_spill] sm:$0xff] }
 0x17f   : > { %3132 = vmatmul.mubr.bf16.gmra.mrb[160].mxu1 %v5775_v40  ;;  %2978 = vmatprep.mubr.bf16.mxu0 %v5777_v41  ;;  %v7245_v41 = vld [vmem:[#allocation6_spill] sm:$0xff] }
 0x180   : > { %v6515_v27 = vadd.f32 %v4612_v26, %v4500_v25  ;;  %3139 = vmatprep.mubr.bf16.mxu1 %v5779_v42  ;;  %v7249_v25 = vld [vmem:[#allocation10_spill] sm:$0xff] }
 0x181   : > { %v4501_v28 = vpop.f32.mrb[56].mxu0 }
 0x182   : > { %v4613_v48 = vpop.f32.mrb[56].mxu1  ;;  %v4502_v11 = vpop.f32.mrb[57].mxu0 }
 0x183   : > { %v4503_v12 = vadd.f32 %v4502_v11, %v4501_v28  ;;  %v4614_v13 = vpop.f32.mrb[57].mxu1  ;;  %v4504_v44 = vpop.f32.mrb[58].mxu0  ;;  %v7251_v28 = vld [vmem:[#allocation12_spill] sm:$0xff] }
 0x184   : > { %v4615_v60 = vadd.f32 %v4614_v13, %v4613_v48  ;;  %v4616_v1 = vpop.f32.mrb[58].mxu1  ;;  %v4505_v18 = vpop.f32.mrb[59].mxu0 }
 0x185   : > { %v4506_v29 = vadd.f32 %v4505_v18, %v4504_v44  ;;  %v4617_v34 = vpop.f32.mrb[59].mxu1 }
 0x186   : > { %v6518_v39 = vadd.f32 %v4615_v60, %v4503_v12  ;;  %v4618_v40 = vadd.f32 %v4617_v34, %v4616_v1  ;;  %2979 = vmatmul.mubr.bf16.gmra.mrb[164].mxu0 %v7244_v35  ;;  %v7252_v34 = vld [vmem:[#allocation81_spill] sm:$0xff] }
 0x187   : > { %3140 = vmatmul.mubr.bf16.gmra.mrb[164].mxu1 %v7245_v41  ;;  %2986 = vmatprep.mubr.bf16.mxu0 %v7246_v4  ;;  %v7253_v41 = vld [vmem:[#allocation13_spill] sm:$0xff] }
 0x188   : > { %v6523_v42 = vadd.f32 %v4618_v40, %v4506_v29  ;;  %3147 = vmatprep.mubr.bf16.mxu1 %v7247_v32  ;;  %v7254_v32 = vld [vmem:[#allocation82_spill] sm:$0xff] }
 0x189   : > { %v4507_v7 = vpop.f32.mrb[60].mxu0 }
 0x18a   : > { %v4619_v8 = vpop.f32.mrb[60].mxu1  ;;  %v4508_v36 = vpop.f32.mrb[61].mxu0 }
 0x18b   : > { %v4509_v9 = vadd.f32 %v4508_v36, %v4507_v7  ;;  %v4620_v49 = vpop.f32.mrb[61].mxu1  ;;  %v4510_v22 = vpop.f32.mrb[62].mxu0  ;;  %v7256_v36 = vld [vmem:[#allocation15_spill] sm:$0xff] }
 0x18c   : > { %v4621_v45 = vadd.f32 %v4620_v49, %v4619_v8  ;;  %v4622_v33 = vpop.f32.mrb[62].mxu1  ;;  %v4511_v23 = vpop.f32.mrb[63].mxu0  ;;  %v7255_v8 = vld [vmem:[#allocation14_spill] sm:$0xff] }
 0x18d   : > { %v4512_v10 = vadd.f32 %v4511_v23, %v4510_v22  ;;  %v4623_v24 = vpop.f32.mrb[63].mxu1 }
 0x18e   : > { %v6526_v15 = vadd.f32 %v4621_v45, %v4509_v9  ;;  %v4624_v50 = vadd.f32 %v4623_v24, %v4622_v33  ;;  %2987 = vmatmul.mubr.bf16.gmra.mrb[168].mxu0 %v7248_v52  ;;  %v7257_v9 = vld [vmem:[#allocation16_spill] sm:$0xff] }
 0x18f   : > { %3148 = vmatmul.mubr.bf16.gmra.mrb[168].mxu1 %v7249_v25  ;;  %2994 = vmatprep.mubr.bf16.mxu0 %v7250_v21  ;;  %v7258_v21 = vld [vmem:[#allocation87_spill] sm:$0xff] }
 0x190   : > { %v6531_v26 = vadd.f32 %v4624_v50, %v4512_v10  ;;  %3155 = vmatprep.mubr.bf16.mxu1 %v7251_v28 }
 0x191   : > { %v4641_v48 = vpop.f32.mrb[64].mxu0 }
 0x192   : > { %v4642_v11 = vpop.f32.mrb[65].mxu0  ;;  %v2073_v12 = vpop.f32.mrb[64].mxu1 }
 0x193   : > { %v4643_v13 = vadd.f32 %v4642_v11, %v4641_v48  ;;  %v4644_v44 = vpop.f32.mrb[66].mxu0  ;;  %v2075_v60 = vpop.f32.mrb[65].mxu1  ;;  %v7259_v11 = vld [vmem:[#allocation17_spill] sm:$0xff] }
 0x194   : > { %v4645_v1 = vpop.f32.mrb[67].mxu0  ;;  %v2076_v18 = vpop.f32.mrb[66].mxu1  ;;  %v7261_v60 = vld [vmem:[#allocation18_spill] sm:$0xff] }
 0x195   : > { %v4646_v29 = vadd.f32 %v4645_v1, %v4644_v44  ;;  %v1913_v40 = vadd.f32 %v4643_v13, %v7252_v34  ;;  %v2078_v35 = vpop.f32.mrb[67].mxu1  ;;  %v7260_v13 = vld [vmem:[#allocation88_spill] sm:$0xff]  ;;  %v7262_v1 = vld [vmem:[#allocation19_spill] sm:$0xff] }
 0x196   : > { %2995 = vmatmul.mubr.bf16.gmra.mrb[172].mxu0 %v7253_v41 }
 0x197   : > { %v6536_v4 = vadd.f32 %v2073_v12, %v1913_v40  ;;  %v1916_v7 = vadd.f32 %v4646_v29, %v7254_v32  ;;  %3156 = vmatmul.mubr.bf16.gmra.mrb[172].mxu1 %v7255_v8  ;;  %3002 = vmatprep.mubr.bf16.mxu0 %v7256_v36 }
 0x198   : > { %3163 = vmatprep.mubr.bf16.mxu1 %v7257_v9 }
 0x199   : > { %v6542_v49 = vadd.f32 %v2076_v18, %v1916_v7  ;;  %v4647_v22 = vpop.f32.mrb[68].mxu0  ;;  %v7263_v18 = vld [vmem:[#allocation20_spill] sm:$0xff] }
 0x19a   : > { %v4648_v45 = vpop.f32.mrb[69].mxu0  ;;  %v2081_v33 = vpop.f32.mrb[68].mxu1 }
 0x19b   : > { %v4649_v23 = vadd.f32 %v4648_v45, %v4647_v22  ;;  %v4650_v10 = vpop.f32.mrb[70].mxu0  ;;  %v2083_v24 = vpop.f32.mrb[69].mxu1  ;;  %v7264_v22 = vld [vmem:[#allocation93_spill] sm:$0xff] }
 0x19c   : > { %v4651_v50 = vpop.f32.mrb[71].mxu0  ;;  %v2084_v52 = vpop.f32.mrb[70].mxu1  ;;  %v7266_v24 = vld [vmem:[#allocation94_spill] sm:$0xff] }
 0x19d   : > { %v4652_v25 = vadd.f32 %v4651_v50, %v4650_v10  ;;  %v1921_v28 = vadd.f32 %v4649_v23, %v7258_v21  ;;  %v2086_v48 = vpop.f32.mrb[71].mxu1  ;;  %v7265_v23 = vld [vmem:[#allocation21_spill] sm:$0xff]  ;;  %v7269_v21 = vld [vmem:[#allocation24_spill] sm:$0xff] }
 0x19e   : > { %3003 = vmatmul.mubr.bf16.gmra.mrb[176].mxu0 %v7259_v11 }
 0x19f   : > { %v6546_v12 = vadd.f32 %v2081_v33, %v1921_v28  ;;  %v1924_v44 = vadd.f32 %v4652_v25, %v7260_v13  ;;  %3164 = vmatmul.mubr.bf16.gmra.mrb[176].mxu1 %v7261_v60  ;;  %3010 = vmatprep.mubr.bf16.mxu0 %v7262_v1  ;;  %v7267_v25 = vld [vmem:[#allocation22_spill] sm:$0xff] }
 0x1a0   : > { %3171 = vmatprep.mubr.bf16.mxu1 %v7263_v18 }
 0x1a1   : > { %v6552_v29 = vadd.f32 %v2084_v52, %v1924_v44  ;;  %v4653_v34 = vpop.f32.mrb[72].mxu0  ;;  %v7268_v52 = vld [vmem:[#allocation23_spill] sm:$0xff] }
 0x1a2   : > { %v4654_v40 = vpop.f32.mrb[73].mxu0  ;;  %v2089_v35 = vpop.f32.mrb[72].mxu1 }
 0x1a3   : > { %v4655_v41 = vadd.f32 %v4654_v40, %v4653_v34  ;;  %v4656_v32 = vpop.f32.mrb[74].mxu0  ;;  %v2091_v7 = vpop.f32.mrb[73].mxu1 }
 0x1a4   : > { %v4657_v8 = vpop.f32.mrb[75].mxu0  ;;  %v2092_v36 = vpop.f32.mrb[74].mxu1 }
 0x1a5   : > { %v4658_v9 = vadd.f32 %v4657_v8, %v4656_v32  ;;  %v1929_v45 = vadd.f32 %v4655_v41, %v7264_v22  ;;  %v2094_v33 = vpop.f32.mrb[75].mxu1  ;;  %v7270_v32 = vld [vmem:[#allocation25_spill] sm:$0xff]  ;;  %v7273_v22 = vld [vmem:[#allocation28_spill] sm:$0xff] }
 0x1a6   : > { %3011 = vmatmul.mubr.bf16.gmra.mrb[180].mxu0 %v7265_v23 }
 0x1a7   : > { %v2090_v10 = vadd.f32 %v2089_v35, %v1929_v45  ;;  %v1932_v50 = vadd.f32 %v4658_v9, %v7266_v24  ;;  %3172 = vmatmul.mubr.bf16.gmra.mrb[180].mxu1 %v7267_v25  ;;  %3018 = vmatprep.mubr.bf16.mxu0 %v7268_v52  ;;  %v7272_v9 = vld [vmem:[#allocation27_spill] sm:$0xff] }
 0x1a8   : > { %3179 = vmatprep.mubr.bf16.mxu1 %v7269_v21 }
 0x1a9   : > { %v2093_v28 = vadd.f32 %v2092_v36, %v1932_v50  ;;  %v4659_v48 = vpop.f32.mrb[76].mxu0  ;;  %2204 = vrot.lane.b32.xlu0 %v2090_v10, %s5357_s17  ;;  %v7271_v36 = vld [vmem:[#allocation26_spill] sm:$0xff] }
 0x1aa   : > { %v4660_v11 = vpop.f32.mrb[77].mxu0  ;;  %v2097_v13 = vpop.f32.mrb[76].mxu1 }
 0x1ab   : > { %v4661_v44 = vadd.f32 %v4660_v11, %v4659_v48  ;;  %v4662_v60 = vpop.f32.mrb[78].mxu0  ;;  %v2099_v1 = vpop.f32.mrb[77].mxu1  ;;  %v7274_v48 = vld [vmem:[#allocation29_spill] sm:$0xff] }
 0x1ac   : > { %v4663_v18 = vpop.f32.mrb[79].mxu0  ;;  %v2100_v34 = vpop.f32.mrb[78].mxu1  ;;  %v7277_v1 = vld [vmem:[#allocation32_spill] sm:$0xff] }
 0x1ad   : > { %v4664_v40 = vadd.f32 %v4663_v18, %v4662_v60  ;;  %v1937_v35 = vadd.f32 %v4661_v44, %v6380_v16  ;;  %2206 = vrot.lane.b32.xlu0 %v2093_v28, %s5357_s17  ;;  %v2102_v41 = vpop.f32.mrb[79].mxu1  ;;  %v7275_v44 = vld [vmem:[#allocation30_spill] sm:$0xff]  ;;  %v7276_v60 = vld [vmem:[#allocation31_spill] sm:$0xff] }
 0x1ae   : > { %3019 = vmatmul.mubr.bf16.gmra.mrb[184].mxu0 %v7270_v32 }
 0x1af   : > { %v2098_v7 = vadd.f32 %v2097_v13, %v1937_v35  ;;  %v1940_v8 = vadd.f32 %v4664_v40, %v6385_v46  ;;  %3180 = vmatmul.mubr.bf16.gmra.mrb[184].mxu1 %v7271_v36  ;;  %3026 = vmatprep.mubr.bf16.mxu0 %v7272_v9 }
 0x1b0   : > { %3187 = vmatprep.mubr.bf16.mxu1 %v7273_v22  ;;  %v7278_v22 = vld [vmem:[#allocation33_spill] sm:$0xff] }
 0x1b1   : > { %v2101_v45 = vadd.f32 %v2100_v34, %v1940_v8  ;;  %v4665_v33 = vpop.f32.mrb[80].mxu0  ;;  %2208 = vrot.lane.b32.xlu1 %v2098_v7, %s5357_s17 }
 0x1b2   : > { %v4666_v23 = vpop.f32.mrb[81].mxu0  ;;  %v2105_v16 = vpop.f32.mrb[80].mxu1 }
 0x1b3   : > { %v4667_v10 = vadd.f32 %v4666_v23, %v4665_v33  ;;  %v4668_v24 = vpop.f32.mrb[82].mxu0  ;;  %2210 = vrot.lane.b32.xlu0 %v2101_v45, %s5357_s17  ;;  %v2107_v50 = vpop.f32.mrb[81].mxu1  ;;  %v7279_v23 = vld [vmem:[#allocation34_spill] sm:$0xff] }
 0x1b4   : > { %v4669_v25 = vpop.f32.mrb[83].mxu0  ;;  %v2108_v52 = vpop.f32.mrb[82].mxu1 }
 0x1b5   : > { %v4670_v46 = vadd.f32 %v4669_v25, %v4668_v24  ;;  %v1945_v21 = vadd.f32 %v4667_v10, %v6393_v19  ;;  %v2110_v28 = vpop.f32.mrb[83].mxu1  ;;  %v7281_v10 = vld [vmem:[#allocation36_spill] sm:$0xff] }
 0x1b6   : > { %3027 = vmatmul.mubr.bf16.gmra.mrb[188].mxu0 %v7274_v48 }
 0x1b7   : > { %v2106_v11 = vadd.f32 %v2105_v16, %v1945_v21  ;;  %v1948_v13 = vadd.f32 %v4670_v46, %v6398_v14  ;;  %3188 = vmatmul.mubr.bf16.gmra.mrb[188].mxu1 %v7275_v44  ;;  %3228 = vmatprep.mubr.bf16.mxu0 %v7276_v60  ;;  %v7280_v16 = vld [vmem:[#allocation35_spill] sm:$0xff]  ;;  %v7282_v44 = vld [vmem:[#allocation37_spill] sm:$0xff] }
 0x1b8   : > { %4349 = vmatprep.mubr.msk.bf16.mxu1 %vm1503_vm1, %v7277_v1 }
 0x1b9   : > { %v2109_v18 = vadd.f32 %v2108_v52, %v1948_v13  ;;  %v4671_v34 = vpop.f32.mrb[84].mxu0  ;;  %2224 = vrot.lane.b32.xlu0 %v2106_v11, %s5358_s25 }
 0x1ba   : > { %v4672_v40 = vpop.f32.mrb[85].mxu0  ;;  %v2113_v19 = vpop.f32.mrb[84].mxu1 }
 0x1bb   : > { %v4673_v35 = vadd.f32 %v4672_v40, %v4671_v34  ;;  %v4674_v41 = vpop.f32.mrb[86].mxu0  ;;  %2226 = vrot.lane.b32.xlu1 %v2109_v18, %s5358_s25  ;;  %v2115_v32 = vpop.f32.mrb[85].mxu1  ;;  %v7283_v18 = vld [vmem:[#allocation38_spill] sm:$0xff]  ;;  %v7284_v34 = vld [vmem:[#allocation39_spill] sm:$0xff]  ;;  %v7285_v40 = vld [vmem:[#allocation40_spill] sm:$0xff] }
 0x1bc   : > { %v4675_v14 = vpop.f32.mrb[87].mxu0  ;;  %v2116_v7 = vpop.f32.mrb[86].mxu1 }
 0x1bd   : > { %v4676_v8 = vadd.f32 %v4675_v14, %v4674_v41  ;;  %v1953_v36 = vadd.f32 %v4673_v35, %v6403_v5  ;;  %v2118_v9 = vpop.f32.mrb[87].mxu1 }
 0x1be   : > { %3229 = vmatmul.mubr.bf16.vlgmr.msra.gmra.mrb[192].mxu0 %v7278_v22 }
 0x1bf   : > { %v2114_v45 = vadd.f32 %v2113_v19, %v1953_v36  ;;  %v1956_v33 = vadd.f32 %v4676_v8, %v6409_v62  ;;  %3390 = vmatmul.mubr.bf16.vlgmr.msra.gmra.mrb[192].mxu1 %v7279_v23  ;;  %3236 = vmatprep.mubr.bf16.mxu0 %v7280_v16  ;;  %v7287_v16 = vld [vmem:[#allocation42_spill] sm:$0xff] }
 0x1c0   : > { %4350 = vmatprep.mubr.msk.bf16.mxu1 %vm1503_vm1, %v7281_v10  ;;  %v7288_v10 = vld [vmem:[#allocation43_spill] sm:$0xff] }
 0x1c1   : > { %v2117_v24 = vadd.f32 %v2116_v7, %v1956_v33  ;;  %v4677_v50 = vpop.f32.mrb[88].mxu0  ;;  %2228 = vrot.lane.b32.xlu1 %v2114_v45, %s5358_s25  ;;  %v7286_v45 = vld [vmem:[#allocation41_spill] sm:$0xff] }
 0x1c2   : > { %v4678_v25 = vpop.f32.mrb[89].mxu0  ;;  %v2121_v52 = vpop.f32.mrb[88].mxu1 }
 0x1c3   : > { %v4679_v5 = vadd.f32 %v4678_v25, %v4677_v50  ;;  %v4680_v46 = vpop.f32.mrb[90].mxu0  ;;  %2230 = vrot.lane.b32.xlu0 %v2117_v24, %s5358_s25  ;;  %v2123_v21 = vpop.f32.mrb[89].mxu1  ;;  %v7289_v24 = vld [vmem:[#allocation44_spill] sm:$0xff] }
 0x1c4   : > { %v4681_v28 = vpop.f32.mrb[91].mxu0  ;;  %v2124_v62 = vpop.f32.mrb[90].mxu1 }
 0x1c5   : > { %v4682_v48 = vadd.f32 %v4681_v28, %v4680_v46  ;;  %v1961_v11 = vadd.f32 %v4679_v5, %v6419_v58  ;;  %v2126_v13 = vpop.f32.mrb[91].mxu1 }
 0x1c6   : > { %3237 = vmatmul.mubr.bf16.gmra.mrb[196].mxu0 %v7282_v44  ;;  %v7290_v13 = vld [vmem:[#allocation45_spill] sm:$0xff] }
 0x1c7   : > { %v2122_v60 = vadd.f32 %v2121_v52, %v1961_v11  ;;  %v1964_v1 = vadd.f32 %v4682_v48, %v6425_v30  ;;  %3398 = vmatmul.mubr.bf16.gmra.mrb[196].mxu1 %v7283_v18  ;;  %3244 = vmatprep.mubr.bf16.mxu0 %v7284_v34  ;;  %v7292_v18 = vld [vmem:[#allocation47_spill] sm:$0xff]  ;;  %v7293_v34 = vld [vmem:[#allocation48_spill] sm:$0xff] }
 0x1c8   : > { %4351 = vmatprep.mubr.msk.bf16.mxu1 %vm1503_vm1, %v7285_v40 }
 0x1c9   : > { %v2125_v19 = vadd.f32 %v2124_v62, %v1964_v1  ;;  %v4683_v35 = vpop.f32.mrb[92].mxu0  ;;  %2244 = vrot.lane.b32.xlu0 %v2122_v60, %s5359_s26  ;;  %v7291_v1 = vld [vmem:[#allocation46_spill] sm:$0xff] }
 0x1ca   : > { %v4684_v41 = vpop.f32.mrb[93].mxu0  ;;  %v2129_v58 = vpop.f32.mrb[92].mxu1 }
 0x1cb   : > { %v4685_v32 = vadd.f32 %v4684_v41, %v4683_v35  ;;  %v4686_v14 = vpop.f32.mrb[94].mxu0  ;;  %2246 = vrot.lane.b32.xlu1 %v2125_v19, %s5359_s26  ;;  %v2131_v7 = vpop.f32.mrb[93].mxu1 }
 0x1cc   : > { %v4687_v30 = vpop.f32.mrb[95].mxu0  ;;  %v2132_v8 = vpop.f32.mrb[94].mxu1 }
 0x1cd   : > { %v4688_v36 = vadd.f32 %v4687_v30, %v4686_v14  ;;  %v1969_v9 = vadd.f32 %v4685_v32, %v6435_v0  ;;  %v2134_v22 = vpop.f32.mrb[95].mxu1 }
 0x1ce   : > { %3245 = vmatmul.mubr.bf16.gmra.mrb[200].mxu0 %v7286_v45  ;;  %v7295_v45 = vld [vmem:[#allocation50_spill] sm:$0xff] }
 0x1cf   : > { %v2130_v33 = vadd.f32 %v2129_v58, %v1969_v9  ;;  %v1972_v23 = vadd.f32 %v4688_v36, %v6441_v6  ;;  %3406 = vmatmul.mubr.bf16.gmra.mrb[200].mxu1 %v7287_v16  ;;  %3252 = vmatprep.mubr.bf16.mxu0 %v7288_v10  ;;  %v7294_v36 = vld [vmem:[#allocation49_spill] sm:$0xff] }
 0x1d0   : > { %4352 = vmatprep.mubr.msk.bf16.mxu1 %vm1503_vm1, %v7289_v24 }
 0x1d1   : > { %v2133_v50 = vadd.f32 %v2132_v8, %v1972_v23  ;;  %v4689_v25 = vpop.f32.mrb[96].mxu0  ;;  %2248 = vrot.lane.b32.xlu1 %v2130_v33, %s5359_s26  ;;  %v7296_v33 = vld [vmem:[#allocation51_spill] sm:$0xff]  ;;  %v7297_v23 = vld [vmem:[#allocation52_spill] sm:$0xff] }
 0x1d2   : > { %v4690_v52 = vpop.f32.mrb[97].mxu0  ;;  %v2137_v5 = vpop.f32.mrb[96].mxu1 }
 0x1d3   : > { %v4691_v0 = vadd.f32 %v4690_v52, %v4689_v25  ;;  %v4692_v46 = vpop.f32.mrb[98].mxu0  ;;  %2250 = vrot.lane.b32.xlu0 %v2133_v50, %s5359_s26  ;;  %v2139_v21 = vpop.f32.mrb[97].mxu1 }
 0x1d4   : > { %v4693_v28 = vpop.f32.mrb[99].mxu0  ;;  %v2140_v6 = vpop.f32.mrb[98].mxu1 }
 0x1d5   : > { %v4694_v62 = vadd.f32 %v4693_v28, %v4692_v46  ;;  %v1977_v48 = vadd.f32 %v4691_v0, %v6451_v61  ;;  %v2142_v11 = vpop.f32.mrb[99].mxu1  ;;  %v5270_v28 = vld [vmem:[%s7062_s3 + $0x4] ss:$8 sps:$4 sm:$0xff]  }
 0x1d6   : > { %3253 = vmatmul.mubr.bf16.gmra.mrb[204].mxu0 %v7290_v13  ;;  %v7299_v13 = vld [vmem:[#allocation54_spill] sm:$0xff]  ;;  %3779 = vmatprep.subr.bf16.mxu0 %v5270_v28 }
 0x1d7   : > { %v2138_v44 = vadd.f32 %v2137_v5, %v1977_v48  ;;  %v1980_v60 = vadd.f32 %v4694_v62, %v6457_v47  ;;  %3414 = vmatmul.mubr.bf16.gmra.mrb[204].mxu1 %v7291_v1  ;;  %3260 = vmatprep.mubr.bf16.mxu0 %v7292_v18  ;;  %v5268_v62 = vld [vmem:[%s7062_s3] ss:$8 sps:$4 sm:$0xff]   ;;  %v5273_v18 = vld [vmem:[%s7062_s3 + $0x14] ss:$8 sps:$4 sm:$0xff]  }
 0x1d8   : > { %4353 = vmatprep.mubr.msk.bf16.mxu1 %vm1503_vm1, %v7293_v34  ;;  %3780 = vmatpush1.bf16.msra.mxu0 %v5268_v62 }
 0x1d9   : > { %v2141_v40 = vadd.f32 %v2140_v6, %v1980_v60  ;;  %v4695_v19 = vpop.f32.mrb[100].mxu0  ;;  %2264 = vrot.lane.b32.xlu0 %v2138_v44, %s5360_s30  ;;  %v7298_v6 = vld [vmem:[#allocation53_spill] sm:$0xff]  ;;  %v7300_v44 = vld [vmem:[#allocation55_spill] sm:$0xff]  ;;  %v7301_v60 = vld [vmem:[#allocation56_spill] sm:$0xff]  ;;  %5073 = vmatprep.subr.bf16.mxu1 %v5270_v28 }
 0x1da   : > { %v4696_v35 = vpop.f32.mrb[101].mxu0  ;;  %v2145_v61 = vpop.f32.mrb[100].mxu1  ;;  %3781 = vmatprep.subr.bf16.mxu0 %v5273_v18  ;;  %5081 = vmatpush1.bf16.msra.mxu1 %v5268_v62  ;;  %v7306_v28 = vld [vmem:[#allocation61_spill] sm:$0xff] }
 0x1db   : > { %v4697_v41 = vadd.f32 %v4696_v35, %v4695_v19  ;;  %v4698_v58 = vpop.f32.mrb[102].mxu0  ;;  %2266 = vrot.lane.b32.xlu1 %v2141_v40, %s5360_s30  ;;  %v2147_v32 = vpop.f32.mrb[101].mxu1  ;;  %v5271_v40 = vld [vmem:[%s7062_s3 + $0x10] ss:$8 sps:$4 sm:$0xff]   ;;  %5074 = vmatprep.subr.bf16.mxu1 %v5273_v18 }
 0x1dc   : > { %v4699_v47 = vpop.f32.mrb[103].mxu0  ;;  %v2148_v14 = vpop.f32.mrb[102].mxu1  ;;  %3782 = vmatpush1.bf16.msra.mxu0 %v5271_v40  ;;  %v5283_v18 = vld [vmem:[%s7062_s3 + $0x50] ss:$8 sps:$4 sm:$0xff]  }
 0x1dd   : > { %v4700_v7 = vadd.f32 %v4699_v47, %v4698_v58  ;;  %v1985_v30 = vadd.f32 %v4697_v41, %v6465_v57  ;;  %v2150_v8 = vpop.f32.mrb[103].mxu1 }
 0x1de   : > { %3261 = vmatmul.mubr.bf16.gmra.mrb[208].mxu0 %v7294_v36  ;;  %v5274_v8 = vld [vmem:[%s7062_s3 + $0x20] ss:$8 sps:$4 sm:$0xff]   ;;  %5082 = vmatpush1.bf16.msra.mxu1 %v5271_v40 }
 0x1df   : > { %v2146_v9 = vadd.f32 %v2145_v61, %v1985_v30  ;;  %v1988_v22 = vadd.f32 %v4700_v7, %v6470_v43  ;;  %3422 = vmatmul.mubr.bf16.gmra.mrb[208].mxu1 %v7295_v45  ;;  %3268 = vmatprep.mubr.bf16.mxu0 %v7296_v33  ;;  %v5276_v7 = vld [vmem:[%s7062_s3 + $0x24] ss:$8 sps:$4 sm:$0xff]   ;;  %v7304_v45 = vld [vmem:[#allocation59_spill] sm:$0xff] }
 0x1e0   : > { %4354 = vmatprep.mubr.msk.bf16.mxu1 %vm1503_vm1, %v7297_v23  ;;  %v7302_v30 = vld [vmem:[#allocation57_spill] sm:$0xff]  ;;  %3783 = vmatprep.subr.bf16.mxu0 %v5276_v7 }
 0x1e1   : > { %v2149_v16 = vadd.f32 %v2148_v14, %v1988_v22  ;;  %v4701_v10 = vpop.f32.mrb[104].mxu0  ;;  %2268 = vrot.lane.b32.xlu1 %v2146_v9, %s5360_s30  ;;  %v7303_v22 = vld [vmem:[#allocation58_spill] sm:$0xff]  ;;  %3784 = vmatpush1.bf16.msra.mxu0 %v5274_v8 }
 0x1e2   : > { %v4702_v24 = vpop.f32.mrb[105].mxu0  ;;  %v2153_v50 = vpop.f32.mrb[104].mxu1  ;;  %5075 = vmatprep.subr.bf16.mxu1 %v5276_v7 }
 0x1e3   : > { %v4703_v57 = vadd.f32 %v4702_v24, %v4701_v10  ;;  %v4704_v25 = vpop.f32.mrb[106].mxu0  ;;  %2270 = vrot.lane.b32.xlu0 %v2149_v16, %s5360_s30  ;;  %v2155_v52 = vpop.f32.mrb[105].mxu1  ;;  %v5279_v16 = vld [vmem:[%s7062_s3 + $0x34] ss:$8 sps:$4 sm:$0xff]   ;;  %5083 = vmatpush1.bf16.msra.mxu1 %v5274_v8  ;;  %v7311_v8 = vld [vmem:[#allocation66_spill] sm:$0xff] }
 0x1e4   : > { %v4705_v5 = vpop.f32.mrb[107].mxu0  ;;  %v2156_v43 = vpop.f32.mrb[106].mxu1  ;;  %3785 = vmatprep.subr.bf16.mxu0 %v5279_v16  ;;  %5076 = vmatprep.subr.bf16.mxu1 %v5279_v16 }
 0x1e5   : > { %v4706_v0 = vadd.f32 %v4705_v5, %v4704_v25  ;;  %v1993_v46 = vadd.f32 %v4703_v57, %v6477_v38  ;;  %v2158_v21 = vpop.f32.mrb[107].mxu1 }
 0x1e6   : > { %3269 = vmatmul.mubr.bf16.gmra.mrb[212].mxu0 %v7298_v6  ;;  %v5282_v21 = vld [vmem:[%s7062_s3 + $0x44] ss:$8 sps:$4 sm:$0xff]   ;;  %v5280_v6 = vld [vmem:[%s7062_s3 + $0x40] ss:$8 sps:$4 sm:$0xff]  }
 0x1e7   : > { %v2154_v48 = vadd.f32 %v2153_v50, %v1993_v46  ;;  %v1996_v11 = vadd.f32 %v4706_v0, %v6482_v54  ;;  %3430 = vmatmul.mubr.bf16.gmra.mrb[212].mxu1 %v7299_v13  ;;  %3276 = vmatprep.mubr.bf16.mxu0 %v7300_v44  ;;  %v7308_v13 = vld [vmem:[#allocation63_spill] sm:$0xff] }
 0x1e8   : > { %4355 = vmatprep.mubr.msk.bf16.mxu1 %vm1503_vm1, %v7301_v60 }
 0x1e9   : > { %v2157_v38 = vadd.f32 %v2156_v43, %v1996_v11  ;;  %v4707_v1 = vpop.f32.mrb[108].mxu0  ;;  %2284 = vrot.lane.b32.xlu1 %v2154_v48, %s5361_s10  ;;  %v7307_v11 = vld [vmem:[#allocation62_spill] sm:$0xff] }
 0x1ea   : > { %v4708_v34 = vpop.f32.mrb[109].mxu0  ;;  %v2161_v54 = vpop.f32.mrb[108].mxu1 }
 0x1eb   : > { %v4709_v19 = vadd.f32 %v4708_v34, %v4707_v1  ;;  %v4710_v35 = vpop.f32.mrb[110].mxu0  ;;  %2286 = vrot.lane.b32.xlu0 %v2157_v38, %s5361_s10  ;;  %v2163_v61 = vpop.f32.mrb[109].mxu1  ;;  %v5285_v38 = vld [vmem:[%s7062_s3 + $0x54] ss:$8 sps:$4 sm:$0xff]  }
 0x1ec   : > { %v4711_v41 = vpop.f32.mrb[111].mxu0  ;;  %v2164_v58 = vpop.f32.mrb[110].mxu1 }
 0x1ed   : > { %v4712_v32 = vadd.f32 %v4711_v41, %v4710_v35  ;;  %v2001_v47 = vadd.f32 %v4709_v19, %v6489_v55  ;;  %v2166_v14 = vpop.f32.mrb[111].mxu1  ;;  %v7305_v55 = vld [vmem:[#allocation60_spill] sm:$0xff] }
 0x1ee   : > { %3277 = vmatmul.mubr.bf16.gmra.mrb[216].mxu0 %v7302_v30  ;;  %v5286_v14 = vld [vmem:[%s7062_s3 + $0x60] ss:$8 sps:$4 sm:$0xff]  }
 0x1ef   : > { %v2162_v36 = vadd.f32 %v2161_v54, %v2001_v47  ;;  %v2004_v9 = vadd.f32 %v4712_v32, %v6494_v59  ;;  %3438 = vmatmul.mubr.bf16.gmra.mrb[216].mxu1 %v7303_v22  ;;  %3284 = vmatprep.mubr.bf16.mxu0 %v7304_v45  ;;  %v5277_v59 = vld [vmem:[%s7062_s3 + $0x30] ss:$8 sps:$4 sm:$0xff]   ;;  %v5288_v32 = vld [vmem:[%s7062_s3 + $0x64] ss:$8 sps:$4 sm:$0xff]  }
 0x1f0   : > { %4356 = vmatprep.mubr.msk.bf16.mxu1 %vm1503_vm1, %v7305_v55  ;;  %3786 = vmatpush1.bf16.msra.mxu0 %v5277_v59  ;;  %v7310_v47 = vld [vmem:[#allocation65_spill] sm:$0xff]  ;;  %v7313_v45 = vld [vmem:[#allocation68_spill] sm:$0xff] }
 0x1f1   : > { %v2165_v33 = vadd.f32 %v2164_v58, %v2004_v9  ;;  %v4713_v23 = vpop.f32.mrb[112].mxu0  ;;  %2288 = vrot.lane.b32.xlu1 %v2162_v36, %s5361_s10  ;;  %3787 = vmatprep.subr.bf16.mxu0 %v5282_v21  ;;  %v7312_v36 = vld [vmem:[#allocation67_spill] sm:$0xff]  ;;  %v5363_v9 = vmov 65535  }
 0x1f2   : > { %v4714_v10 = vpop.f32.mrb[113].mxu0  ;;  %v2169_v24 = vpop.f32.mrb[112].mxu1  ;;  %5084 = vmatpush1.bf16.msra.mxu1 %v5277_v59  ;;  %v3771_v22 = vsel %vm1552_vm0, 4294967295, %v5363_v9 }
 0x1f3   : > { %v4715_v50 = vadd.f32 %v4714_v10, %v4713_v23  ;;  %v4716_v57 = vpop.f32.mrb[114].mxu0  ;;  %2290 = vrot.lane.b32.xlu0 %v2165_v33, %s5361_s10  ;;  %v2171_v25 = vpop.f32.mrb[113].mxu1  ;;  %5077 = vmatprep.subr.bf16.mxu1 %v5282_v21  ;;  %v3772_v55 = vsel %vm3770_vm2, %v3771_v22, 0  ;;  %v7314_v21 = vld [vmem:[#allocation69_spill] sm:$0xff] }
 0x1f4   : > { %v4717_v52 = vpop.f32.mrb[115].mxu0  ;;  %v2172_v5 = vpop.f32.mrb[114].mxu1  ;;  %3788 = vmatpush1.bf16.msra.mxu0 %v5280_v6 }
 0x1f5   : > { %v4718_v43 = vadd.f32 %v4717_v52, %v4716_v57  ;;  %v2009_v0 = vadd.f32 %v4715_v50, %v6502_v63  ;;  %v2174_v46 = vpop.f32.mrb[115].mxu1  ;;  %v7309_v63 = vld [vmem:[#allocation64_spill] sm:$0xff]  ;;  %3789 = vmatprep.subr.bf16.mxu0 %v5285_v38 }
 0x1f6   : > { %3285 = vmatmul.mubr.bf16.gmra.mrb[220].mxu0 %v7306_v28  ;;  %5085 = vmatpush1.bf16.msra.mxu1 %v5280_v6 }
 0x1f7   : > { %v2170_v62 = vadd.f32 %v2169_v24, %v2009_v0  ;;  %v2012_v48 = vadd.f32 %v4718_v43, %v6507_v3  ;;  %3446 = vmatmul.mubr.bf16.gmra.mrb[220].mxu1 %v7307_v11  ;;  %3292 = vmatprep.mubr.bf16.mxu0 %v7308_v13  ;;  %v7317_v11 = vld [vmem:[#allocation72_spill] sm:$0xff] }
 0x1f8   : > { %4357 = vmatprep.mubr.msk.bf16.mxu1 %vm1503_vm1, %v7309_v63  ;;  %3790 = vmatpush1.bf16.msra.mxu0 %v5283_v18 }
 0x1f9   : > { %v2173_v44 = vadd.f32 %v2172_v5, %v2012_v48  ;;  %v4719_v60 = vpop.f32.mrb[116].mxu0  ;;  %2304 = vrot.lane.b32.xlu1 %v2170_v62, %s5362_s16  ;;  %3791 = vmatprep.subr.bf16.mxu0 %v5288_v32  ;;  %v7315_v62 = vld [vmem:[#allocation70_spill] sm:$0xff]  ;;  %v7316_v48 = vld [vmem:[#allocation71_spill] sm:$0xff] }
 0x1fa   : > { %v4720_v1 = vpop.f32.mrb[117].mxu0  ;;  %v2177_v3 = vpop.f32.mrb[116].mxu1  ;;  %5078 = vmatprep.subr.bf16.mxu1 %v5285_v38 }
 0x1fb   : > { %v4721_v34 = vadd.f32 %v4720_v1, %v4719_v60  ;;  %v4722_v54 = vpop.f32.mrb[118].mxu0  ;;  %2306 = vrot.lane.b32.xlu0 %v2173_v44, %s5362_s16  ;;  %v2179_v40 = vpop.f32.mrb[117].mxu1  ;;  %5086 = vmatpush1.bf16.msra.mxu1 %v5283_v18 }
 0x1fc   : > { %v4723_v19 = vpop.f32.mrb[119].mxu0  ;;  %v2180_v35 = vpop.f32.mrb[118].mxu1  ;;  %3792 = vmatpush1.bf16.msra.mxu0 %v5286_v14  ;;  %5079 = vmatprep.subr.bf16.mxu1 %v5288_v32  ;;  %v7318_v40 = vld [vmem:[#allocation73_spill] sm:$0xff]  ;;  %v7321_v32 = vld [vmem:[#allocation76_spill] sm:$0xff] }
 0x1fd   : > { %v4724_v61 = vadd.f32 %v4723_v19, %v4722_v54  ;;  %v2017_v41 = vadd.f32 %v4721_v34, %v6510_v53  ;;  %v2182_v58 = vpop.f32.mrb[119].mxu1  ;;  %v5291_v53 = vld [vmem:[%s7062_s3 + $0x74] ss:$8 sps:$4 sm:$0x1f]  }
 0x1fe   : > { %3293 = vmatmul.mubr.bf16.gmra.mrb[224].mxu0 %v7310_v47  ;;  %v3777_v16 = vand.u32 %v5291_v53, %v3772_v55  ;;  %v6725_v58 = vpop.permute.xlu0 %2342 }
 0x1ff   : > { %v2178_v7 = vadd.f32 %v2177_v3, %v2017_v41  ;;  %v2020_v30 = vadd.f32 %v4724_v61, %v6515_v27  ;;  %3454 = vmatmul.mubr.bf16.gmra.mrb[224].mxu1 %v7311_v8  ;;  %3300 = vmatprep.mubr.bf16.mxu0 %v7312_v36  ;;  %v5289_v27 = vld [vmem:[%s7062_s3 + $0x70] ss:$8 sps:$4 sm:$0x1f]   ;;  %v7319_v61 = vld [vmem:[#allocation74_spill] sm:$0xff] }
 0x200   : > { %4358 = vmatprep.mubr.msk.bf16.mxu1 %vm1503_vm1, %v7313_v45  ;;  %v3774_v59 = vand.u32 %v5289_v27, %v3772_v55  ;;  %3793 = vmatprep.subr.bf16.mxu0 %v3777_v16  ;;  %v7320_v41 = vld [vmem:[#allocation75_spill] sm:$0xff] }
 0x201   : > { %v2181_v33 = vadd.f32 %v2180_v35, %v2020_v30  ;;  %v4725_v23 = vpop.f32.mrb[120].mxu0  ;;  %2308 = vrot.lane.b32.xlu1 %v2178_v7, %s5362_s16  ;;  %5087 = vmatpush1.bf16.msra.mxu1 %v5286_v14 }
 0x202   : > { %v4726_v10 = vpop.f32.mrb[121].mxu0  ;;  %v2185_v24 = vpop.f32.mrb[120].mxu1  ;;  %3794 = vmatpush1.bf16.msra.mxu0 %v3774_v59  ;;  %5080 = vmatprep.subr.bf16.mxu1 %v3777_v16  ;;  %v7323_v16 = vld [vmem:[#allocation78_spill] sm:$0xff] }
 0x203   : > { %v4727_v50 = vadd.f32 %v4726_v10, %v4725_v23  ;;  %v4728_v57 = vpop.f32.mrb[122].mxu0  ;;  %2310 = vrot.lane.b32.xlu0 %v2181_v33, %s5362_s16  ;;  %v2187_v25 = vpop.f32.mrb[121].mxu1  ;;  %v7322_v33 = vld [vmem:[#allocation77_spill] sm:$0xff]  ;;  %v7324_v10 = vld [vmem:[#allocation79_spill] sm:$0xff] }
 0x204   : > { %v4729_v52 = vpop.f32.mrb[123].mxu0  ;;  %v2188_v5 = vpop.f32.mrb[122].mxu1 }
 0x205   : > { %v4730_v43 = vadd.f32 %v4729_v52, %v4728_v57  ;;  %v2025_v0 = vadd.f32 %v4727_v50, %v6518_v39  ;;  %v2190_v46 = vpop.f32.mrb[123].mxu1  ;;  %5088 = vmatpush1.bf16.msra.mxu1 %v3774_v59  ;;  %v6734_v23 = vpop.permute.xlu0 %2357  ;;  %v7325_v50 = vld [vmem:[#allocation80_spill] sm:$0xff] }
 0x206   : > { %3301 = vmatmul.mubr.bf16.gmra.mrb[228].mxu0 %v7314_v21  ;;  %v6740_v59 = vpop.permute.xlu1 %2347 }
 0x207   : > { %v2186_v28 = vadd.f32 %v2185_v24, %v2025_v0  ;;  %v2028_v6 = vadd.f32 %v4730_v43, %v6523_v42  ;;  %3462 = vmatmul.mubr.bf16.gmra.mrb[228].mxu1 %v7315_v62  ;;  %3308 = vmatprep.mubr.bf16.mxu0 %v7316_v48 }
 0x208   : > { %4359 = vmatprep.mubr.msk.bf16.mxu1 %vm1503_vm1, %v7317_v11 }
 0x209   : > { %v2189_v13 = vadd.f32 %v2188_v5, %v2028_v6  ;;  %v4731_v63 = vpop.f32.mrb[124].mxu0  ;;  %2324 = vrot.lane.b32.xlu1 %v2186_v28, %s5364_s7 }
 0x20a   : > { %v4732_v39 = vpop.f32.mrb[125].mxu0  ;;  %v2193_v44 = vpop.f32.mrb[124].mxu1 }
 0x20b   : > { %v4733_v60 = vadd.f32 %v4732_v39, %v4731_v63  ;;  %v4734_v38 = vpop.f32.mrb[126].mxu0  ;;  %2326 = vrot.lane.b32.xlu0 %v2189_v13, %s5364_s7  ;;  %v2195_v42 = vpop.f32.mrb[125].mxu1  ;;  %v7326_v63 = vld [vmem:[#allocation83_spill] sm:$0xff] }
 0x20c   : > { %v4735_v1 = vpop.f32.mrb[127].mxu0  ;;  %v2196_v3 = vpop.f32.mrb[126].mxu1  ;;  %v7329_v42 = vld [vmem:[#allocation86_spill] sm:$0xff] }
 0x20d   : > { %v4736_v18 = vadd.f32 %v4735_v1, %v4734_v38  ;;  %v2033_v34 = vadd.f32 %v4733_v60, %v6526_v15  ;;  %v2198_v54 = vpop.f32.mrb[127].mxu1  ;;  %v6749_v39 = vpop.permute.xlu1 %2352  ;;  %v7328_v60 = vld [vmem:[#allocation85_spill] sm:$0xff] }
 0x20e   : > { %3309 = vmatmul.mubr.bf16.gmra.mrb[232].mxu0 %v7318_v40 }
 0x20f   : > { %v6720_v19 = vadd.f32 %v2193_v44, %v2033_v34  ;;  %v2036_v35 = vadd.f32 %v4736_v18, %v6531_v26  ;;  %3470 = vmatmul.mubr.bf16.gmra.mrb[232].mxu1 %v7319_v61  ;;  %3316 = vmatprep.mubr.bf16.mxu0 %v7320_v41  ;;  %v7327_v44 = vld [vmem:[#allocation84_spill] sm:$0xff] }
 0x210   : > { %4360 = vmatprep.mubr.msk.bf16.mxu1 %vm1503_vm1, %v7321_v32 }
 0x211   : > { %v6729_v47 = vadd.f32 %v2196_v3, %v2036_v35  ;;  %v4753_v15 = vpop.f32.mrb[128].mxu0 }
 0x212   : > { %v4865_v14 = vpop.f32.mrb[128].mxu1  ;;  %v4754_v7 = vpop.f32.mrb[129].mxu0 }
 0x213   : > { %v4755_v30 = vadd.f32 %v4754_v7, %v4753_v15  ;;  %v4866_v8 = vpop.f32.mrb[129].mxu1  ;;  %v4756_v36 = vpop.f32.mrb[130].mxu0 }
 0x214   : > { %v4867_v53 = vadd.f32 %v4866_v8, %v4865_v14  ;;  %v4868_v9 = vpop.f32.mrb[130].mxu1  ;;  %v4757_v26 = vpop.f32.mrb[131].mxu0 }
 0x215   : > { %v4758_v22 = vadd.f32 %v4757_v26, %v4756_v36  ;;  %v4869_v45 = vpop.f32.mrb[131].mxu1 }
 0x216   : > { %v6731_v27 = vadd.f32 %v4867_v53, %v4755_v30  ;;  %v4870_v55 = vadd.f32 %v4869_v45, %v4868_v9  ;;  %3317 = vmatmul.mubr.bf16.gmra.mrb[236].mxu0 %v7322_v33  ;;  %v7330_v9 = vld [vmem:[#allocation89_spill] sm:$0xff]  ;;  %v7332_v45 = vld [vmem:[#allocation91_spill] sm:$0xff]  ;;  %v7333_v33 = vld [vmem:[#allocation92_spill] sm:$0xff] }
 0x217   : > { %3478 = vmatmul.mubr.bf16.gmra.mrb[236].mxu1 %v7323_v16  ;;  %3324 = vmatprep.mubr.bf16.mxu0 %v7324_v10 }
 0x218   : > { %v6738_v24 = vadd.f32 %v4870_v55, %v4758_v22  ;;  %4361 = vmatprep.mubr.msk.bf16.mxu1 %vm1503_vm1, %v7325_v50  ;;  %v7331_v22 = vld [vmem:[#allocation90_spill] sm:$0xff] }
 0x219   : > { %v4759_v57 = vpop.f32.mrb[132].mxu0 }
 0x21a   : > { %v4871_v25 = vpop.f32.mrb[132].mxu1  ;;  %v4760_v52 = vpop.f32.mrb[133].mxu0 }
 0x21b   : > { %v4761_v5 = vadd.f32 %v4760_v52, %v4759_v57  ;;  %v4872_v43 = vpop.f32.mrb[133].mxu1  ;;  %v4762_v0 = vpop.f32.mrb[134].mxu0 }
 0x21c   : > { %v4873_v46 = vadd.f32 %v4872_v43, %v4871_v25  ;;  %v4874_v21 = vpop.f32.mrb[134].mxu1  ;;  %v6744_v28 = vpop.permute.xlu0 %2204 }
 0x21d   : > { %v4763_v6 = vpop.f32.mrb[135].mxu0  ;;  %v4875_v62 = vpop.f32.mrb[135].mxu1 }
 0x21e   : > { %v6746_v48 = vadd.f32 %v4873_v46, %v4761_v5  ;;  %v4764_v11 = vadd.f32 %v4763_v6, %v4762_v0  ;;  %v4876_v13 = vadd.f32 %v4875_v62, %v4874_v21  ;;  %3325 = vmatmul.mubr.bf16.gmra.mrb[240].mxu0 %v7326_v63 }
 0x21f   : > { %3486 = vmatmul.mubr.bf16.gmra.mrb[240].mxu1 %v7327_v44  ;;  %3332 = vmatprep.mubr.bf16.mxu0 %v7328_v60 }
 0x220   : > { %v6753_v38 = vadd.f32 %v4876_v13, %v4764_v11  ;;  %4362 = vmatprep.mubr.msk.bf16.mxu1 %vm1503_vm1, %v7329_v42  ;;  %v6757_v1 = vpop.permute.xlu0 %2206 }
 0x221   : > { %v4765_v3 = vpop.f32.mrb[136].mxu0 }
 0x222   : > { %v4877_v18 = vpop.f32.mrb[136].mxu1  ;;  %v4766_v34 = vpop.f32.mrb[137].mxu0 }
 0x223   : > { %v4767_v54 = vadd.f32 %v4766_v34, %v4765_v3  ;;  %v4878_v40 = vpop.f32.mrb[137].mxu1  ;;  %v4768_v35 = vpop.f32.mrb[138].mxu0 }
 0x224   : > { %v4879_v61 = vadd.f32 %v4878_v40, %v4877_v18  ;;  %v4880_v41 = vpop.f32.mrb[138].mxu1  ;;  %v2209_v32 = vpop.permute.xlu1 %2208 }
 0x225   : > { %v2218_v15 = vadd.f32 %v2209_v32, %v6546_v12  ;;  %v4769_v14 = vpop.f32.mrb[139].mxu0  ;;  %v4881_v7 = vpop.f32.mrb[139].mxu1 }
 0x226   : > { %v6760_v30 = vadd.f32 %v4879_v61, %v4767_v54  ;;  %v4770_v8 = vadd.f32 %v4769_v14, %v4768_v35  ;;  %v4882_v36 = vadd.f32 %v4881_v7, %v4880_v41  ;;  %v2211_v53 = vpop.permute.xlu0 %2210  ;;  %3333 = vmatmul.mubr.bf16.gmra.mrb[244].mxu0 %v7330_v9 }
 0x227   : > { %v2219_v26 = vadd.f32 %v2211_v53, %v6552_v29  ;;  %3494 = vmatmul.mubr.bf16.gmra.mrb[244].mxu1 %v7331_v22  ;;  %3340 = vmatprep.mubr.bf16.mxu0 %v7332_v45 }
 0x228   : > { %v6766_v55 = vadd.f32 %v4882_v36, %v4770_v8  ;;  %4363 = vmatprep.mubr.msk.bf16.mxu1 %vm1503_vm1, %v7333_v33 }
 0x229   : > { %v4771_v12 = vpop.f32.mrb[140].mxu0 }
 0x22a   : > { %v4883_v16 = vpop.f32.mrb[140].mxu1  ;;  %v4772_v10 = vpop.f32.mrb[141].mxu0 }
 0x22b   : > { %v4773_v50 = vadd.f32 %v4772_v10, %v4771_v12  ;;  %v4884_v57 = vpop.f32.mrb[141].mxu1  ;;  %v4774_v25 = vpop.f32.mrb[142].mxu0 }
 0x22c   : > { %v4885_v52 = vadd.f32 %v4884_v57, %v4883_v16  ;;  %v4886_v5 = vpop.f32.mrb[142].mxu1  ;;  %v4775_v43 = vpop.f32.mrb[143].mxu0 }
 0x22d   : > { %v4887_v0 = vpop.f32.mrb[143].mxu1  ;;  %v4776_v46 = vadd.f32 %v4775_v43, %v4774_v25  ;;  %v6777_v62 = vpop.permute.xlu1 %2226 }
 0x22e   : > { %v6770_v29 = vadd.f32 %v4885_v52, %v4773_v50  ;;  %v4888_v21 = vadd.f32 %v4887_v0, %v4886_v5  ;;  %3341 = vmatmul.mubr.bf16.gmra.mrb[248].mxu0 %v6372_v51  ;;  %v6781_v11 = vpop.permute.xlu0 %2224 }
 0x22f   : > { %3502 = vmatmul.mubr.bf16.gmra.mrb[248].mxu1 %v6374_v31  ;;  %3348 = vmatprep.mubr.bf16.mxu0 %v6376_v37 }
 0x230   : > { %v6775_v6 = vadd.f32 %v4888_v21, %v4776_v46  ;;  %4364 = vmatprep.mubr.msk.bf16.mxu1 %vm1503_vm1, %v6378_v17 }
 0x231   : > { %v4777_v13 = vpop.f32.mrb[144].mxu0 }
 0x232   : > { %v4889_v63 = vpop.f32.mrb[144].mxu1  ;;  %v4778_v44 = vpop.f32.mrb[145].mxu0 }
 0x233   : > { %v4779_v60 = vadd.f32 %v4778_v44, %v4777_v13  ;;  %v4890_v42 = vpop.f32.mrb[145].mxu1  ;;  %v4780_v3 = vpop.f32.mrb[146].mxu0 }
 0x234   : > { %v4891_v51 = vadd.f32 %v4890_v42, %v4889_v63  ;;  %v4892_v18 = vpop.f32.mrb[146].mxu1  ;;  %v2229_v31 = vpop.permute.xlu1 %2228 }
 0x235   : > { %v2238_v34 = vadd.f32 %v2229_v31, %v2218_v15  ;;  %v4781_v37 = vpop.f32.mrb[147].mxu0  ;;  %v4893_v54 = vpop.f32.mrb[147].mxu1 }
 0x236   : > { %v6783_v40 = vadd.f32 %v4891_v51, %v4779_v60  ;;  %v4782_v35 = vadd.f32 %v4781_v37, %v4780_v3  ;;  %v4894_v61 = vadd.f32 %v4893_v54, %v4892_v18  ;;  %v2231_v41 = vpop.permute.xlu0 %2230  ;;  %3349 = vmatmul.mubr.bf16.gmra.mrb[252].mxu0 %v6389_v56 }
 0x237   : > { %v2239_v17 = vadd.f32 %v2231_v41, %v2219_v26  ;;  %3510 = vmatmul.mubr.bf16.gmra.mrb[252].mxu1 %v6391_v20  ;;  %3811 = vmatprep.mubr.bf16.mxu0 %v7201_v2 }
 0x238   : > { %v6788_v32 = vadd.f32 %v4894_v61, %v4782_v35  ;;  %3831 = vmatprep.mubr.bf16.mxu1 %v7201_v2 }
 0x239   : > { %v4783_v14 = vpop.f32.mrb[148].mxu0 }
 0x23a   : > { %v4895_v15 = vpop.f32.mrb[148].mxu1  ;;  %v4784_v7 = vpop.f32.mrb[149].mxu0 }
 0x23b   : > { %v4785_v8 = vadd.f32 %v4784_v7, %v4783_v14  ;;  %v4896_v36 = vpop.f32.mrb[149].mxu1  ;;  %v4786_v53 = vpop.f32.mrb[150].mxu0 }
 0x23c   : > { %v4897_v9 = vadd.f32 %v4896_v36, %v4895_v15  ;;  %v4898_v22 = vpop.f32.mrb[150].mxu1  ;;  %v4787_v45 = vpop.f32.mrb[151].mxu0 }
 0x23d   : > { %v4899_v33 = vpop.f32.mrb[151].mxu1  ;;  %v4788_v26 = vadd.f32 %v4787_v45, %v4786_v53  ;;  %v6795_v16 = vpop.permute.xlu1 %2246 }
 0x23e   : > { %v6791_v56 = vadd.f32 %v4897_v9, %v4785_v8  ;;  %v4900_v20 = vadd.f32 %v4899_v33, %v4898_v22  ;;  %v6797_v10 = vpop.permute.xlu0 %2244 }
 0x240   : > { %v6793_v12 = vadd.f32 %v4900_v20, %v4788_v26 }
 0x241   : > { %v4789_v50 = vpop.f32.mrb[152].mxu0 }
 0x242   : > { %v4901_v57 = vpop.f32.mrb[152].mxu1  ;;  %v4790_v25 = vpop.f32.mrb[153].mxu0 }
 0x243   : > { %v4791_v52 = vadd.f32 %v4790_v25, %v4789_v50  ;;  %v4902_v5 = vpop.f32.mrb[153].mxu1  ;;  %v4792_v43 = vpop.f32.mrb[154].mxu0 }
 0x244   : > { %v4903_v0 = vadd.f32 %v4902_v5, %v4901_v57  ;;  %v4904_v46 = vpop.f32.mrb[154].mxu1  ;;  %v2249_v21 = vpop.permute.xlu1 %2248 }
 0x245   : > { %v2258_v13 = vadd.f32 %v2249_v21, %v2238_v34  ;;  %v4793_v63 = vpop.f32.mrb[155].mxu0  ;;  %v4905_v44 = vpop.f32.mrb[155].mxu1 }
 0x246   : > { %v6799_v60 = vadd.f32 %v4903_v0, %v4791_v52  ;;  %v4794_v42 = vadd.f32 %v4793_v63, %v4792_v43  ;;  %v4906_v3 = vadd.f32 %v4905_v44, %v4904_v46  ;;  %v2251_v51 = vpop.permute.xlu0 %2250 }
 0x247   : > { %v2259_v18 = vadd.f32 %v2251_v51, %v2239_v17 }
 0x248   : > { %v6801_v31 = vadd.f32 %v4906_v3, %v4794_v42 }
 0x249   : > { %v4795_v37 = vpop.f32.mrb[156].mxu0 }
 0x24a   : > { %v4907_v54 = vpop.f32.mrb[156].mxu1  ;;  %v4796_v35 = vpop.f32.mrb[157].mxu0 }
 0x24b   : > { %v4797_v61 = vadd.f32 %v4796_v35, %v4795_v37  ;;  %v4908_v41 = vpop.f32.mrb[157].mxu1  ;;  %v4798_v14 = vpop.f32.mrb[158].mxu0 }
 0x24c   : > { %v4909_v15 = vadd.f32 %v4908_v41, %v4907_v54  ;;  %v4910_v7 = vpop.f32.mrb[158].mxu1  ;;  %v4799_v8 = vpop.f32.mrb[159].mxu0 }
 0x24d   : > { %v4911_v34 = vpop.f32.mrb[159].mxu1  ;;  %v4800_v53 = vadd.f32 %v4799_v8, %v4798_v14  ;;  %v6807_v45 = vpop.permute.xlu1 %2266 }
 0x24e   : > { %v6803_v36 = vadd.f32 %v4909_v15, %v4797_v61  ;;  %v4912_v9 = vadd.f32 %v4911_v34, %v4910_v7  ;;  %v6809_v17 = vpop.permute.xlu0 %2264 }
 0x250   : > { %v6805_v22 = vadd.f32 %v4912_v9, %v4800_v53 }
 0x251   : > { %v4801_v33 = vpop.f32.mrb[160].mxu0 }
 0x252   : > { %v4913_v26 = vpop.f32.mrb[160].mxu1  ;;  %v4802_v20 = vpop.f32.mrb[161].mxu0 }
 0x253   : > { %v4803_v50 = vadd.f32 %v4802_v20, %v4801_v33  ;;  %v4914_v57 = vpop.f32.mrb[161].mxu1  ;;  %v4804_v25 = vpop.f32.mrb[162].mxu0 }
 0x254   : > { %v4915_v52 = vadd.f32 %v4914_v57, %v4913_v26  ;;  %v4916_v5 = vpop.f32.mrb[162].mxu1  ;;  %v2269_v43 = vpop.permute.xlu1 %2268 }
 0x255   : > { %v2278_v0 = vadd.f32 %v2269_v43, %v2258_v13  ;;  %v4805_v46 = vpop.f32.mrb[163].mxu0  ;;  %v4917_v21 = vpop.f32.mrb[163].mxu1 }
 0x256   : > { %v6811_v63 = vadd.f32 %v4915_v52, %v4803_v50  ;;  %v4806_v44 = vadd.f32 %v4805_v46, %v4804_v25  ;;  %v4918_v42 = vadd.f32 %v4917_v21, %v4916_v5  ;;  %v2271_v3 = vpop.permute.xlu0 %2270 }
 0x257   : > { %v2279_v51 = vadd.f32 %v2271_v3, %v2259_v18 }
 0x258   : > { %v6813_v37 = vadd.f32 %v4918_v42, %v4806_v44 }
 0x259   : > { %v4807_v54 = vpop.f32.mrb[164].mxu0 }
 0x25a   : > { %v4919_v35 = vpop.f32.mrb[164].mxu1  ;;  %v4808_v61 = vpop.f32.mrb[165].mxu0 }
 0x25b   : > { %v4809_v41 = vadd.f32 %v4808_v61, %v4807_v54  ;;  %v4920_v14 = vpop.f32.mrb[165].mxu1  ;;  %v4810_v15 = vpop.f32.mrb[166].mxu0 }
 0x25c   : > { %v4921_v7 = vadd.f32 %v4920_v14, %v4919_v35  ;;  %v4922_v8 = vpop.f32.mrb[166].mxu1  ;;  %v4811_v34 = vpop.f32.mrb[167].mxu0 }
 0x25d   : > { %v4923_v13 = vpop.f32.mrb[167].mxu1  ;;  %v4812_v9 = vadd.f32 %v4811_v34, %v4810_v15  ;;  %v6817_v26 = vpop.permute.xlu1 %2284 }
 0x25e   : > { %v6815_v53 = vadd.f32 %v4921_v7, %v4809_v41  ;;  %v4924_v33 = vadd.f32 %v4923_v13, %v4922_v8  ;;  %v6821_v18 = vpop.permute.xlu0 %2286 }
 0x260   : > { %v6819_v20 = vadd.f32 %v4924_v33, %v4812_v9 }
 0x261   : > { %v4813_v50 = vpop.f32.mrb[168].mxu0 }
 0x262   : > { %v4925_v57 = vpop.f32.mrb[168].mxu1  ;;  %v4814_v25 = vpop.f32.mrb[169].mxu0 }
 0x263   : > { %v4815_v52 = vadd.f32 %v4814_v25, %v4813_v50  ;;  %v4926_v5 = vpop.f32.mrb[169].mxu1  ;;  %v4816_v43 = vpop.f32.mrb[170].mxu0 }
 0x264   : > { %v4927_v46 = vadd.f32 %v4926_v5, %v4925_v57  ;;  %v4928_v21 = vpop.f32.mrb[170].mxu1  ;;  %v2289_v44 = vpop.permute.xlu1 %2288 }
 0x265   : > { %v2298_v42 = vadd.f32 %v2289_v44, %v2278_v0  ;;  %v4817_v3 = vpop.f32.mrb[171].mxu0  ;;  %v4929_v54 = vpop.f32.mrb[171].mxu1 }
 0x266   : > { %v6823_v35 = vadd.f32 %v4927_v46, %v4815_v52  ;;  %v4818_v61 = vadd.f32 %v4817_v3, %v4816_v43  ;;  %v4930_v41 = vadd.f32 %v4929_v54, %v4928_v21  ;;  %v2291_v14 = vpop.permute.xlu0 %2290 }
 0x267   : > { %v2299_v15 = vadd.f32 %v2291_v14, %v2279_v51  ;;  %v2216_v51 = vadd.f32 %v6744_v28, %v6536_v4  ;;  %v2217_v14 = vadd.f32 %v6757_v1, %v6542_v49 }
 0x268   : > { %v6825_v7 = vadd.f32 %v4930_v41, %v4818_v61 }
 0x269   : > { %v4819_v8 = vpop.f32.mrb[172].mxu0 }
 0x26a   : > { %v4931_v34 = vpop.f32.mrb[172].mxu1  ;;  %v4820_v13 = vpop.f32.mrb[173].mxu0 }
 0x26b   : > { %v4821_v9 = vadd.f32 %v4820_v13, %v4819_v8  ;;  %v4932_v33 = vpop.f32.mrb[173].mxu1  ;;  %v4822_v50 = vpop.f32.mrb[174].mxu0  ;;  %v2236_v8 = vadd.f32 %v6781_v11, %v2216_v51 }
 0x26c   : > { %v4933_v57 = vadd.f32 %v4932_v33, %v4931_v34  ;;  %v4934_v25 = vpop.f32.mrb[174].mxu1  ;;  %v4823_v5 = vpop.f32.mrb[175].mxu0 }
 0x26d   : > { %v4935_v0 = vpop.f32.mrb[175].mxu1  ;;  %v4824_v52 = vadd.f32 %v4823_v5, %v4822_v50  ;;  %v2305_v43 = vpop.permute.xlu1 %2304  ;;  %v2256_v5 = vadd.f32 %v6797_v10, %v2236_v8 }
 0x26e   : > { %v6827_v44 = vadd.f32 %v4933_v57, %v4821_v9  ;;  %v4936_v46 = vadd.f32 %v4935_v0, %v4934_v25  ;;  %v2307_v3 = vpop.permute.xlu0 %2306  ;;  %v2237_v25 = vadd.f32 %v6777_v62, %v2217_v14 }
 0x26f   : > { %v2276_v51 = vadd.f32 %v6809_v17, %v2256_v5 }
 0x270   : > { %v6829_v21 = vadd.f32 %v4936_v46, %v4824_v52  ;;  %v2257_v11 = vadd.f32 %v6795_v16, %v2237_v25 }
 0x271   : > { %v4825_v54 = vpop.f32.mrb[176].mxu0  ;;  %v2296_v10 = vadd.f32 %v6817_v26, %v2276_v51 }
 0x272   : > { %v4937_v61 = vpop.f32.mrb[176].mxu1  ;;  %v4826_v41 = vpop.f32.mrb[177].mxu0  ;;  %v2277_v62 = vadd.f32 %v6807_v45, %v2257_v11 }
 0x273   : > { %v4827_v34 = vadd.f32 %v4826_v41, %v4825_v54  ;;  %v4938_v13 = vpop.f32.mrb[177].mxu1  ;;  %v4828_v9 = vpop.f32.mrb[178].mxu0 }
 0x274   : > { %v4939_v33 = vadd.f32 %v4938_v13, %v4937_v61  ;;  %v4940_v50 = vpop.f32.mrb[178].mxu1  ;;  %v2309_v57 = vpop.permute.xlu1 %2308  ;;  %v2297_v8 = vadd.f32 %v6821_v18, %v2277_v62 }
 0x275   : > { %v6838_v4 = vadd.f32 %v2309_v57, %v2298_v42  ;;  %v4829_v28 = vpop.f32.mrb[179].mxu0  ;;  %v4941_v0 = vpop.f32.mrb[179].mxu1 }
 0x276   : > { %v6840_v52 = vadd.f32 %v4939_v33, %v4827_v34  ;;  %v4830_v46 = vadd.f32 %v4829_v28, %v4828_v9  ;;  %v4942_v49 = vadd.f32 %v4941_v0, %v4940_v50  ;;  %v2311_v1 = vpop.permute.xlu0 %2310  ;;  %v2316_v34 = vadd.f32 %v2305_v43, %v2296_v10 }
 0x277   : > { %v6844_v54 = vadd.f32 %v2311_v1, %v2299_v15  ;;  %v2317_v15 = vadd.f32 %v2307_v3, %v2297_v8 }
 0x278   : > { %v6846_v61 = vadd.f32 %v4942_v49, %v4830_v46 }
 0x279   : > { %v4831_v42 = vpop.f32.mrb[180].mxu0 }
 0x27a   : > { %v4943_v41 = vpop.f32.mrb[180].mxu1  ;;  %v4832_v14 = vpop.f32.mrb[181].mxu0 }
 0x27b   : > { %v4833_v13 = vadd.f32 %v4832_v14, %v4831_v42  ;;  %v4944_v9 = vpop.f32.mrb[181].mxu1  ;;  %v4834_v33 = vpop.f32.mrb[182].mxu0 }
 0x27c   : > { %v4945_v16 = vadd.f32 %v4944_v9, %v4943_v41  ;;  %v4946_v50 = vpop.f32.mrb[182].mxu1  ;;  %v2325_v17 = vpop.permute.xlu1 %2324 }
 0x27d   : > { %v2336_v57 = vadd.f32 %v2325_v17, %v2316_v34  ;;  %v4835_v25 = vpop.f32.mrb[183].mxu0  ;;  %v4947_v5 = vpop.f32.mrb[183].mxu1 }
 0x27e   : > { %v6851_v28 = vadd.f32 %v4945_v16, %v4833_v13  ;;  %v4836_v45 = vadd.f32 %v4835_v25, %v4834_v33  ;;  %v4948_v26 = vadd.f32 %v4947_v5, %v4946_v50  ;;  %v2327_v0 = vpop.permute.xlu0 %2326 }
 0x27f   : > { %v2360_v46 = vadd.f32 %v6725_v58, %v2336_v57  ;;  %v2337_v49 = vadd.f32 %v2327_v0, %v2317_v15 }
 0x280   : > { %v6854_v18 = vadd.f32 %v4948_v26, %v4836_v45 }
 0x281   : > { %v2361_v43 = vadd.f32 %v6740_v59, %v2337_v49  ;;  %v4837_v1 = vpop.f32.mrb[184].mxu0  ;;  %v2364_v62 = vmax.f32 %v2360_v46, 0.0 }
 0x282   : > { %v4949_v11 = vpop.f32.mrb[184].mxu1  ;;  %v4838_v51 = vpop.f32.mrb[185].mxu0 }
 0x283   : > { %v2365_v3 = vmax.f32 %v2361_v43, 0.0  ;;  %v4839_v10 = vadd.f32 %v4838_v51, %v4837_v1  ;;  %v4950_v42 = vpop.f32.mrb[185].mxu1  ;;  %v4840_v41 = vpop.f32.mrb[186].mxu0 }
 0x284   : > { %v4951_v14 = vadd.f32 %v4950_v42, %v4949_v11  ;;  %v4952_v8 = vpop.f32.mrb[186].mxu1  ;;  %v4841_v34 = vpop.f32.mrb[187].mxu0 }
 0x285   : > { %v2368_v13 = vpack.c.bf16 %v2365_v3, %v2364_v62  ;;  %v4842_v9 = vadd.f32 %v4841_v34, %v4840_v41  ;;  %v4953_v33 = vpop.f32.mrb[187].mxu1 }
 0x286   : > { %v6857_v16 = vadd.f32 %v4951_v14, %v4839_v10  ;;  %v4954_v50 = vadd.f32 %v4953_v33, %v4952_v8 }
 0x287   : > { %4381 = vmatmul.mubr.msk.bf16.vlgmr.msra.gmra.mrb[0].mxu0 %vm3757_vm3, %v2368_v13 }
 0x288   : > { %v6860_v17 = vadd.f32 %v4954_v50, %v4842_v9  ;;  %3821 = vmatprep.mubr.bf16.mxu0 %v7201_v2 }
 0x289   : > { %v4843_v15 = vpop.f32.mrb[188].mxu0 }
 0x28a   : > { %v4955_v57 = vpop.f32.mrb[188].mxu1  ;;  %v4844_v25 = vpop.f32.mrb[189].mxu0 }
 0x28b   : > { %v4845_v5 = vadd.f32 %v4844_v25, %v4843_v15  ;;  %v4956_v45 = vpop.f32.mrb[189].mxu1  ;;  %v4846_v26 = vpop.f32.mrb[190].mxu0 }
 0x28c   : > { %v4957_v0 = vadd.f32 %v4956_v45, %v4955_v57  ;;  %v4958_v46 = vpop.f32.mrb[190].mxu1  ;;  %v4847_v49 = vpop.f32.mrb[191].mxu0 }
 0x28d   : > { %v4848_v43 = vadd.f32 %v4847_v49, %v4846_v26  ;;  %v4959_v1 = vpop.f32.mrb[191].mxu1 }
 0x28e   : > { %v6863_v11 = vadd.f32 %v4957_v0, %v4845_v5  ;;  %v4960_v51 = vadd.f32 %v4959_v1, %v4958_v46 }
 0x290   : > { %v6865_v62 = vadd.f32 %v4960_v51, %v4848_v43 }
 0x291   : > { %v4977_v3 = vpop.f32.mrb[192].mxu0 }
 0x292   : > { %v4978_v10 = vpop.f32.mrb[193].mxu0  ;;  %v3391_v42 = vpop.f32.mrb[192].mxu1 }
 0x293   : > { %v4979_v41 = vadd.f32 %v4978_v10, %v4977_v3  ;;  %v4980_v14 = vpop.f32.mrb[194].mxu0  ;;  %v3393_v8 = vpop.f32.mrb[193].mxu1 }
 0x294   : > { %v4981_v34 = vpop.f32.mrb[195].mxu0  ;;  %v3394_v13 = vpop.f32.mrb[194].mxu1 }
 0x295   : > { %v4982_v9 = vadd.f32 %v4981_v34, %v4980_v14  ;;  %v3231_v33 = vadd.f32 %v4979_v41, %v6731_v27  ;;  %v3396_v50 = vpop.f32.mrb[195].mxu1 }
 0x297   : > { %v6868_v15 = vadd.f32 %v3391_v42, %v3231_v33  ;;  %v3234_v57 = vadd.f32 %v4982_v9, %v6738_v24 }
 0x299   : > { %v6871_v25 = vadd.f32 %v3394_v13, %v3234_v57  ;;  %v4983_v5 = vpop.f32.mrb[196].mxu0 }
 0x29a   : > { %v4984_v45 = vpop.f32.mrb[197].mxu0  ;;  %v3399_v26 = vpop.f32.mrb[196].mxu1 }
 0x29b   : > { %v4985_v0 = vadd.f32 %v4984_v45, %v4983_v5  ;;  %v4986_v46 = vpop.f32.mrb[198].mxu0  ;;  %v3401_v49 = vpop.f32.mrb[197].mxu1 }
 0x29c   : > { %v4987_v43 = vpop.f32.mrb[199].mxu0  ;;  %v3402_v1 = vpop.f32.mrb[198].mxu1 }
 0x29d   : > { %v4988_v51 = vadd.f32 %v4987_v43, %v4986_v46  ;;  %v3239_v3 = vadd.f32 %v4985_v0, %v6746_v48  ;;  %v3404_v10 = vpop.f32.mrb[199].mxu1 }
 0x29f   : > { %v6874_v27 = vadd.f32 %v3399_v26, %v3239_v3  ;;  %v3242_v42 = vadd.f32 %v4988_v51, %v6753_v38 }
 0x2a1   : > { %v6877_v41 = vadd.f32 %v3402_v1, %v3242_v42  ;;  %v4989_v24 = vpop.f32.mrb[200].mxu0 }
 0x2a2   : > { %v4990_v14 = vpop.f32.mrb[201].mxu0  ;;  %v3407_v8 = vpop.f32.mrb[200].mxu1 }
 0x2a3   : > { %v4991_v34 = vadd.f32 %v4990_v14, %v4989_v24  ;;  %v4992_v13 = vpop.f32.mrb[202].mxu0  ;;  %v3409_v9 = vpop.f32.mrb[201].mxu1 }
 0x2a4   : > { %v4993_v33 = vpop.f32.mrb[203].mxu0  ;;  %v3410_v50 = vpop.f32.mrb[202].mxu1 }
 0x2a5   : > { %v4994_v57 = vadd.f32 %v4993_v33, %v4992_v13  ;;  %v3247_v5 = vadd.f32 %v4991_v34, %v6760_v30  ;;  %v3412_v45 = vpop.f32.mrb[203].mxu1 }
 0x2a7   : > { %v3408_v48 = vadd.f32 %v3407_v8, %v3247_v5  ;;  %v3250_v26 = vadd.f32 %v4994_v57, %v6766_v55 }
 0x2a9   : > { %v3411_v0 = vadd.f32 %v3410_v50, %v3250_v26  ;;  %v4995_v46 = vpop.f32.mrb[204].mxu0  ;;  %3522 = vrot.lane.b32.xlu1 %v3408_v48, %s5357_s17 }
 0x2aa   : > { %v4996_v38 = vpop.f32.mrb[205].mxu0  ;;  %v3415_v49 = vpop.f32.mrb[204].mxu1 }
 0x2ab   : > { %v4997_v43 = vadd.f32 %v4996_v38, %v4995_v46  ;;  %v4998_v1 = vpop.f32.mrb[206].mxu0  ;;  %v3417_v51 = vpop.f32.mrb[205].mxu1 }
 0x2ac   : > { %v4999_v3 = vpop.f32.mrb[207].mxu0  ;;  %v3418_v10 = vpop.f32.mrb[206].mxu1 }
 0x2ad   : > { %v5000_v42 = vadd.f32 %v4999_v3, %v4998_v1  ;;  %v3255_v24 = vadd.f32 %v4997_v43, %v6770_v29  ;;  %3524 = vrot.lane.b32.xlu1 %v3411_v0, %s5357_s17  ;;  %v3420_v30 = vpop.f32.mrb[207].mxu1 }
 0x2af   : > { %v3416_v14 = vadd.f32 %v3415_v49, %v3255_v24  ;;  %v3258_v55 = vadd.f32 %v5000_v42, %v6775_v6 }
 0x2b1   : > { %v3419_v8 = vadd.f32 %v3418_v10, %v3258_v55  ;;  %v5001_v34 = vpop.f32.mrb[208].mxu0  ;;  %3526 = vrot.lane.b32.xlu1 %v3416_v14, %s5357_s17 }
 0x2b2   : > { %v5002_v13 = vpop.f32.mrb[209].mxu0  ;;  %v3423_v9 = vpop.f32.mrb[208].mxu1 }
 0x2b3   : > { %v5003_v33 = vadd.f32 %v5002_v13, %v5001_v34  ;;  %v5004_v50 = vpop.f32.mrb[210].mxu0  ;;  %3528 = vrot.lane.b32.xlu0 %v3419_v8, %s5357_s17  ;;  %v3425_v57 = vpop.f32.mrb[209].mxu1  ;;  %s218_s17 = sand.u32 1, %s5346_s19  }
 0x2b4   : > { %v5005_v5 = vpop.f32.mrb[211].mxu0  ;;  %v3426_v45 = vpop.f32.mrb[210].mxu1  ;;  %s7018_s12 = scalar_lea.sflag [#allocation3], %s218_s17 }
 0x2b5   : > { %v5006_v29 = vadd.f32 %v5005_v5, %v5004_v50  ;;  %v3263_v48 = vadd.f32 %v5003_v33, %v6783_v40  ;;  %v3428_v26 = vpop.f32.mrb[211].mxu1 }
 0x2b7   : > { %v3424_v0 = vadd.f32 %v3423_v9, %v3263_v48  ;;  %v3266_v6 = vadd.f32 %v5006_v29, %v6788_v32 }
 0x2b9   : > { %v3427_v46 = vadd.f32 %v3426_v45, %v3266_v6  ;;  %v5007_v38 = vpop.f32.mrb[212].mxu0  ;;  %3542 = vrot.lane.b32.xlu0 %v3424_v0, %s5358_s25 }
 0x2ba   : > { %v5008_v49 = vpop.f32.mrb[213].mxu0  ;;  %v3431_v43 = vpop.f32.mrb[212].mxu1 }
 0x2bb   : > { %v5009_v1 = vadd.f32 %v5008_v49, %v5007_v38  ;;  %v5010_v51 = vpop.f32.mrb[214].mxu0  ;;  %3544 = vrot.lane.b32.xlu1 %v3427_v46, %s5358_s25  ;;  %v3433_v3 = vpop.f32.mrb[213].mxu1 }
 0x2bc   : > { %v5011_v10 = vpop.f32.mrb[215].mxu0  ;;  %v3434_v42 = vpop.f32.mrb[214].mxu1 }
 0x2bd   : > { %v5012_v24 = vadd.f32 %v5011_v10, %v5010_v51  ;;  %v3271_v40 = vadd.f32 %v5009_v1, %v6791_v56  ;;  %v3436_v30 = vpop.f32.mrb[215].mxu1 }
 0x2bf   : > { %v3432_v14 = vadd.f32 %v3431_v43, %v3271_v40  ;;  %v3274_v32 = vadd.f32 %v5012_v24, %v6793_v12 }
 0x2c1   : > { %v3435_v55 = vadd.f32 %v3434_v42, %v3274_v32  ;;  %v5013_v8 = vpop.f32.mrb[216].mxu0  ;;  %3546 = vrot.lane.b32.xlu1 %v3432_v14, %s5358_s25 }
 0x2c2   : > { %v5014_v34 = vpop.f32.mrb[217].mxu0  ;;  %v3439_v13 = vpop.f32.mrb[216].mxu1 }
 0x2c3   : > { %v5015_v9 = vadd.f32 %v5014_v34, %v5013_v8  ;;  %v5016_v33 = vpop.f32.mrb[218].mxu0  ;;  %3548 = vrot.lane.b32.xlu0 %v3435_v55, %s5358_s25  ;;  %v3441_v50 = vpop.f32.mrb[217].mxu1 }
 0x2c4   : > { %v5017_v57 = vpop.f32.mrb[219].mxu0  ;;  %v3442_v5 = vpop.f32.mrb[218].mxu1 }
 0x2c5   : > { %v5018_v45 = vadd.f32 %v5017_v57, %v5016_v33  ;;  %v3279_v56 = vadd.f32 %v5015_v9, %v6799_v60  ;;  %v3444_v29 = vpop.f32.mrb[219].mxu1 }
 0x2c7   : > { %v3440_v48 = vadd.f32 %v3439_v13, %v3279_v56  ;;  %v3282_v12 = vadd.f32 %v5018_v45, %v6801_v31 }
 0x2c9   : > { %v3443_v26 = vadd.f32 %v3442_v5, %v3282_v12  ;;  %v5019_v0 = vpop.f32.mrb[220].mxu0  ;;  %3562 = vrot.lane.b32.xlu0 %v3440_v48, %s5359_s26 }
 0x2ca   : > { %v5020_v6 = vpop.f32.mrb[221].mxu0  ;;  %v3447_v46 = vpop.f32.mrb[220].mxu1 }
 0x2cb   : > { %v5021_v38 = vadd.f32 %v5020_v6, %v5019_v0  ;;  %v5022_v49 = vpop.f32.mrb[222].mxu0  ;;  %3564 = vrot.lane.b32.xlu1 %v3443_v26, %s5359_s26  ;;  %v3449_v43 = vpop.f32.mrb[221].mxu1 }
 0x2cc   : > { %v5023_v1 = vpop.f32.mrb[223].mxu0  ;;  %v3450_v51 = vpop.f32.mrb[222].mxu1 }
 0x2cd   : > { %v5024_v3 = vadd.f32 %v5023_v1, %v5022_v49  ;;  %v3287_v60 = vadd.f32 %v5021_v38, %v6803_v36  ;;  %v3452_v10 = vpop.f32.mrb[223].mxu1 }
 0x2cf   : > { %v3448_v42 = vadd.f32 %v3447_v46, %v3287_v60  ;;  %v3290_v31 = vadd.f32 %v5024_v3, %v6805_v22 }
 0x2d1   : > { %v3451_v24 = vadd.f32 %v3450_v51, %v3290_v31  ;;  %v5025_v40 = vpop.f32.mrb[224].mxu0  ;;  %3566 = vrot.lane.b32.xlu1 %v3448_v42, %s5359_s26 }
 0x2d2   : > { %v5026_v30 = vpop.f32.mrb[225].mxu0  ;;  %v3455_v14 = vpop.f32.mrb[224].mxu1 }
 0x2d3   : > { %v5027_v32 = vadd.f32 %v5026_v30, %v5025_v40  ;;  %v5028_v55 = vpop.f32.mrb[226].mxu0  ;;  %3568 = vrot.lane.b32.xlu0 %v3451_v24, %s5359_s26  ;;  %v3457_v8 = vpop.f32.mrb[225].mxu1 }
 0x2d4   : > { %v5029_v34 = vpop.f32.mrb[227].mxu0  ;;  %v3458_v13 = vpop.f32.mrb[226].mxu1 }
 0x2d5   : > { %v5030_v9 = vadd.f32 %v5029_v34, %v5028_v55  ;;  %v3295_v36 = vadd.f32 %v5027_v32, %v6811_v63  ;;  %v3460_v33 = vpop.f32.mrb[227].mxu1 }
 0x2d7   : > { %v3456_v50 = vadd.f32 %v3455_v14, %v3295_v36  ;;  %v3298_v22 = vadd.f32 %v5030_v9, %v6813_v37 }
 0x2d9   : > { %v3459_v57 = vadd.f32 %v3458_v13, %v3298_v22  ;;  %v5031_v5 = vpop.f32.mrb[228].mxu0  ;;  %3582 = vrot.lane.b32.xlu0 %v3456_v50, %s5360_s30 }
 0x2da   : > { %v5032_v45 = vpop.f32.mrb[229].mxu0  ;;  %v3463_v56 = vpop.f32.mrb[228].mxu1 }
 0x2db   : > { %v5033_v29 = vadd.f32 %v5032_v45, %v5031_v5  ;;  %v5034_v48 = vpop.f32.mrb[230].mxu0  ;;  %3584 = vrot.lane.b32.xlu1 %v3459_v57, %s5360_s30  ;;  %v3465_v12 = vpop.f32.mrb[229].mxu1 }
 0x2dc   : > { %v5035_v26 = vpop.f32.mrb[231].mxu0  ;;  %v3466_v0 = vpop.f32.mrb[230].mxu1 }
 0x2dd   : > { %v5036_v6 = vadd.f32 %v5035_v26, %v5034_v48  ;;  %v3303_v63 = vadd.f32 %v5033_v29, %v6815_v53  ;;  %v3468_v46 = vpop.f32.mrb[231].mxu1 }
 0x2df   : > { %v3464_v38 = vadd.f32 %v3463_v56, %v3303_v63  ;;  %v3306_v37 = vadd.f32 %v5036_v6, %v6819_v20 }
 0x2e1   : > { %v3467_v49 = vadd.f32 %v3466_v0, %v3306_v37  ;;  %v5037_v43 = vpop.f32.mrb[232].mxu0  ;;  %3586 = vrot.lane.b32.xlu1 %v3464_v38, %s5360_s30 }
 0x2e2   : > { %v5038_v1 = vpop.f32.mrb[233].mxu0  ;;  %v3471_v51 = vpop.f32.mrb[232].mxu1 }
 0x2e3   : > { %v5039_v3 = vadd.f32 %v5038_v1, %v5037_v43  ;;  %v5040_v60 = vpop.f32.mrb[234].mxu0  ;;  %3588 = vrot.lane.b32.xlu0 %v3467_v49, %s5360_s30  ;;  %v3473_v10 = vpop.f32.mrb[233].mxu1  ;;  %s3951_s30 = sshll.u32 %s218_s17, 7 }
 0x2e4   : > { %v5041_v42 = vpop.f32.mrb[235].mxu0  ;;  %v3474_v31 = vpop.f32.mrb[234].mxu1 }
 0x2e5   : > { %v5042_v24 = vadd.f32 %v5041_v42, %v5040_v60  ;;  %v3311_v53 = vadd.f32 %v5039_v3, %v6823_v35  ;;  %v3476_v40 = vpop.f32.mrb[235].mxu1 }
 0x2e7   : > { %v3472_v30 = vadd.f32 %v3471_v51, %v3311_v53  ;;  %v3314_v20 = vadd.f32 %v5042_v24, %v6825_v7 }
 0x2e9   : > { %v3475_v14 = vadd.f32 %v3474_v31, %v3314_v20  ;;  %v5043_v32 = vpop.f32.mrb[236].mxu0  ;;  %3602 = vrot.lane.b32.xlu1 %v3472_v30, %s5361_s10 }
 0x2ea   : > { %v5044_v55 = vpop.f32.mrb[237].mxu0  ;;  %v3479_v8 = vpop.f32.mrb[236].mxu1 }
 0x2eb   : > { %v5045_v34 = vadd.f32 %v5044_v55, %v5043_v32  ;;  %v5046_v13 = vpop.f32.mrb[238].mxu0  ;;  %3604 = vrot.lane.b32.xlu0 %v3475_v14, %s5361_s10  ;;  %v3481_v9 = vpop.f32.mrb[237].mxu1 }
 0x2ec   : > { %v5047_v36 = vpop.f32.mrb[239].mxu0  ;;  %v3482_v33 = vpop.f32.mrb[238].mxu1 }
 0x2ed   : > { %v5048_v50 = vadd.f32 %v5047_v36, %v5046_v13  ;;  %v3319_v35 = vadd.f32 %v5045_v34, %v6827_v44  ;;  %v3484_v22 = vpop.f32.mrb[239].mxu1 }
 0x2ef   : > { %v3480_v57 = vadd.f32 %v3479_v8, %v3319_v35  ;;  %v3322_v7 = vadd.f32 %v5048_v50, %v6829_v21 }
 0x2f1   : > { %v3483_v5 = vadd.f32 %v3482_v33, %v3322_v7  ;;  %v5049_v45 = vpop.f32.mrb[240].mxu0  ;;  %3606 = vrot.lane.b32.xlu1 %v3480_v57, %s5361_s10 }
 0x2f2   : > { %v5050_v56 = vpop.f32.mrb[241].mxu0  ;;  %v3487_v29 = vpop.f32.mrb[240].mxu1 }
 0x2f3   : > { %v5051_v48 = vadd.f32 %v5050_v56, %v5049_v45  ;;  %v5052_v12 = vpop.f32.mrb[242].mxu0  ;;  %3608 = vrot.lane.b32.xlu0 %v3483_v5, %s5361_s10  ;;  %v3489_v26 = vpop.f32.mrb[241].mxu1  ;;  %s6951_s10 = scalar_lea.vmem [#allocation2], %s3951_s30 }
 0x2f4   : > { %v5053_v0 = vpop.f32.mrb[243].mxu0  ;;  %v3490_v6 = vpop.f32.mrb[242].mxu1  ;;  %s3885_s8 = sshll.u32 %s6951_s10, 4  ;;  %s7008_s8 = int_to_ptr.vmem [resolvable:$true] %s3885_s8 }
 0x2f5   : > { %v5054_v63 = vadd.f32 %v5053_v0, %v5052_v12  ;;  %v3327_v44 = vadd.f32 %v5051_v48, %v6840_v52  ;;  %v3492_v46 = vpop.f32.mrb[243].mxu1  ;;  %s5292_s13 = scalar_lea.vmem %s7008_s8, 2048  ;;  %p5299_p0 = scmp.lt.s32.totalorder %s7008_s8, %s5297_s15 }
 0x2f6   : > { %p5293_p11 = scmp.ne.s32.totalorder %s7008_s8, %s5292_s13  ;;  %p5300_p1 = scmp.lt.s32.totalorder %s5298_s23, %s5292_s13 }
 0x2f7   : > { %v3488_v38 = vadd.f32 %v3487_v29, %v3327_v44  ;;  %v3330_v21 = vadd.f32 %v5054_v63, %v6846_v61 }
 0x2f8   : > { %p5294_p12 = pnand %p5293_p11, %p5436_p5  ;;  %p5301_p2 = por %p5300_p1, %p5299_p0 }
 0x2f9   : > { %v3491_v37 = vadd.f32 %v3490_v6, %v3330_v21  ;;  %v5055_v49 = vpop.f32.mrb[244].mxu0  ;;  %3622 = vrot.lane.b32.xlu1 %v3488_v38, %s5362_s16 }
 0x2fa   : > { %v5056_v43 = vpop.f32.mrb[245].mxu0  ;;  %v3495_v1 = vpop.f32.mrb[244].mxu1  ;;  %p5295_p13 = pneg %p5294_p12 }
 0x2fb   : > { %v5057_v51 = vadd.f32 %v5056_v43, %v5055_v49  ;;  %v5058_v3 = vpop.f32.mrb[246].mxu0  ;;  %3624 = vrot.lane.b32.xlu0 %v3491_v37, %s5362_s16  ;;  %v3497_v60 = vpop.f32.mrb[245].mxu1 }
 0x2fc   : > { %v5059_v10 = vpop.f32.mrb[247].mxu0  ;;  %v3498_v42 = vpop.f32.mrb[246].mxu1  ;;  %p5302_p3 = pnand %p5301_p2, %p5295_p13 }
 0x2fd   : > { %v5060_v31 = vadd.f32 %v5059_v10, %v5058_v3  ;;  %v3335_v52 = vadd.f32 %v5057_v51, %v6851_v28  ;;  %v3500_v24 = vpop.f32.mrb[247].mxu1 }
 0x2ff   : > { %v3496_v53 = vadd.f32 %v3495_v1, %v3335_v52  ;;  %v3338_v61 = vadd.f32 %v5060_v31, %v6854_v18 }
 0x301   : > { %v3499_v40 = vadd.f32 %v3498_v42, %v3338_v61  ;;  %v5061_v30 = vpop.f32.mrb[248].mxu0  ;;  %3626 = vrot.lane.b32.xlu1 %v3496_v53, %s5362_s16 }
 0x302   : > { %v5062_v20 = vpop.f32.mrb[249].mxu0  ;;  %v3503_v14 = vpop.f32.mrb[248].mxu1 }
 0x303   : > { %v5063_v32 = vadd.f32 %v5062_v20, %v5061_v30  ;;  %v5064_v55 = vpop.f32.mrb[250].mxu0  ;;  %3628 = vrot.lane.b32.xlu0 %v3499_v40, %s5362_s16  ;;  %v3505_v8 = vpop.f32.mrb[249].mxu1  ;;  %s4400_s16 = sshll.u32 %s5419_s22, 11 }
 0x304   : > { %v5065_v34 = vpop.f32.mrb[251].mxu0  ;;  %v3506_v13 = vpop.f32.mrb[250].mxu1  ;;  %s7006_s22 = scalar_lea.hbm %s7064_s5, %s4400_s16 }
 0x305   : > { %v5066_v9 = vadd.f32 %v5065_v34, %v5064_v55  ;;  %v3343_v28 = vadd.f32 %v5063_v32, %v6857_v16  ;;  %v3508_v36 = vpop.f32.mrb[251].mxu1 }
 0x307   : > { %v3504_v33 = vadd.f32 %v3503_v14, %v3343_v28  ;;  %v3346_v18 = vadd.f32 %v5066_v9, %v6860_v17 }
 0x309   : > { %v3507_v50 = vadd.f32 %v3506_v13, %v3346_v18  ;;  %v5067_v35 = vpop.f32.mrb[252].mxu0  ;;  %3642 = vrot.lane.b32.xlu1 %v3504_v33, %s5364_s7 }
 0x30a   : > { %v5068_v22 = vpop.f32.mrb[253].mxu0  ;;  %v3511_v57 = vpop.f32.mrb[252].mxu1 }
 0x30b   : > { %v5069_v7 = vadd.f32 %v5068_v22, %v5067_v35  ;;  %v5070_v5 = vpop.f32.mrb[254].mxu0  ;;  %3644 = vrot.lane.b32.xlu0 %v3507_v50, %s5364_s7  ;;  %v3513_v45 = vpop.f32.mrb[253].mxu1 }
 0x30c   : > { %v5071_v56 = vpop.f32.mrb[255].mxu0  ;;  %v3514_v29 = vpop.f32.mrb[254].mxu1 }
 0x30d   : > { %v5072_v48 = vadd.f32 %v5071_v56, %v5070_v5  ;;  %v3351_v16 = vadd.f32 %v5069_v7, %v6863_v11  ;;  %2328 = vrot.lane.b32.xlu1 %v6720_v19, %s5364_s7  ;;  %v3516_v17 = vpop.f32.mrb[255].mxu1  ;;  %v3669_v11 = vlaneseq }
 0x30f   : > { %v3512_v12 = vadd.f32 %v3511_v57, %v3351_v16  ;;  %v3354_v26 = vadd.f32 %v5072_v48, %v6865_v62  ;;  %2330 = vrot.lane.b32.xlu0 %v6729_v47, %s5364_s7  ;;  %v3670_v46 = vshrl.u32 %v3669_v11, 7  ;;  %v378_v62 = vld [vmem:[%s7063_s4] sm:$0x3] }
 0x311   : > { %v3515_v0 = vadd.f32 %v3514_v29, %v3354_v26  ;;  %3646 = vrot.lane.b32.xlu1 %v3512_v12, %s5364_s7  ;;  %v3671_v21 = vsub.s32 0, %v3670_v46  ;;  %v3675_v47 = vsub.s32 1, %v3670_v46 }
 0x313   : > { %3648 = vrot.lane.b32.xlu0 %v3515_v0, %s5364_s7  ;;  %v6945_v43 = vrot.slane %v378_v62, %v3671_v21  ;;  %v6947_v1 = vrot.slane %v378_v62, %v3675_v47 }
 0x31b   : > { %v3523_v6 = vpop.permute.xlu1 %3522 }
 0x31c   : > { %v3534_v28 = vadd.f32 %v3523_v6, %v6868_v15 }
 0x31f   : > { %v3525_v63 = vpop.permute.xlu1 %3524 }
 0x320   : > { %v3535_v33 = vadd.f32 %v3525_v63, %v6871_v25 }
 0x323   : > { %v3527_v44 = vpop.permute.xlu1 %3526 }
 0x324   : > { %v3536_v45 = vadd.f32 %v3527_v44, %v6874_v27 }
 0x325   : > { %v3529_v19 = vpop.permute.xlu0 %3528 }
 0x326   : > { %v3537_v16 = vadd.f32 %v3529_v19, %v6877_v41 }
 0x32b   : > { %v3543_v37 = vpop.permute.xlu0 %3542 }
 0x32c   : > { %v3554_v18 = vadd.f32 %v3543_v37, %v3534_v28 }
 0x32d   : > { %v3545_v38 = vpop.permute.xlu1 %3544 }
 0x32e   : > { %v3555_v35 = vadd.f32 %v3545_v38, %v3535_v33 }
 0x333   : > { %v3547_v49 = vpop.permute.xlu1 %3546 }
 0x334   : > { %v3556_v17 = vadd.f32 %v3547_v49, %v3536_v45 }
 0x335   : > { %v3549_v51 = vpop.permute.xlu0 %3548 }
 0x336   : > { %v3557_v0 = vadd.f32 %v3549_v51, %v3537_v16 }
 0x33b   : > { %v3563_v24 = vpop.permute.xlu0 %3562 }
 0x33c   : > { %v3574_v22 = vadd.f32 %v3563_v24, %v3554_v18 }
 0x33d   : > { %v3565_v60 = vpop.permute.xlu1 %3564 }
 0x33e   : > { %v3575_v7 = vadd.f32 %v3565_v60, %v3555_v35 }
 0x343   : > { %v3567_v30 = vpop.permute.xlu1 %3566 }
 0x344   : > { %v3576_v25 = vadd.f32 %v3567_v30, %v3556_v17 }
 0x345   : > { %v3569_v20 = vpop.permute.xlu0 %3568 }
 0x346   : > { %v3577_v46 = vadd.f32 %v3569_v20, %v3557_v0 }
 0x34b   : > { %v3583_v32 = vpop.permute.xlu0 %3582 }
 0x34c   : > { %v3594_v5 = vadd.f32 %v3583_v32, %v3574_v22 }
 0x34d   : > { %v3585_v14 = vpop.permute.xlu1 %3584 }
 0x34e   : > { %v3595_v29 = vadd.f32 %v3585_v14, %v3575_v7 }
 0x353   : > { %v3587_v55 = vpop.permute.xlu1 %3586 }
 0x354   : > { %v3596_v38 = vadd.f32 %v3587_v55, %v3576_v25 }
 0x355   : > { %v3589_v8 = vpop.permute.xlu0 %3588 }
 0x356   : > { %v3597_v44 = vadd.f32 %v3589_v8, %v3577_v46 }
 0x35a   : > { %v3813_v3 = vpop.f32.mrb[0].mxu0 }
 0x35b   : > { %v3814_v10 = vadd.f32 %v3813_v3, %v6945_v43  ;;  %v3815_v42 = vpop.f32.mrb[1].mxu0  ;;  %v3603_v34 = vpop.permute.xlu1 %3602 }
 0x35c   : > { %v3816_v31 = vadd.f32 %v3815_v42, %v6947_v1  ;;  %v3817_v52 = vpop.f32.mrb[2].mxu0  ;;  %v3614_v48 = vadd.f32 %v3603_v34, %v3594_v5 }
 0x35d   : > { %3852 = vst [vmem:[%s6951_s10] sm:$0xff] %v3814_v10  ;;  %v3818_v53 = vadd.f32 %v3817_v52, %v6945_v43  ;;  %v3819_v61 = vpop.f32.mrb[3].mxu0  ;;  %v3605_v13 = vpop.permute.xlu0 %3604 }
 0x35e   : > { %3854 = vst.msk [vmem:[%s6951_s10 + $0x8] sm:$0xff] %vm3853_vm4, %v3816_v31  ;;  %v3820_v40 = vadd.f32 %v3819_v61, %v6947_v1  ;;  %v3615_v15 = vadd.f32 %v3605_v13, %v3595_v29 }
 0x35f   : > { %3855 = vst [vmem:[%s6951_s10 + $0x10] sm:$0xff] %v3818_v53 }
 0x360   : > { %3856 = vst.msk [vmem:[%s6951_s10 + $0x18] sm:$0xff] %vm3853_vm4, %v3820_v40 }
 0x363   : > { %v3607_v9 = vpop.permute.xlu1 %3606 }
 0x364   : > { %v3616_v47 = vadd.f32 %v3607_v9, %v3596_v38 }
 0x365   : > { %v3609_v36 = vpop.permute.xlu0 %3608 }
 0x366   : > { %v3617_v49 = vadd.f32 %v3609_v36, %v3597_v44 }
 0x36b   : > { %v3623_v50 = vpop.permute.xlu1 %3622 }
 0x36c   : > { %v3634_v26 = vadd.f32 %v3623_v50, %v3614_v48 }
 0x36d   : > { %v3625_v57 = vpop.permute.xlu0 %3624 }
 0x36e   : > { %v3635_v63 = vadd.f32 %v3625_v57, %v3615_v15 }
 0x373   : > { %v3627_v56 = vpop.permute.xlu1 %3626 }
 0x374   : > { %v3636_v3 = vadd.f32 %v3627_v56, %v3616_v47 }
 0x375   : > { %v3629_v12 = vpop.permute.xlu0 %3628 }
 0x376   : > { %v3637_v24 = vadd.f32 %v3629_v12, %v3617_v49 }
 0x37b   : > { %v3643_v6 = vpop.permute.xlu1 %3642 }
 0x37c   : > { %v3654_v11 = vadd.f32 %v3643_v6, %v3634_v26 }
 0x37d   : > { %v3645_v21 = vpop.permute.xlu0 %3644 }
 0x37e   : > { %v3658_v62 = vadd.f32 %v3654_v11, %v6725_v58  ;;  %v3655_v27 = vadd.f32 %v3645_v21, %v3635_v63 }
 0x37f   : > { %v2329_v37 = vpop.permute.xlu1 %2328 }
 0x380   : > { %v3659_v41 = vadd.f32 %v3655_v27, %v6740_v59  ;;  %v2338_v19 = vadd.f32 %v2329_v37, %v6838_v4  ;;  %v3662_v60 = vmax.f32 %v3658_v62, 0.0 }
 0x381   : > { %v2331_v51 = vpop.permute.xlu0 %2330 }
 0x382   : > { %v3663_v10 = vmax.f32 %v3659_v41, 0.0  ;;  %v2362_v42 = vadd.f32 %v6749_v39, %v2338_v19  ;;  %v2339_v31 = vadd.f32 %v2331_v51, %v6844_v54 }
 0x383   : > { %v3647_v52 = vpop.permute.xlu1 %3646 }
 0x384   : > { %v3666_v58 = vpack.c.bf16 %v3663_v10, %v3662_v60  ;;  %v2363_v53 = vadd.f32 %v6734_v23, %v2339_v31  ;;  %v3656_v61 = vadd.f32 %v3647_v52, %v3636_v3  ;;  %v2366_v30 = vmax.f32 %v2362_v42, 0.0 }
 0x385   : > { %v3649_v40 = vpop.permute.xlu0 %3648 }
 0x386   : > { %v2367_v59 = vmax.f32 %v2363_v53, 0.0  ;;  %v3660_v4 = vadd.f32 %v3656_v61, %v6749_v39  ;;  %v3657_v20 = vadd.f32 %v3649_v40, %v3637_v24  ;;  %4383 = vmatmul.mubr.msk.bf16.vlgmr.msra.gmra.mrb[0].mxu1 %vm3757_vm3, %v3666_v58 }
 0x387   : > { %3841 = vmatprep.mubr.bf16.mxu1 %v7201_v2 }
 0x388   : > { %v2369_v14 = vpack.c.bf16 %v2367_v59, %v2366_v30  ;;  %v3661_v54 = vadd.f32 %v3657_v20, %v6734_v23  ;;  %v3664_v32 = vmax.f32 %v3660_v4, 0.0 }
 0x38a   : > { %v3665_v55 = vmax.f32 %v3661_v54, 0.0  ;;  %4382 = vmatmul.mubr.msk.bf16.gmra.mrb[4].mxu0 %vm3757_vm3, %v2369_v14 }
 0x38c   : > { %v3667_v8 = vpack.c.bf16 %v3665_v55, %v3664_v32 }
 0x38e   : > { %4384 = vmatmul.mubr.msk.bf16.gmra.mrb[4].mxu1 %vm3757_vm3, %v3667_v8 }
 0x459   : > { %v3833_v39 = vpop.f32.mrb[0].mxu1 }
 0x45a   : > { %v3834_v34 = vadd.f32 %v3833_v39, %v6945_v43  ;;  %v3835_v13 = vpop.f32.mrb[1].mxu1 }
 0x45b   : > { %v3836_v2 = vadd.f32 %v3835_v13, %v6947_v1  ;;  %v3837_v9 = vpop.f32.mrb[2].mxu1 }
 0x45c   : > { %4385 = vst [vmem:[%s6951_s10 + $0x40] sm:$0xff] %v3834_v34  ;;  %v3838_v23 = vadd.f32 %v3837_v9, %v6945_v43  ;;  %v3839_v28 = vpop.f32.mrb[3].mxu1 }
 0x45d   : > { %4386 = vst.msk [vmem:[%s6951_s10 + $0x48] sm:$0xff] %vm3853_vm4, %v3836_v2  ;;  %v3840_v36 = vadd.f32 %v3839_v28, %v6947_v1  ;;  %v3823_v33 = vpop.f32.mrb[4].mxu0 }
 0x45e   : > { %4387 = vst [vmem:[%s6951_s10 + $0x50] sm:$0xff] %v3838_v23  ;;  %v3824_v18 = vadd.f32 %v3823_v33, %v6945_v43  ;;  %v3825_v50 = vpop.f32.mrb[5].mxu0 }
 0x45f   : > { %4388 = vst.msk [vmem:[%s6951_s10 + $0x58] sm:$0xff] %vm3853_vm4, %v3840_v36  ;;  %v3826_v35 = vadd.f32 %v3825_v50, %v6947_v1  ;;  %v3827_v22 = vpop.f32.mrb[6].mxu0 }
 0x460   : > { %3857 = vst [vmem:[%s6951_s10 + $0x20] sm:$0xff] %v3824_v18  ;;  %v3828_v57 = vadd.f32 %v3827_v22, %v6945_v43  ;;  %v3829_v7 = vpop.f32.mrb[7].mxu0 }
 0x461   : > { %3858 = vst.msk [vmem:[%s6951_s10 + $0x28] sm:$0xff] %vm3853_vm4, %v3826_v35  ;;  %v3830_v5 = vadd.f32 %v3829_v7, %v6947_v1  ;;  %v3843_v45 = vpop.f32.mrb[4].mxu1 }
 0x462   : > { %3859 = vst [vmem:[%s6951_s10 + $0x30] sm:$0xff] %v3828_v57  ;;  %v3844_v56 = vadd.f32 %v3843_v45, %v6945_v43  ;;  %v3845_v29 = vpop.f32.mrb[5].mxu1 }
 0x463   : > { %3860 = vst.msk [vmem:[%s6951_s10 + $0x38] sm:$0xff] %vm3853_vm4, %v3830_v5  ;;  %v3846_v48 = vadd.f32 %v3845_v29, %v6947_v1  ;;  %v3847_v16 = vpop.f32.mrb[6].mxu1 }
 0x464   : > { %4389 = vst [vmem:[%s6951_s10 + $0x60] sm:$0xff] %v3844_v56  ;;  %v3848_v17 = vadd.f32 %v3847_v16, %v6945_v43  ;;  %v3849_v12 = vpop.f32.mrb[7].mxu1 }
 0x465   : > { %4390 = vst.msk [vmem:[%s6951_s10 + $0x68] sm:$0xff] %vm3853_vm4, %v3846_v48  ;;  %v3850_v15 = vadd.f32 %v3849_v12, %v6947_v1 }
 0x466   : > { %4391 = vst [vmem:[%s6951_s10 + $0x70] sm:$0xff] %v3848_v17 }
 0x467   : > { %4392 = vst.msk [vmem:[%s6951_s10 + $0x78] sm:$0xff] %vm3853_vm4, %v3850_v15 }
 0x468   : > { %5305 = shalt.err (!%p5302_p3)
}
 0x469   : > { %s5306_s6 = scalar_lea.hbm %s7006_s22, 2048  ;;  %s5310_s25 = scalar_lea.hbm %s7064_s5, 4096 }
 0x46a   : > { %p5307_p4 = scmp.ne.s32.totalorder %s7006_s22, %s5306_s6  ;;  %p5311_p9 = scmp.lt.u32.totalorder %s7006_s22, %s7064_s5 }
 0x46b   : > { %p5312_p10 = scmp.lt.u32.totalorder %s5310_s25, %s5306_s6  ;;  %p5314_p12 = scmp.lt.u32.totalorder %s5306_s6, %s7006_s22 }
 0x46c   : > { %p5308_p7 = pnand %p5307_p4, %p5436_p5 }
 0x46d   : > { %p5313_p11 = por %p5312_p10, %p5311_p9 }
 0x46e   : > { %p5309_p8 = pneg %p5308_p7 }
 0x46f   : > { %p5315_p13 = por %p5314_p12, %p5313_p11 }
 0x471   : > { %p5316_p0 = pnand %p5315_p13, %p5309_p8 }
 0x473   : > { %5319 = shalt.err (!%p5316_p0)
}
 0x474   : > { %s5366_s10 = smov 256   ;;  %s5367_s16 = smov 16  }
 0x475   : > { %5090 = dma.vmem_to_hbm [thread:$0]  (%p5436_p5), %s7008_s8, 2048, %s7006_s22, %s7018_s12, %s5366_s10, %s5366_s10, %s5367_s16  }
 0x476 PF: > { %p5096_p1 = scmp.ge.s32.totalorder %s5354_s21, 2  ;;  %s3900_s9 = sand.u32 1, %s5342_s18  }
 0x477   : > { %s3901_s11 = scalar_lea.sflag [#allocation3], %s3900_s9 }
 0x478   : > { %p5093_p2 = pnand %p5096_p1, %p5440_p6 }
 0x47a   : > { %5337 = dma.done.wait (!%p5093_p2), %s3901_s11, 2048  }
 0x47b   : > { %5339 = vsyncadd (!%p5093_p2), %s3901_s11, 4294965248  ;;  %p15_p3 = scmp.ge.s32.totalorder %s5423_s24, 4   ;;  %s7334_s18 = smov %s5346_s19 }
 0x47c   : > { %s7335_s19 = smov %s5350_s20  ;;  %s7336_s20 = smov %s5434_s27 }
 0x47d   : > { %s7337_s21 = smov %s5423_s24  ;;  %17 = sbr.rel (!%p15_p3) target bundleno = 3 (0x3), region = 77 }
 0x484   :  { %3906 = vsyncpa [#allocation3], 1 }
 0x485   :  { %3908 = vsyncpa [#allocation3 + $0x1], 1 }

</bundles_post_ra>
